<compile_context>
chip_gen: v5e
topology: v5e:2x2
jax: 0.10.0
libtpu: 0.0.40
codegen_flags: <defaults>
</compile_context>

<pallas_src>
import math

import jax
import jax.numpy as jnp
from jax import lax
from jax.experimental import pallas as pl
from jax.experimental.pallas import tpu as pltpu

# ----------------------------- CFG / model config -----------------------------
CFG_BATCH_SIZE = 2
CFG_MAX_OPTION_NUM = 4          # O
CFG_NUM_LABELS = 4

HIDDEN = 128                    # bigbird.config.hidden_size
VOCAB = 256                     # bigbird.config.vocab_size
NUM_LAYERS = 2
NUM_HEADS = 4
HEAD_DIM = HIDDEN // NUM_HEADS
INTERMEDIATE = 256
MAX_POS = 64
TYPE_VOCAB = 2

SEQ = 16                        # sequence length S
OPT_LEN = 8                     # tokens per option string L
NUM_CHOICES = 4                 # the hard-coded "4" in the forward

_ATTN_SCALE = 1.0 / math.sqrt(HEAD_DIM)


# ----------------------------- in-kernel helpers -----------------------------
def _ln_2d(x, gamma, beta, eps=1e-12):
    """LayerNorm over the last axis; x (R, H) f32, gamma/beta (1, H)."""
    mu = jnp.mean(x, axis=-1, keepdims=True)
    var = jnp.mean((x - mu) ** 2, axis=-1, keepdims=True)
    return (x - mu) * lax.rsqrt(var + eps) * gamma + beta


# ----------------------------- fused encoder kernel -----------------------------
def _encoder_kernel(x_ref, m_ref, eg_ref, eb_ref,
                    wqkv_ref, bqkv_ref, wo_ref, bo_ref, l1g_ref, l1b_ref,
                    wi_ref, bi_ref, wo2_ref, bo2_ref, l2g_ref, l2b_ref,
                    o_ref):
    """One grid step per batch row: emb-LN + all encoder layers, h resident in VMEM."""
    hh = _ln_2d(x_ref[0], eg_ref[...], eb_ref[...])          # (S, H) f32
    bias = (1.0 - m_ref[0]) * -1e9                           # (1, S) additive key mask

    for l in range(NUM_LAYERS):
        # fused QKV projection (bf16 MXU operands, f32 accumulate)
        qkv = jnp.dot(hh.astype(jnp.bfloat16), wqkv_ref[l],
                      preferred_element_type=jnp.float32) + bqkv_ref[l]   # (S, 3H)
        q = qkv[:, :HIDDEN]
        k = qkv[:, HIDDEN:2 * HIDDEN]
        v = qkv[:, 2 * HIDDEN:]

        # per-head full softmax attention (softmax in f32)
        ctx_parts = []
        for hd in range(NUM_HEADS):
            lo = hd * HEAD_DIM
            qh = q[:, lo:lo + HEAD_DIM].astype(jnp.bfloat16)   # (S, Dh)
            kh = k[:, lo:lo + HEAD_DIM].astype(jnp.bfloat16)
            vh = v[:, lo:lo + HEAD_DIM].astype(jnp.bfloat16)
            s = lax.dot_general(qh, kh, (((1,), (1,)), ((), ())),
                                preferred_element_type=jnp.float32)       # (S, S)
            s = s * _ATTN_SCALE + bias
            s = s - jnp.max(s, axis=-1, keepdims=True)
            p = jnp.exp(s)
            p = p * pl.reciprocal(jnp.sum(p, axis=-1, keepdims=True), approx=True)
            ctx_parts.append(jnp.dot(p.astype(jnp.bfloat16), vh,
                                     preferred_element_type=jnp.float32))  # (S, Dh)
        ctx = jnp.concatenate(ctx_parts, axis=-1)                          # (S, H)

        attn = jnp.dot(ctx.astype(jnp.bfloat16), wo_ref[l],
                       preferred_element_type=jnp.float32) + bo_ref[l]
        hh = _ln_2d(hh + attn, l1g_ref[l], l1b_ref[l])

        ff = jax.nn.gelu(jnp.dot(hh.astype(jnp.bfloat16), wi_ref[l],
                                 preferred_element_type=jnp.float32) + bi_ref[l])
        ff = jnp.dot(ff.astype(jnp.bfloat16), wo2_ref[l],
                     preferred_element_type=jnp.float32) + bo2_ref[l]
        hh = _ln_2d(hh + ff, l2g_ref[l], l2b_ref[l])

    o_ref[0] = hh


def pallas_encoder(x, mask, p):
    """x: (B, S, H) f32 embeddings (pre-LN); mask: (B, 1, S) f32 {0,1}."""
    B, S, H = x.shape
    NL = NUM_LAYERS
    I = INTERMEDIATE
    in_specs = [
        pl.BlockSpec((1, S, H), lambda b: (b, 0, 0)),            # x
        pl.BlockSpec((1, 1, S), lambda b: (b, 0, 0)),            # mask
        pl.BlockSpec((1, H), lambda b: (0, 0)),                  # emb_ln_g
        pl.BlockSpec((1, H), lambda b: (0, 0)),                  # emb_ln_b
        pl.BlockSpec((NL, H, 3 * H), lambda b: (0, 0, 0)),       # wqkv (bf16)
        pl.BlockSpec((NL, 1, 3 * H), lambda b: (0, 0, 0)),       # bqkv
        pl.BlockSpec((NL, H, H), lambda b: (0, 0, 0)),           # wo   (bf16)
        pl.BlockSpec((NL, 1, H), lambda b: (0, 0, 0)),           # bo
        pl.BlockSpec((NL, 1, H), lambda b: (0, 0, 0)),           # ln1_g
        pl.BlockSpec((NL, 1, H), lambda b: (0, 0, 0)),           # ln1_b
        pl.BlockSpec((NL, H, I), lambda b: (0, 0, 0)),           # wi   (bf16)
        pl.BlockSpec((NL, 1, I), lambda b: (0, 0, 0)),           # bi
        pl.BlockSpec((NL, I, H), lambda b: (0, 0, 0)),           # wo2  (bf16)
        pl.BlockSpec((NL, 1, H), lambda b: (0, 0, 0)),           # bo2
        pl.BlockSpec((NL, 1, H), lambda b: (0, 0, 0)),           # ln2_g
        pl.BlockSpec((NL, 1, H), lambda b: (0, 0, 0)),           # ln2_b
    ]
    return pl.pallas_call(
        _encoder_kernel,
        out_shape=jax.ShapeDtypeStruct((B, S, H), jnp.float32),
        grid_spec=pltpu.PrefetchScalarGridSpec(
            num_scalar_prefetch=0,
            grid=(B,),
            in_specs=in_specs,
            out_specs=pl.BlockSpec((1, S, H), lambda b: (b, 0, 0))),
        compiler_params=pltpu.CompilerParams(dimension_semantics=("parallel",)),
    )(x, mask, p['emb_ln_g'], p['emb_ln_b'],
      p['wqkv'], p['bqkv'], p['wo'], p['bo'], p['ln1_g'], p['ln1_b'],
      p['wi'], p['bi'], p['wo2'], p['bo2'], p['ln2_g'], p['ln2_b'])


# ----------------------------- fused MLM-head + option-score kernel -----------------------------
def _head_score_kernel(h_ref, ids_ref, msk_ref, wd_ref, bd_ref, hg_ref, hb_ref,
                       dw_ref, db_ref, out_ref):
    """One grid step per batch row.
    h_ref: (1, O, H) gathered hidden rows at answer positions.
    ids_ref/msk_ref: (1, O, C, L, 1) option token ids / mask.
    Computes head_dense+GELU+LN+decoder on the O rows, then masked-mean option scores."""
    O = ids_ref.shape[1]
    C = ids_ref.shape[2]
    L = ids_ref.shape[3]
    V = dw_ref.shape[1]

    h = h_ref[0]                                                    # (O, H)
    t = jnp.dot(h.astype(jnp.bfloat16), wd_ref[...],
                preferred_element_type=jnp.float32) + bd_ref[...]
    t = jax.nn.gelu(t)
    t = _ln_2d(t, hg_ref[...], hb_ref[...])
    logits = jnp.dot(t.astype(jnp.bfloat16), dw_ref[...],
                     preferred_element_type=jnp.float32) + db_ref[...]   # (O, V)

    ids = ids_ref[0]                                                # (O, C, L, 1) int32
    msk = msk_ref[0]                                                # (O, C, L, 1) f32
    iota_v = lax.broadcasted_iota(jnp.int32, (O, C, L, V), 3)       # lane iota over V
    w = jnp.where(ids == iota_v, msk, 0.0)                          # (O, C, L, V)
    w = jnp.sum(w, axis=2)                                          # (O, C, V) mask-weighted one-hot
    # numer[o, c] = sum_v w[o, c, v] * logits[o, v]   (batched mat-vec on MXU, f32)
    numer = lax.dot_general(w, logits, (((2,), (1,)), ((0,), (0,))),
                            preferred_element_type=jnp.float32)     # (O, C)
    denom = jnp.sum(jnp.sum(msk, axis=-1), axis=-1)                 # (O, C)
    out_ref[0] = numer / denom


def pallas_head_scores(hrows, ids, msk, p):
    """hrows: (B, O, H) f32; ids/msk: (B, O, C, L, 1). Returns (B, O, C) scores."""
    B, O, H = hrows.shape
    C, L = ids.shape[2], ids.shape[3]
    V = VOCAB
    return pl.pallas_call(
        _head_score_kernel,
        out_shape=jax.ShapeDtypeStruct((B, O, C), jnp.float32),
        grid_spec=pltpu.PrefetchScalarGridSpec(
            num_scalar_prefetch=0,
            grid=(B,),
            in_specs=[pl.BlockSpec((1, O, H), lambda b: (b, 0, 0)),
                      pl.BlockSpec((1, O, C, L, 1), lambda b: (b, 0, 0, 0, 0)),
                      pl.BlockSpec((1, O, C, L, 1), lambda b: (b, 0, 0, 0, 0)),
                      pl.BlockSpec((H, H), lambda b: (0, 0)),        # head_dense_w (bf16)
                      pl.BlockSpec((1, H), lambda b: (0, 0)),        # head_dense_b
                      pl.BlockSpec((1, H), lambda b: (0, 0)),        # head_ln_g
                      pl.BlockSpec((1, H), lambda b: (0, 0)),        # head_ln_b
                      pl.BlockSpec((H, V), lambda b: (0, 0)),        # decoder_w (bf16)
                      pl.BlockSpec((1, V), lambda b: (0, 0))],       # decoder_b
            out_specs=pl.BlockSpec((1, O, C), lambda b: (b, 0, 0))),
        compiler_params=pltpu.CompilerParams(dimension_semantics=("parallel",)),
    )(hrows, ids, msk, p['head_dense_w'], p['head_dense_b'],
      p['head_ln_g'], p['head_ln_b'], p['decoder_w'], p['decoder_b'])


# ----------------------------- params -----------------------------
def init_params(key):
    keys = list(jax.random.split(key, 64))
    it = iter(keys)

    def nrm(shape):
        return 0.02 * jax.random.normal(next(it), shape, jnp.float32)

    p = {
        'word_emb': nrm((VOCAB, HIDDEN)),
        'pos_emb': nrm((MAX_POS, HIDDEN)),
        'type_emb': nrm((TYPE_VOCAB, HIDDEN)),
        'emb_ln_g': jnp.ones((1, HIDDEN), jnp.float32),
        'emb_ln_b': jnp.zeros((1, HIDDEN), jnp.float32),
        'head_dense_w': nrm((HIDDEN, HIDDEN)).astype(jnp.bfloat16),
        'head_dense_b': jnp.zeros((1, HIDDEN), jnp.float32),
        'head_ln_g': jnp.ones((1, HIDDEN), jnp.float32),
        'head_ln_b': jnp.zeros((1, HIDDEN), jnp.float32),
        'decoder_w': nrm((HIDDEN, VOCAB)).astype(jnp.bfloat16),
        'decoder_b': jnp.zeros((1, VOCAB), jnp.float32),
        # bert_head = nn.Linear(hidden, vocab): defined in __init__ but unused in forward.
        'bert_head_w': nrm((HIDDEN, VOCAB)),
        'bert_head_b': jnp.zeros((VOCAB,), jnp.float32),
    }
    wqkv, wo, wi, wo2 = [], [], [], []
    for _ in range(NUM_LAYERS):
        wq, wk, wv = nrm((HIDDEN, HIDDEN)), nrm((HIDDEN, HIDDEN)), nrm((HIDDEN, HIDDEN))
        wqkv.append(jnp.concatenate([wq, wk, wv], axis=1))      # fused QKV (H, 3H)
        wo.append(nrm((HIDDEN, HIDDEN)))
        wi.append(nrm((HIDDEN, INTERMEDIATE)))
        wo2.append(nrm((INTERMEDIATE, HIDDEN)))
    p['wqkv'] = jnp.stack(wqkv).astype(jnp.bfloat16)            # (NL, H, 3H)
    p['bqkv'] = jnp.zeros((NUM_LAYERS, 1, 3 * HIDDEN), jnp.float32)
    p['wo'] = jnp.stack(wo).astype(jnp.bfloat16)                # (NL, H, H)
    p['bo'] = jnp.zeros((NUM_LAYERS, 1, HIDDEN), jnp.float32)
    p['ln1_g'] = jnp.ones((NUM_LAYERS, 1, HIDDEN), jnp.float32)
    p['ln1_b'] = jnp.zeros((NUM_LAYERS, 1, HIDDEN), jnp.float32)
    p['wi'] = jnp.stack(wi).astype(jnp.bfloat16)                # (NL, H, I)
    p['bi'] = jnp.zeros((NUM_LAYERS, 1, INTERMEDIATE), jnp.float32)
    p['wo2'] = jnp.stack(wo2).astype(jnp.bfloat16)              # (NL, I, H)
    p['bo2'] = jnp.zeros((NUM_LAYERS, 1, HIDDEN), jnp.float32)
    p['ln2_g'] = jnp.ones((NUM_LAYERS, 1, HIDDEN), jnp.float32)
    p['ln2_b'] = jnp.zeros((NUM_LAYERS, 1, HIDDEN), jnp.float32)
    return p


# ----------------------------- forward -----------------------------
def bigbird_for_seq_feature(params, input_ids, attention_mask, token_type_ids,
                            options_input, options_mask, answers_input, answers_mask,
                            position_input, labels=None):
    B, S = input_ids.shape
    batch = min(B, CFG_BATCH_SIZE)

    # embeddings (lookup stays in JAX; embedding LayerNorm is fused into the encoder kernel)
    x = (params['word_emb'][input_ids]
         + params['pos_emb'][jnp.arange(S)][None, :, :]
         + params['type_emb'][token_type_ids])
    mask = attention_mask.astype(jnp.float32)[:, None, :]               # (B, 1, S)

    # fused encoder: emb-LN + all layers in one pallas_call, h resident in VMEM
    h = pallas_encoder(x, mask, params)                                 # (B, S, H)

    # gather hidden rows at answer positions; the row-wise MLM head commutes with this
    # gather, so running the head only on these rows matches gathering full logits.
    pos = position_input.astype(jnp.int32)
    hrows = jnp.take_along_axis(h, pos[:, :, None], axis=1)             # (B, O, H)

    scores = pallas_head_scores(
        hrows,
        options_input.astype(jnp.int32)[..., None],                     # (B, O, C, L, 1)
        options_mask.astype(jnp.float32)[..., None],
        params)                                                         # (B, O, C)
    out = scores.reshape(-1, NUM_CHOICES)                               # == torch .view(-1, 4)

    loss = None
    total_acc = None
    if labels is not None:
        lab = labels.reshape(-1)
        logz = jax.nn.logsumexp(out, axis=-1)
        nll = logz - jnp.take_along_axis(out, lab[:, None], axis=-1)[:, 0]
        nll = nll.reshape(batch, CFG_MAX_OPTION_NUM)
        am = answers_mask.astype(jnp.float32)
        loss = (nll * am).sum() / am.sum()
        pred = jnp.argmax(out, axis=-1)
        acc = (pred == lab).astype(jnp.float32).reshape(batch, CFG_MAX_OPTION_NUM)
        total_acc = (acc * am).sum()
    return loss, out, total_acc


# ----------------------------- main -----------------------------
if __name__ == "__main__":
    key = jax.random.PRNGKey(0)
    kp, k1, k2, k3, k4, k5, k6 = jax.random.split(key, 7)
    params = init_params(kp)

    B, S = CFG_BATCH_SIZE, SEQ
    O, C, L = CFG_MAX_OPTION_NUM, NUM_CHOICES, OPT_LEN

    input_ids = jax.random.randint(k1, (B, S), 0, VOCAB, dtype=jnp.int32)
    attention_mask = jnp.ones((B, S), jnp.int32).at[1, S - 3:].set(0)
    token_type_ids = jnp.zeros((B, S), jnp.int32)
    options_input = jax.random.randint(k2, (B, O, C, L), 0, VOCAB, dtype=jnp.int32)
    options_mask = (jax.random.uniform(k3, (B, O, C, L)) > 0.3).astype(jnp.float32)
    options_mask = options_mask.at[..., 0].set(1.0)     # each option has >=1 valid token
    answers_input = jax.random.randint(k4, (B, O, L), 0, VOCAB, dtype=jnp.int32)  # unused in forward
    answers_mask = jnp.ones((B, O), jnp.float32)
    position_input = jax.random.randint(k5, (B, O), 0, S, dtype=jnp.int32)
    labels = jax.random.randint(k6, (B, O), 0, C, dtype=jnp.int32)

    loss, out, total_acc = bigbird_for_seq_feature(
        params, input_ids, attention_mask, token_type_ids,
        options_input, options_mask, answers_input, answers_mask,
        position_input, labels)

    jax.block_until_ready((loss, out, total_acc))
    assert out.shape == (B * O, C)
    print("KERNEL_OK")
</pallas_src>

<mosaic_0001>
module attributes {stable_mosaic.version = 11 : i64} {
  func.func @_encoder_kernel(%arg0: i32, %arg1: memref<1x16x128xf32, #tpu.memory_space<vmem>>, %arg2: memref<1x1x16xf32, #tpu.memory_space<vmem>>, %arg3: memref<1x128xf32, #tpu.memory_space<vmem>>, %arg4: memref<1x128xf32, #tpu.memory_space<vmem>>, %arg5: memref<2x128x384xbf16, #tpu.memory_space<vmem>>, %arg6: memref<2x1x384xf32, #tpu.memory_space<vmem>>, %arg7: memref<2x128x128xbf16, #tpu.memory_space<vmem>>, %arg8: memref<2x1x128xf32, #tpu.memory_space<vmem>>, %arg9: memref<2x1x128xf32, #tpu.memory_space<vmem>>, %arg10: memref<2x1x128xf32, #tpu.memory_space<vmem>>, %arg11: memref<2x128x256xbf16, #tpu.memory_space<vmem>>, %arg12: memref<2x1x256xf32, #tpu.memory_space<vmem>>, %arg13: memref<2x256x128xbf16, #tpu.memory_space<vmem>>, %arg14: memref<2x1x128xf32, #tpu.memory_space<vmem>>, %arg15: memref<2x1x128xf32, #tpu.memory_space<vmem>>, %arg16: memref<2x1x128xf32, #tpu.memory_space<vmem>>, %arg17: memref<1x16x128xf32, #tpu.memory_space<vmem>>) attributes {dimension_semantics = [#tpu.dimension_semantics<parallel>], iteration_bounds = array<i64: 2>, scalar_prefetch = 0 : i64, scratch_operands = 0 : i64, tpu.core_type = #tpu.core_type<tc>, window_params = [{transform_indices = @transform_0, window_bounds = array<i64: 1, 16, 128>}, {transform_indices = @transform_1, window_bounds = array<i64: 1, 1, 16>}, {pipeline_mode = #tpu.pipeline_mode<synchronous>, transform_indices = @transform_2, window_bounds = array<i64: 1, 128>}, {pipeline_mode = #tpu.pipeline_mode<synchronous>, transform_indices = @transform_3, window_bounds = array<i64: 1, 128>}, {pipeline_mode = #tpu.pipeline_mode<synchronous>, transform_indices = @transform_4, window_bounds = array<i64: 2, 128, 384>}, {pipeline_mode = #tpu.pipeline_mode<synchronous>, transform_indices = @transform_5, window_bounds = array<i64: 2, 1, 384>}, {pipeline_mode = #tpu.pipeline_mode<synchronous>, transform_indices = @transform_6, window_bounds = array<i64: 2, 128, 128>}, {pipeline_mode = #tpu.pipeline_mode<synchronous>, transform_indices = @transform_7, window_bounds = array<i64: 2, 1, 128>}, {pipeline_mode = #tpu.pipeline_mode<synchronous>, transform_indices = @transform_8, window_bounds = array<i64: 2, 1, 128>}, {pipeline_mode = #tpu.pipeline_mode<synchronous>, transform_indices = @transform_9, window_bounds = array<i64: 2, 1, 128>}, {pipeline_mode = #tpu.pipeline_mode<synchronous>, transform_indices = @transform_10, window_bounds = array<i64: 2, 128, 256>}, {pipeline_mode = #tpu.pipeline_mode<synchronous>, transform_indices = @transform_11, window_bounds = array<i64: 2, 1, 256>}, {pipeline_mode = #tpu.pipeline_mode<synchronous>, transform_indices = @transform_12, window_bounds = array<i64: 2, 256, 128>}, {pipeline_mode = #tpu.pipeline_mode<synchronous>, transform_indices = @transform_13, window_bounds = array<i64: 2, 1, 128>}, {pipeline_mode = #tpu.pipeline_mode<synchronous>, transform_indices = @transform_14, window_bounds = array<i64: 2, 1, 128>}, {pipeline_mode = #tpu.pipeline_mode<synchronous>, transform_indices = @transform_15, window_bounds = array<i64: 2, 1, 128>}, {transform_indices = @transform_16, window_bounds = array<i64: 1, 16, 128>}]} {
    %c0 = arith.constant 0 : index
    %c0_0 = arith.constant 0 : index
    %c0_1 = arith.constant 0 : index
    %0 = vector.load %arg1[%c0, %c0_0, %c0_1] : memref<1x16x128xf32, #tpu.memory_space<vmem>>, vector<1x16x128xf32>
    %1 = vector.shape_cast %0 : vector<1x16x128xf32> to vector<16x128xf32>
    %c0_2 = arith.constant 0 : index
    %c0_3 = arith.constant 0 : index
    %2 = vector.load %arg3[%c0_2, %c0_3] : memref<1x128xf32, #tpu.memory_space<vmem>>, vector<1x128xf32>
    %c0_4 = arith.constant 0 : index
    %c0_5 = arith.constant 0 : index
    %3 = vector.load %arg4[%c0_4, %c0_5] : memref<1x128xf32, #tpu.memory_space<vmem>>, vector<1x128xf32>
    %cst = arith.constant dense<0.000000e+00> : vector<16xf32>
    %4 = vector.multi_reduction <add>, %1, %cst [1] : vector<16x128xf32> to vector<16xf32>
    %5 = vector.shape_cast %4 : vector<16xf32> to vector<16x1xf32>
    %cst_6 = arith.constant 1.280000e+02 : f32
    %6 = vector.broadcast %cst_6 : f32 to vector<16x1xf32>
    %7 = arith.divf %5, %6 : vector<16x1xf32>
    %8 = vector.broadcast %7 : vector<16x1xf32> to vector<16x128xf32>
    %9 = arith.subf %1, %8 : vector<16x128xf32>
    %10 = arith.mulf %9, %9 : vector<16x128xf32>
    %cst_7 = arith.constant dense<0.000000e+00> : vector<16xf32>
    %11 = vector.multi_reduction <add>, %10, %cst_7 [1] : vector<16x128xf32> to vector<16xf32>
    %12 = vector.shape_cast %11 : vector<16xf32> to vector<16x1xf32>
    %cst_8 = arith.constant 1.280000e+02 : f32
    %13 = vector.broadcast %cst_8 : f32 to vector<16x1xf32>
    %14 = arith.divf %12, %13 : vector<16x1xf32>
    %15 = vector.broadcast %7 : vector<16x1xf32> to vector<16x128xf32>
    %16 = arith.subf %1, %15 : vector<16x128xf32>
    %cst_9 = arith.constant 9.99999996E-13 : f32
    %17 = vector.broadcast %cst_9 : f32 to vector<16x1xf32>
    %18 = arith.addf %14, %17 : vector<16x1xf32>
    %19 = math.rsqrt %18 : vector<16x1xf32>
    %20 = vector.broadcast %19 : vector<16x1xf32> to vector<16x128xf32>
    %21 = arith.mulf %16, %20 : vector<16x128xf32>
    %22 = vector.broadcast %2 : vector<1x128xf32> to vector<16x128xf32>
    %23 = arith.mulf %21, %22 : vector<16x128xf32>
    %24 = vector.broadcast %3 : vector<1x128xf32> to vector<16x128xf32>
    %25 = arith.addf %23, %24 : vector<16x128xf32>
    %c0_10 = arith.constant 0 : index
    %c0_11 = arith.constant 0 : index
    %c0_12 = arith.constant 0 : index
    %26 = vector.load %arg2[%c0_10, %c0_11, %c0_12] : memref<1x1x16xf32, #tpu.memory_space<vmem>>, vector<1x1x16xf32>
    %27 = vector.shape_cast %26 : vector<1x1x16xf32> to vector<1x16xf32>
    %cst_13 = arith.constant 1.000000e+00 : f32
    %28 = vector.broadcast %cst_13 : f32 to vector<1x16xf32>
    %29 = arith.subf %28, %27 : vector<1x16xf32>
    %cst_14 = arith.constant -1.000000e+09 : f32
    %30 = vector.broadcast %cst_14 : f32 to vector<1x16xf32>
    %31 = arith.mulf %29, %30 : vector<1x16xf32>
    %32 = arith.truncf %25 : vector<16x128xf32> to vector<16x128xbf16>
    %c0_15 = arith.constant 0 : index
    %c0_16 = arith.constant 0 : index
    %c0_17 = arith.constant 0 : index
    %33 = vector.load %arg5[%c0_15, %c0_16, %c0_17] : memref<2x128x384xbf16, #tpu.memory_space<vmem>>, vector<1x128x384xbf16>
    %34 = vector.shape_cast %33 : vector<1x128x384xbf16> to vector<128x384xbf16>
    %cst_18 = arith.constant dense<0.000000e+00> : vector<16x384xf32>
    %35 = tpu.matmul %32, %34, %cst_18 {dimension_numbers = #tpu.dot_dimension_numbers<[1], [0], [0], [1], [0, 0, 1, 1], [], []>} : vector<16x128xbf16>, vector<128x384xbf16>, vector<16x384xf32> -> vector<16x384xf32>
    %c0_19 = arith.constant 0 : index
    %c0_20 = arith.constant 0 : index
    %c0_21 = arith.constant 0 : index
    %36 = vector.load %arg6[%c0_19, %c0_20, %c0_21] : memref<2x1x384xf32, #tpu.memory_space<vmem>>, vector<1x1x384xf32>
    %37 = vector.shape_cast %36 : vector<1x1x384xf32> to vector<1x384xf32>
    %38 = vector.broadcast %37 : vector<1x384xf32> to vector<16x384xf32>
    %39 = arith.addf %35, %38 : vector<16x384xf32>
    %40 = vector.extract_strided_slice %39 {offsets = [0, 0], sizes = [16, 128], strides = [1, 1]} : vector<16x384xf32> to vector<16x128xf32>
    %41 = vector.extract_strided_slice %39 {offsets = [0, 128], sizes = [16, 128], strides = [1, 1]} : vector<16x384xf32> to vector<16x128xf32>
    %42 = vector.extract_strided_slice %39 {offsets = [0, 256], sizes = [16, 128], strides = [1, 1]} : vector<16x384xf32> to vector<16x128xf32>
    %43 = vector.extract_strided_slice %40 {offsets = [0, 0], sizes = [16, 32], strides = [1, 1]} : vector<16x128xf32> to vector<16x32xf32>
    %44 = arith.truncf %43 : vector<16x32xf32> to vector<16x32xbf16>
    %45 = vector.extract_strided_slice %41 {offsets = [0, 0], sizes = [16, 32], strides = [1, 1]} : vector<16x128xf32> to vector<16x32xf32>
    %46 = arith.truncf %45 : vector<16x32xf32> to vector<16x32xbf16>
    %47 = vector.extract_strided_slice %42 {offsets = [0, 0], sizes = [16, 32], strides = [1, 1]} : vector<16x128xf32> to vector<16x32xf32>
    %48 = arith.truncf %47 : vector<16x32xf32> to vector<16x32xbf16>
    %cst_22 = arith.constant dense<0.000000e+00> : vector<16x16xf32>
    %49 = tpu.matmul %44, %46, %cst_22 {dimension_numbers = #tpu.dot_dimension_numbers<[1], [1], [0], [0], [0, 0, 1, 0], [], []>} : vector<16x32xbf16>, vector<16x32xbf16>, vector<16x16xf32> -> vector<16x16xf32>
    %cst_23 = arith.constant 0.176776692 : f32
    %50 = vector.broadcast %cst_23 : f32 to vector<16x16xf32>
    %51 = arith.mulf %49, %50 : vector<16x16xf32>
    %52 = vector.broadcast %31 : vector<1x16xf32> to vector<16x16xf32>
    %53 = arith.addf %51, %52 : vector<16x16xf32>
    %cst_24 = arith.constant dense<0xFF800000> : vector<16xf32>
    %54 = vector.multi_reduction <maximumf>, %53, %cst_24 [1] : vector<16x16xf32> to vector<16xf32>
    %55 = vector.shape_cast %54 : vector<16xf32> to vector<16x1xf32>
    %56 = vector.broadcast %55 : vector<16x1xf32> to vector<16x16xf32>
    %57 = arith.subf %53, %56 : vector<16x16xf32>
    %58 = math.exp %57 : vector<16x16xf32>
    %cst_25 = arith.constant dense<0.000000e+00> : vector<16xf32>
    %59 = vector.multi_reduction <add>, %58, %cst_25 [1] : vector<16x16xf32> to vector<16xf32>
    %60 = vector.shape_cast %59 : vector<16xf32> to vector<16x1xf32>
    %61 = tpu.reciprocal %60 {approx = true} : vector<16x1xf32> -> vector<16x1xf32>
    %62 = vector.broadcast %61 : vector<16x1xf32> to vector<16x16xf32>
    %63 = arith.mulf %58, %62 : vector<16x16xf32>
    %64 = arith.truncf %63 : vector<16x16xf32> to vector<16x16xbf16>
    %cst_26 = arith.constant dense<0.000000e+00> : vector<16x32xf32>
    %65 = tpu.matmul %64, %48, %cst_26 {dimension_numbers = #tpu.dot_dimension_numbers<[1], [0], [0], [1], [0, 0, 1, 1], [], []>} : vector<16x16xbf16>, vector<16x32xbf16>, vector<16x32xf32> -> vector<16x32xf32>
    %66 = vector.extract_strided_slice %40 {offsets = [0, 32], sizes = [16, 32], strides = [1, 1]} : vector<16x128xf32> to vector<16x32xf32>
    %67 = arith.truncf %66 : vector<16x32xf32> to vector<16x32xbf16>
    %68 = vector.extract_strided_slice %41 {offsets = [0, 32], sizes = [16, 32], strides = [1, 1]} : vector<16x128xf32> to vector<16x32xf32>
    %69 = arith.truncf %68 : vector<16x32xf32> to vector<16x32xbf16>
    %70 = vector.extract_strided_slice %42 {offsets = [0, 32], sizes = [16, 32], strides = [1, 1]} : vector<16x128xf32> to vector<16x32xf32>
    %71 = arith.truncf %70 : vector<16x32xf32> to vector<16x32xbf16>
    %cst_27 = arith.constant dense<0.000000e+00> : vector<16x16xf32>
    %72 = tpu.matmul %67, %69, %cst_27 {dimension_numbers = #tpu.dot_dimension_numbers<[1], [1], [0], [0], [0, 0, 1, 0], [], []>} : vector<16x32xbf16>, vector<16x32xbf16>, vector<16x16xf32> -> vector<16x16xf32>
    %cst_28 = arith.constant 0.176776692 : f32
    %73 = vector.broadcast %cst_28 : f32 to vector<16x16xf32>
    %74 = arith.mulf %72, %73 : vector<16x16xf32>
    %75 = vector.broadcast %31 : vector<1x16xf32> to vector<16x16xf32>
    %76 = arith.addf %74, %75 : vector<16x16xf32>
    %cst_29 = arith.constant dense<0xFF800000> : vector<16xf32>
    %77 = vector.multi_reduction <maximumf>, %76, %cst_29 [1] : vector<16x16xf32> to vector<16xf32>
    %78 = vector.shape_cast %77 : vector<16xf32> to vector<16x1xf32>
    %79 = vector.broadcast %78 : vector<16x1xf32> to vector<16x16xf32>
    %80 = arith.subf %76, %79 : vector<16x16xf32>
    %81 = math.exp %80 : vector<16x16xf32>
    %cst_30 = arith.constant dense<0.000000e+00> : vector<16xf32>
    %82 = vector.multi_reduction <add>, %81, %cst_30 [1] : vector<16x16xf32> to vector<16xf32>
    %83 = vector.shape_cast %82 : vector<16xf32> to vector<16x1xf32>
    %84 = tpu.reciprocal %83 {approx = true} : vector<16x1xf32> -> vector<16x1xf32>
    %85 = vector.broadcast %84 : vector<16x1xf32> to vector<16x16xf32>
    %86 = arith.mulf %81, %85 : vector<16x16xf32>
    %87 = arith.truncf %86 : vector<16x16xf32> to vector<16x16xbf16>
    %cst_31 = arith.constant dense<0.000000e+00> : vector<16x32xf32>
    %88 = tpu.matmul %87, %71, %cst_31 {dimension_numbers = #tpu.dot_dimension_numbers<[1], [0], [0], [1], [0, 0, 1, 1], [], []>} : vector<16x16xbf16>, vector<16x32xbf16>, vector<16x32xf32> -> vector<16x32xf32>
    %89 = vector.extract_strided_slice %40 {offsets = [0, 64], sizes = [16, 32], strides = [1, 1]} : vector<16x128xf32> to vector<16x32xf32>
    %90 = arith.truncf %89 : vector<16x32xf32> to vector<16x32xbf16>
    %91 = vector.extract_strided_slice %41 {offsets = [0, 64], sizes = [16, 32], strides = [1, 1]} : vector<16x128xf32> to vector<16x32xf32>
    %92 = arith.truncf %91 : vector<16x32xf32> to vector<16x32xbf16>
    %93 = vector.extract_strided_slice %42 {offsets = [0, 64], sizes = [16, 32], strides = [1, 1]} : vector<16x128xf32> to vector<16x32xf32>
    %94 = arith.truncf %93 : vector<16x32xf32> to vector<16x32xbf16>
    %cst_32 = arith.constant dense<0.000000e+00> : vector<16x16xf32>
    %95 = tpu.matmul %90, %92, %cst_32 {dimension_numbers = #tpu.dot_dimension_numbers<[1], [1], [0], [0], [0, 0, 1, 0], [], []>} : vector<16x32xbf16>, vector<16x32xbf16>, vector<16x16xf32> -> vector<16x16xf32>
    %cst_33 = arith.constant 0.176776692 : f32
    %96 = vector.broadcast %cst_33 : f32 to vector<16x16xf32>
    %97 = arith.mulf %95, %96 : vector<16x16xf32>
    %98 = vector.broadcast %31 : vector<1x16xf32> to vector<16x16xf32>
    %99 = arith.addf %97, %98 : vector<16x16xf32>
    %cst_34 = arith.constant dense<0xFF800000> : vector<16xf32>
    %100 = vector.multi_reduction <maximumf>, %99, %cst_34 [1] : vector<16x16xf32> to vector<16xf32>
    %101 = vector.shape_cast %100 : vector<16xf32> to vector<16x1xf32>
    %102 = vector.broadcast %101 : vector<16x1xf32> to vector<16x16xf32>
    %103 = arith.subf %99, %102 : vector<16x16xf32>
    %104 = math.exp %103 : vector<16x16xf32>
    %cst_35 = arith.constant dense<0.000000e+00> : vector<16xf32>
    %105 = vector.multi_reduction <add>, %104, %cst_35 [1] : vector<16x16xf32> to vector<16xf32>
    %106 = vector.shape_cast %105 : vector<16xf32> to vector<16x1xf32>
    %107 = tpu.reciprocal %106 {approx = true} : vector<16x1xf32> -> vector<16x1xf32>
    %108 = vector.broadcast %107 : vector<16x1xf32> to vector<16x16xf32>
    %109 = arith.mulf %104, %108 : vector<16x16xf32>
    %110 = arith.truncf %109 : vector<16x16xf32> to vector<16x16xbf16>
    %cst_36 = arith.constant dense<0.000000e+00> : vector<16x32xf32>
    %111 = tpu.matmul %110, %94, %cst_36 {dimension_numbers = #tpu.dot_dimension_numbers<[1], [0], [0], [1], [0, 0, 1, 1], [], []>} : vector<16x16xbf16>, vector<16x32xbf16>, vector<16x32xf32> -> vector<16x32xf32>
    %112 = vector.extract_strided_slice %40 {offsets = [0, 96], sizes = [16, 32], strides = [1, 1]} : vector<16x128xf32> to vector<16x32xf32>
    %113 = arith.truncf %112 : vector<16x32xf32> to vector<16x32xbf16>
    %114 = vector.extract_strided_slice %41 {offsets = [0, 96], sizes = [16, 32], strides = [1, 1]} : vector<16x128xf32> to vector<16x32xf32>
    %115 = arith.truncf %114 : vector<16x32xf32> to vector<16x32xbf16>
    %116 = vector.extract_strided_slice %42 {offsets = [0, 96], sizes = [16, 32], strides = [1, 1]} : vector<16x128xf32> to vector<16x32xf32>
    %117 = arith.truncf %116 : vector<16x32xf32> to vector<16x32xbf16>
    %cst_37 = arith.constant dense<0.000000e+00> : vector<16x16xf32>
    %118 = tpu.matmul %113, %115, %cst_37 {dimension_numbers = #tpu.dot_dimension_numbers<[1], [1], [0], [0], [0, 0, 1, 0], [], []>} : vector<16x32xbf16>, vector<16x32xbf16>, vector<16x16xf32> -> vector<16x16xf32>
    %cst_38 = arith.constant 0.176776692 : f32
    %119 = vector.broadcast %cst_38 : f32 to vector<16x16xf32>
    %120 = arith.mulf %118, %119 : vector<16x16xf32>
    %121 = vector.broadcast %31 : vector<1x16xf32> to vector<16x16xf32>
    %122 = arith.addf %120, %121 : vector<16x16xf32>
    %cst_39 = arith.constant dense<0xFF800000> : vector<16xf32>
    %123 = vector.multi_reduction <maximumf>, %122, %cst_39 [1] : vector<16x16xf32> to vector<16xf32>
    %124 = vector.shape_cast %123 : vector<16xf32> to vector<16x1xf32>
    %125 = vector.broadcast %124 : vector<16x1xf32> to vector<16x16xf32>
    %126 = arith.subf %122, %125 : vector<16x16xf32>
    %127 = math.exp %126 : vector<16x16xf32>
    %cst_40 = arith.constant dense<0.000000e+00> : vector<16xf32>
    %128 = vector.multi_reduction <add>, %127, %cst_40 [1] : vector<16x16xf32> to vector<16xf32>
    %129 = vector.shape_cast %128 : vector<16xf32> to vector<16x1xf32>
    %130 = tpu.reciprocal %129 {approx = true} : vector<16x1xf32> -> vector<16x1xf32>
    %131 = vector.broadcast %130 : vector<16x1xf32> to vector<16x16xf32>
    %132 = arith.mulf %127, %131 : vector<16x16xf32>
    %133 = arith.truncf %132 : vector<16x16xf32> to vector<16x16xbf16>
    %cst_41 = arith.constant dense<0.000000e+00> : vector<16x32xf32>
    %134 = tpu.matmul %133, %117, %cst_41 {dimension_numbers = #tpu.dot_dimension_numbers<[1], [0], [0], [1], [0, 0, 1, 1], [], []>} : vector<16x16xbf16>, vector<16x32xbf16>, vector<16x32xf32> -> vector<16x32xf32>
    %135 = tpu.concatenate %65, %88, %111, %134 in 1 : vector<16x32xf32>, vector<16x32xf32>, vector<16x32xf32>, vector<16x32xf32> -> vector<16x128xf32>
    %136 = arith.truncf %135 : vector<16x128xf32> to vector<16x128xbf16>
    %c0_42 = arith.constant 0 : index
    %c0_43 = arith.constant 0 : index
    %c0_44 = arith.constant 0 : index
    %137 = vector.load %arg7[%c0_42, %c0_43, %c0_44] : memref<2x128x128xbf16, #tpu.memory_space<vmem>>, vector<1x128x128xbf16>
    %138 = vector.shape_cast %137 : vector<1x128x128xbf16> to vector<128x128xbf16>
    %cst_45 = arith.constant dense<0.000000e+00> : vector<16x128xf32>
    %139 = tpu.matmul %136, %138, %cst_45 {dimension_numbers = #tpu.dot_dimension_numbers<[1], [0], [0], [1], [0, 0, 1, 1], [], []>} : vector<16x128xbf16>, vector<128x128xbf16>, vector<16x128xf32> -> vector<16x128xf32>
    %c0_46 = arith.constant 0 : index
    %c0_47 = arith.constant 0 : index
    %c0_48 = arith.constant 0 : index
    %140 = vector.load %arg8[%c0_46, %c0_47, %c0_48] : memref<2x1x128xf32, #tpu.memory_space<vmem>>, vector<1x1x128xf32>
    %141 = vector.shape_cast %140 : vector<1x1x128xf32> to vector<1x128xf32>
    %142 = vector.broadcast %141 : vector<1x128xf32> to vector<16x128xf32>
    %143 = arith.addf %139, %142 : vector<16x128xf32>
    %144 = arith.addf %25, %143 : vector<16x128xf32>
    %c0_49 = arith.constant 0 : index
    %c0_50 = arith.constant 0 : index
    %c0_51 = arith.constant 0 : index
    %145 = vector.load %arg9[%c0_49, %c0_50, %c0_51] : memref<2x1x128xf32, #tpu.memory_space<vmem>>, vector<1x1x128xf32>
    %146 = vector.shape_cast %145 : vector<1x1x128xf32> to vector<1x128xf32>
    %c0_52 = arith.constant 0 : index
    %c0_53 = arith.constant 0 : index
    %c0_54 = arith.constant 0 : index
    %147 = vector.load %arg10[%c0_52, %c0_53, %c0_54] : memref<2x1x128xf32, #tpu.memory_space<vmem>>, vector<1x1x128xf32>
    %148 = vector.shape_cast %147 : vector<1x1x128xf32> to vector<1x128xf32>
    %cst_55 = arith.constant dense<0.000000e+00> : vector<16xf32>
    %149 = vector.multi_reduction <add>, %144, %cst_55 [1] : vector<16x128xf32> to vector<16xf32>
    %150 = vector.shape_cast %149 : vector<16xf32> to vector<16x1xf32>
    %cst_56 = arith.constant 1.280000e+02 : f32
    %151 = vector.broadcast %cst_56 : f32 to vector<16x1xf32>
    %152 = arith.divf %150, %151 : vector<16x1xf32>
    %153 = vector.broadcast %152 : vector<16x1xf32> to vector<16x128xf32>
    %154 = arith.subf %144, %153 : vector<16x128xf32>
    %155 = arith.mulf %154, %154 : vector<16x128xf32>
    %cst_57 = arith.constant dense<0.000000e+00> : vector<16xf32>
    %156 = vector.multi_reduction <add>, %155, %cst_57 [1] : vector<16x128xf32> to vector<16xf32>
    %157 = vector.shape_cast %156 : vector<16xf32> to vector<16x1xf32>
    %cst_58 = arith.constant 1.280000e+02 : f32
    %158 = vector.broadcast %cst_58 : f32 to vector<16x1xf32>
    %159 = arith.divf %157, %158 : vector<16x1xf32>
    %160 = vector.broadcast %152 : vector<16x1xf32> to vector<16x128xf32>
    %161 = arith.subf %144, %160 : vector<16x128xf32>
    %cst_59 = arith.constant 9.99999996E-13 : f32
    %162 = vector.broadcast %cst_59 : f32 to vector<16x1xf32>
    %163 = arith.addf %159, %162 : vector<16x1xf32>
    %164 = math.rsqrt %163 : vector<16x1xf32>
    %165 = vector.broadcast %164 : vector<16x1xf32> to vector<16x128xf32>
    %166 = arith.mulf %161, %165 : vector<16x128xf32>
    %167 = vector.broadcast %146 : vector<1x128xf32> to vector<16x128xf32>
    %168 = arith.mulf %166, %167 : vector<16x128xf32>
    %169 = vector.broadcast %148 : vector<1x128xf32> to vector<16x128xf32>
    %170 = arith.addf %168, %169 : vector<16x128xf32>
    %171 = arith.truncf %170 : vector<16x128xf32> to vector<16x128xbf16>
    %c0_60 = arith.constant 0 : index
    %c0_61 = arith.constant 0 : index
    %c0_62 = arith.constant 0 : index
    %172 = vector.load %arg11[%c0_60, %c0_61, %c0_62] : memref<2x128x256xbf16, #tpu.memory_space<vmem>>, vector<1x128x256xbf16>
    %173 = vector.shape_cast %172 : vector<1x128x256xbf16> to vector<128x256xbf16>
    %cst_63 = arith.constant dense<0.000000e+00> : vector<16x256xf32>
    %174 = tpu.matmul %171, %173, %cst_63 {dimension_numbers = #tpu.dot_dimension_numbers<[1], [0], [0], [1], [0, 0, 1, 1], [], []>} : vector<16x128xbf16>, vector<128x256xbf16>, vector<16x256xf32> -> vector<16x256xf32>
    %c0_64 = arith.constant 0 : index
    %c0_65 = arith.constant 0 : index
    %c0_66 = arith.constant 0 : index
    %175 = vector.load %arg12[%c0_64, %c0_65, %c0_66] : memref<2x1x256xf32, #tpu.memory_space<vmem>>, vector<1x1x256xf32>
    %176 = vector.shape_cast %175 : vector<1x1x256xf32> to vector<1x256xf32>
    %177 = vector.broadcast %176 : vector<1x256xf32> to vector<16x256xf32>
    %178 = arith.addf %174, %177 : vector<16x256xf32>
    %179 = arith.mulf %178, %178 : vector<16x256xf32>
    %180 = arith.mulf %178, %179 : vector<16x256xf32>
    %cst_67 = arith.constant 4.471500e-02 : f32
    %181 = vector.broadcast %cst_67 : f32 to vector<16x256xf32>
    %182 = arith.mulf %181, %180 : vector<16x256xf32>
    %183 = arith.addf %178, %182 : vector<16x256xf32>
    %cst_68 = arith.constant 0.797884583 : f32
    %184 = vector.broadcast %cst_68 : f32 to vector<16x256xf32>
    %185 = arith.mulf %184, %183 : vector<16x256xf32>
    %186 = math.tanh %185 : vector<16x256xf32>
    %cst_69 = arith.constant 1.000000e+00 : f32
    %187 = vector.broadcast %cst_69 : f32 to vector<16x256xf32>
    %188 = arith.addf %187, %186 : vector<16x256xf32>
    %cst_70 = arith.constant 5.000000e-01 : f32
    %189 = vector.broadcast %cst_70 : f32 to vector<16x256xf32>
    %190 = arith.mulf %189, %188 : vector<16x256xf32>
    %191 = arith.mulf %178, %190 : vector<16x256xf32>
    %192 = arith.truncf %191 : vector<16x256xf32> to vector<16x256xbf16>
    %c0_71 = arith.constant 0 : index
    %c0_72 = arith.constant 0 : index
    %c0_73 = arith.constant 0 : index
    %193 = vector.load %arg13[%c0_71, %c0_72, %c0_73] : memref<2x256x128xbf16, #tpu.memory_space<vmem>>, vector<1x256x128xbf16>
    %194 = vector.shape_cast %193 : vector<1x256x128xbf16> to vector<256x128xbf16>
    %cst_74 = arith.constant dense<0.000000e+00> : vector<16x128xf32>
    %195 = tpu.matmul %192, %194, %cst_74 {dimension_numbers = #tpu.dot_dimension_numbers<[1], [0], [0], [1], [0, 0, 1, 1], [], []>} : vector<16x256xbf16>, vector<256x128xbf16>, vector<16x128xf32> -> vector<16x128xf32>
    %c0_75 = arith.constant 0 : index
    %c0_76 = arith.constant 0 : index
    %c0_77 = arith.constant 0 : index
    %196 = vector.load %arg14[%c0_75, %c0_76, %c0_77] : memref<2x1x128xf32, #tpu.memory_space<vmem>>, vector<1x1x128xf32>
    %197 = vector.shape_cast %196 : vector<1x1x128xf32> to vector<1x128xf32>
    %198 = vector.broadcast %197 : vector<1x128xf32> to vector<16x128xf32>
    %199 = arith.addf %195, %198 : vector<16x128xf32>
    %200 = arith.addf %170, %199 : vector<16x128xf32>
    %c0_78 = arith.constant 0 : index
    %c0_79 = arith.constant 0 : index
    %c0_80 = arith.constant 0 : index
    %201 = vector.load %arg15[%c0_78, %c0_79, %c0_80] : memref<2x1x128xf32, #tpu.memory_space<vmem>>, vector<1x1x128xf32>
    %202 = vector.shape_cast %201 : vector<1x1x128xf32> to vector<1x128xf32>
    %c0_81 = arith.constant 0 : index
    %c0_82 = arith.constant 0 : index
    %c0_83 = arith.constant 0 : index
    %203 = vector.load %arg16[%c0_81, %c0_82, %c0_83] : memref<2x1x128xf32, #tpu.memory_space<vmem>>, vector<1x1x128xf32>
    %204 = vector.shape_cast %203 : vector<1x1x128xf32> to vector<1x128xf32>
    %cst_84 = arith.constant dense<0.000000e+00> : vector<16xf32>
    %205 = vector.multi_reduction <add>, %200, %cst_84 [1] : vector<16x128xf32> to vector<16xf32>
    %206 = vector.shape_cast %205 : vector<16xf32> to vector<16x1xf32>
    %cst_85 = arith.constant 1.280000e+02 : f32
    %207 = vector.broadcast %cst_85 : f32 to vector<16x1xf32>
    %208 = arith.divf %206, %207 : vector<16x1xf32>
    %209 = vector.broadcast %208 : vector<16x1xf32> to vector<16x128xf32>
    %210 = arith.subf %200, %209 : vector<16x128xf32>
    %211 = arith.mulf %210, %210 : vector<16x128xf32>
    %cst_86 = arith.constant dense<0.000000e+00> : vector<16xf32>
    %212 = vector.multi_reduction <add>, %211, %cst_86 [1] : vector<16x128xf32> to vector<16xf32>
    %213 = vector.shape_cast %212 : vector<16xf32> to vector<16x1xf32>
    %cst_87 = arith.constant 1.280000e+02 : f32
    %214 = vector.broadcast %cst_87 : f32 to vector<16x1xf32>
    %215 = arith.divf %213, %214 : vector<16x1xf32>
    %216 = vector.broadcast %208 : vector<16x1xf32> to vector<16x128xf32>
    %217 = arith.subf %200, %216 : vector<16x128xf32>
    %cst_88 = arith.constant 9.99999996E-13 : f32
    %218 = vector.broadcast %cst_88 : f32 to vector<16x1xf32>
    %219 = arith.addf %215, %218 : vector<16x1xf32>
    %220 = math.rsqrt %219 : vector<16x1xf32>
    %221 = vector.broadcast %220 : vector<16x1xf32> to vector<16x128xf32>
    %222 = arith.mulf %217, %221 : vector<16x128xf32>
    %223 = vector.broadcast %202 : vector<1x128xf32> to vector<16x128xf32>
    %224 = arith.mulf %222, %223 : vector<16x128xf32>
    %225 = vector.broadcast %204 : vector<1x128xf32> to vector<16x128xf32>
    %226 = arith.addf %224, %225 : vector<16x128xf32>
    %227 = arith.truncf %226 : vector<16x128xf32> to vector<16x128xbf16>
    %c1 = arith.constant 1 : index
    %c0_89 = arith.constant 0 : index
    %c0_90 = arith.constant 0 : index
    %228 = vector.load %arg5[%c1, %c0_89, %c0_90] : memref<2x128x384xbf16, #tpu.memory_space<vmem>>, vector<1x128x384xbf16>
    %229 = vector.shape_cast %228 : vector<1x128x384xbf16> to vector<128x384xbf16>
    %cst_91 = arith.constant dense<0.000000e+00> : vector<16x384xf32>
    %230 = tpu.matmul %227, %229, %cst_91 {dimension_numbers = #tpu.dot_dimension_numbers<[1], [0], [0], [1], [0, 0, 1, 1], [], []>} : vector<16x128xbf16>, vector<128x384xbf16>, vector<16x384xf32> -> vector<16x384xf32>
    %c1_92 = arith.constant 1 : index
    %c0_93 = arith.constant 0 : index
    %c0_94 = arith.constant 0 : index
    %231 = vector.load %arg6[%c1_92, %c0_93, %c0_94] : memref<2x1x384xf32, #tpu.memory_space<vmem>>, vector<1x1x384xf32>
    %232 = vector.shape_cast %231 : vector<1x1x384xf32> to vector<1x384xf32>
    %233 = vector.broadcast %232 : vector<1x384xf32> to vector<16x384xf32>
    %234 = arith.addf %230, %233 : vector<16x384xf32>
    %235 = vector.extract_strided_slice %234 {offsets = [0, 0], sizes = [16, 128], strides = [1, 1]} : vector<16x384xf32> to vector<16x128xf32>
    %236 = vector.extract_strided_slice %234 {offsets = [0, 128], sizes = [16, 128], strides = [1, 1]} : vector<16x384xf32> to vector<16x128xf32>
    %237 = vector.extract_strided_slice %234 {offsets = [0, 256], sizes = [16, 128], strides = [1, 1]} : vector<16x384xf32> to vector<16x128xf32>
    %238 = vector.extract_strided_slice %235 {offsets = [0, 0], sizes = [16, 32], strides = [1, 1]} : vector<16x128xf32> to vector<16x32xf32>
    %239 = arith.truncf %238 : vector<16x32xf32> to vector<16x32xbf16>
    %240 = vector.extract_strided_slice %236 {offsets = [0, 0], sizes = [16, 32], strides = [1, 1]} : vector<16x128xf32> to vector<16x32xf32>
    %241 = arith.truncf %240 : vector<16x32xf32> to vector<16x32xbf16>
    %242 = vector.extract_strided_slice %237 {offsets = [0, 0], sizes = [16, 32], strides = [1, 1]} : vector<16x128xf32> to vector<16x32xf32>
    %243 = arith.truncf %242 : vector<16x32xf32> to vector<16x32xbf16>
    %cst_95 = arith.constant dense<0.000000e+00> : vector<16x16xf32>
    %244 = tpu.matmul %239, %241, %cst_95 {dimension_numbers = #tpu.dot_dimension_numbers<[1], [1], [0], [0], [0, 0, 1, 0], [], []>} : vector<16x32xbf16>, vector<16x32xbf16>, vector<16x16xf32> -> vector<16x16xf32>
    %cst_96 = arith.constant 0.176776692 : f32
    %245 = vector.broadcast %cst_96 : f32 to vector<16x16xf32>
    %246 = arith.mulf %244, %245 : vector<16x16xf32>
    %247 = vector.broadcast %31 : vector<1x16xf32> to vector<16x16xf32>
    %248 = arith.addf %246, %247 : vector<16x16xf32>
    %cst_97 = arith.constant dense<0xFF800000> : vector<16xf32>
    %249 = vector.multi_reduction <maximumf>, %248, %cst_97 [1] : vector<16x16xf32> to vector<16xf32>
    %250 = vector.shape_cast %249 : vector<16xf32> to vector<16x1xf32>
    %251 = vector.broadcast %250 : vector<16x1xf32> to vector<16x16xf32>
    %252 = arith.subf %248, %251 : vector<16x16xf32>
    %253 = math.exp %252 : vector<16x16xf32>
    %cst_98 = arith.constant dense<0.000000e+00> : vector<16xf32>
    %254 = vector.multi_reduction <add>, %253, %cst_98 [1] : vector<16x16xf32> to vector<16xf32>
    %255 = vector.shape_cast %254 : vector<16xf32> to vector<16x1xf32>
    %256 = tpu.reciprocal %255 {approx = true} : vector<16x1xf32> -> vector<16x1xf32>
    %257 = vector.broadcast %256 : vector<16x1xf32> to vector<16x16xf32>
    %258 = arith.mulf %253, %257 : vector<16x16xf32>
    %259 = arith.truncf %258 : vector<16x16xf32> to vector<16x16xbf16>
    %cst_99 = arith.constant dense<0.000000e+00> : vector<16x32xf32>
    %260 = tpu.matmul %259, %243, %cst_99 {dimension_numbers = #tpu.dot_dimension_numbers<[1], [0], [0], [1], [0, 0, 1, 1], [], []>} : vector<16x16xbf16>, vector<16x32xbf16>, vector<16x32xf32> -> vector<16x32xf32>
    %261 = vector.extract_strided_slice %235 {offsets = [0, 32], sizes = [16, 32], strides = [1, 1]} : vector<16x128xf32> to vector<16x32xf32>
    %262 = arith.truncf %261 : vector<16x32xf32> to vector<16x32xbf16>
    %263 = vector.extract_strided_slice %236 {offsets = [0, 32], sizes = [16, 32], strides = [1, 1]} : vector<16x128xf32> to vector<16x32xf32>
    %264 = arith.truncf %263 : vector<16x32xf32> to vector<16x32xbf16>
    %265 = vector.extract_strided_slice %237 {offsets = [0, 32], sizes = [16, 32], strides = [1, 1]} : vector<16x128xf32> to vector<16x32xf32>
    %266 = arith.truncf %265 : vector<16x32xf32> to vector<16x32xbf16>
    %cst_100 = arith.constant dense<0.000000e+00> : vector<16x16xf32>
    %267 = tpu.matmul %262, %264, %cst_100 {dimension_numbers = #tpu.dot_dimension_numbers<[1], [1], [0], [0], [0, 0, 1, 0], [], []>} : vector<16x32xbf16>, vector<16x32xbf16>, vector<16x16xf32> -> vector<16x16xf32>
    %cst_101 = arith.constant 0.176776692 : f32
    %268 = vector.broadcast %cst_101 : f32 to vector<16x16xf32>
    %269 = arith.mulf %267, %268 : vector<16x16xf32>
    %270 = vector.broadcast %31 : vector<1x16xf32> to vector<16x16xf32>
    %271 = arith.addf %269, %270 : vector<16x16xf32>
    %cst_102 = arith.constant dense<0xFF800000> : vector<16xf32>
    %272 = vector.multi_reduction <maximumf>, %271, %cst_102 [1] : vector<16x16xf32> to vector<16xf32>
    %273 = vector.shape_cast %272 : vector<16xf32> to vector<16x1xf32>
    %274 = vector.broadcast %273 : vector<16x1xf32> to vector<16x16xf32>
    %275 = arith.subf %271, %274 : vector<16x16xf32>
    %276 = math.exp %275 : vector<16x16xf32>
    %cst_103 = arith.constant dense<0.000000e+00> : vector<16xf32>
    %277 = vector.multi_reduction <add>, %276, %cst_103 [1] : vector<16x16xf32> to vector<16xf32>
    %278 = vector.shape_cast %277 : vector<16xf32> to vector<16x1xf32>
    %279 = tpu.reciprocal %278 {approx = true} : vector<16x1xf32> -> vector<16x1xf32>
    %280 = vector.broadcast %279 : vector<16x1xf32> to vector<16x16xf32>
    %281 = arith.mulf %276, %280 : vector<16x16xf32>
    %282 = arith.truncf %281 : vector<16x16xf32> to vector<16x16xbf16>
    %cst_104 = arith.constant dense<0.000000e+00> : vector<16x32xf32>
    %283 = tpu.matmul %282, %266, %cst_104 {dimension_numbers = #tpu.dot_dimension_numbers<[1], [0], [0], [1], [0, 0, 1, 1], [], []>} : vector<16x16xbf16>, vector<16x32xbf16>, vector<16x32xf32> -> vector<16x32xf32>
    %284 = vector.extract_strided_slice %235 {offsets = [0, 64], sizes = [16, 32], strides = [1, 1]} : vector<16x128xf32> to vector<16x32xf32>
    %285 = arith.truncf %284 : vector<16x32xf32> to vector<16x32xbf16>
    %286 = vector.extract_strided_slice %236 {offsets = [0, 64], sizes = [16, 32], strides = [1, 1]} : vector<16x128xf32> to vector<16x32xf32>
    %287 = arith.truncf %286 : vector<16x32xf32> to vector<16x32xbf16>
    %288 = vector.extract_strided_slice %237 {offsets = [0, 64], sizes = [16, 32], strides = [1, 1]} : vector<16x128xf32> to vector<16x32xf32>
    %289 = arith.truncf %288 : vector<16x32xf32> to vector<16x32xbf16>
    %cst_105 = arith.constant dense<0.000000e+00> : vector<16x16xf32>
    %290 = tpu.matmul %285, %287, %cst_105 {dimension_numbers = #tpu.dot_dimension_numbers<[1], [1], [0], [0], [0, 0, 1, 0], [], []>} : vector<16x32xbf16>, vector<16x32xbf16>, vector<16x16xf32> -> vector<16x16xf32>
    %cst_106 = arith.constant 0.176776692 : f32
    %291 = vector.broadcast %cst_106 : f32 to vector<16x16xf32>
    %292 = arith.mulf %290, %291 : vector<16x16xf32>
    %293 = vector.broadcast %31 : vector<1x16xf32> to vector<16x16xf32>
    %294 = arith.addf %292, %293 : vector<16x16xf32>
    %cst_107 = arith.constant dense<0xFF800000> : vector<16xf32>
    %295 = vector.multi_reduction <maximumf>, %294, %cst_107 [1] : vector<16x16xf32> to vector<16xf32>
    %296 = vector.shape_cast %295 : vector<16xf32> to vector<16x1xf32>
    %297 = vector.broadcast %296 : vector<16x1xf32> to vector<16x16xf32>
    %298 = arith.subf %294, %297 : vector<16x16xf32>
    %299 = math.exp %298 : vector<16x16xf32>
    %cst_108 = arith.constant dense<0.000000e+00> : vector<16xf32>
    %300 = vector.multi_reduction <add>, %299, %cst_108 [1] : vector<16x16xf32> to vector<16xf32>
    %301 = vector.shape_cast %300 : vector<16xf32> to vector<16x1xf32>
    %302 = tpu.reciprocal %301 {approx = true} : vector<16x1xf32> -> vector<16x1xf32>
    %303 = vector.broadcast %302 : vector<16x1xf32> to vector<16x16xf32>
    %304 = arith.mulf %299, %303 : vector<16x16xf32>
    %305 = arith.truncf %304 : vector<16x16xf32> to vector<16x16xbf16>
    %cst_109 = arith.constant dense<0.000000e+00> : vector<16x32xf32>
    %306 = tpu.matmul %305, %289, %cst_109 {dimension_numbers = #tpu.dot_dimension_numbers<[1], [0], [0], [1], [0, 0, 1, 1], [], []>} : vector<16x16xbf16>, vector<16x32xbf16>, vector<16x32xf32> -> vector<16x32xf32>
    %307 = vector.extract_strided_slice %235 {offsets = [0, 96], sizes = [16, 32], strides = [1, 1]} : vector<16x128xf32> to vector<16x32xf32>
    %308 = arith.truncf %307 : vector<16x32xf32> to vector<16x32xbf16>
    %309 = vector.extract_strided_slice %236 {offsets = [0, 96], sizes = [16, 32], strides = [1, 1]} : vector<16x128xf32> to vector<16x32xf32>
    %310 = arith.truncf %309 : vector<16x32xf32> to vector<16x32xbf16>
    %311 = vector.extract_strided_slice %237 {offsets = [0, 96], sizes = [16, 32], strides = [1, 1]} : vector<16x128xf32> to vector<16x32xf32>
    %312 = arith.truncf %311 : vector<16x32xf32> to vector<16x32xbf16>
    %cst_110 = arith.constant dense<0.000000e+00> : vector<16x16xf32>
    %313 = tpu.matmul %308, %310, %cst_110 {dimension_numbers = #tpu.dot_dimension_numbers<[1], [1], [0], [0], [0, 0, 1, 0], [], []>} : vector<16x32xbf16>, vector<16x32xbf16>, vector<16x16xf32> -> vector<16x16xf32>
    %cst_111 = arith.constant 0.176776692 : f32
    %314 = vector.broadcast %cst_111 : f32 to vector<16x16xf32>
    %315 = arith.mulf %313, %314 : vector<16x16xf32>
    %316 = vector.broadcast %31 : vector<1x16xf32> to vector<16x16xf32>
    %317 = arith.addf %315, %316 : vector<16x16xf32>
    %cst_112 = arith.constant dense<0xFF800000> : vector<16xf32>
    %318 = vector.multi_reduction <maximumf>, %317, %cst_112 [1] : vector<16x16xf32> to vector<16xf32>
    %319 = vector.shape_cast %318 : vector<16xf32> to vector<16x1xf32>
    %320 = vector.broadcast %319 : vector<16x1xf32> to vector<16x16xf32>
    %321 = arith.subf %317, %320 : vector<16x16xf32>
    %322 = math.exp %321 : vector<16x16xf32>
    %cst_113 = arith.constant dense<0.000000e+00> : vector<16xf32>
    %323 = vector.multi_reduction <add>, %322, %cst_113 [1] : vector<16x16xf32> to vector<16xf32>
    %324 = vector.shape_cast %323 : vector<16xf32> to vector<16x1xf32>
    %325 = tpu.reciprocal %324 {approx = true} : vector<16x1xf32> -> vector<16x1xf32>
    %326 = vector.broadcast %325 : vector<16x1xf32> to vector<16x16xf32>
    %327 = arith.mulf %322, %326 : vector<16x16xf32>
    %328 = arith.truncf %327 : vector<16x16xf32> to vector<16x16xbf16>
    %cst_114 = arith.constant dense<0.000000e+00> : vector<16x32xf32>
    %329 = tpu.matmul %328, %312, %cst_114 {dimension_numbers = #tpu.dot_dimension_numbers<[1], [0], [0], [1], [0, 0, 1, 1], [], []>} : vector<16x16xbf16>, vector<16x32xbf16>, vector<16x32xf32> -> vector<16x32xf32>
    %330 = tpu.concatenate %260, %283, %306, %329 in 1 : vector<16x32xf32>, vector<16x32xf32>, vector<16x32xf32>, vector<16x32xf32> -> vector<16x128xf32>
    %331 = arith.truncf %330 : vector<16x128xf32> to vector<16x128xbf16>
    %c1_115 = arith.constant 1 : index
    %c0_116 = arith.constant 0 : index
    %c0_117 = arith.constant 0 : index
    %332 = vector.load %arg7[%c1_115, %c0_116, %c0_117] : memref<2x128x128xbf16, #tpu.memory_space<vmem>>, vector<1x128x128xbf16>
    %333 = vector.shape_cast %332 : vector<1x128x128xbf16> to vector<128x128xbf16>
    %cst_118 = arith.constant dense<0.000000e+00> : vector<16x128xf32>
    %334 = tpu.matmul %331, %333, %cst_118 {dimension_numbers = #tpu.dot_dimension_numbers<[1], [0], [0], [1], [0, 0, 1, 1], [], []>} : vector<16x128xbf16>, vector<128x128xbf16>, vector<16x128xf32> -> vector<16x128xf32>
    %c1_119 = arith.constant 1 : index
    %c0_120 = arith.constant 0 : index
    %c0_121 = arith.constant 0 : index
    %335 = vector.load %arg8[%c1_119, %c0_120, %c0_121] : memref<2x1x128xf32, #tpu.memory_space<vmem>>, vector<1x1x128xf32>
    %336 = vector.shape_cast %335 : vector<1x1x128xf32> to vector<1x128xf32>
    %337 = vector.broadcast %336 : vector<1x128xf32> to vector<16x128xf32>
    %338 = arith.addf %334, %337 : vector<16x128xf32>
    %339 = arith.addf %226, %338 : vector<16x128xf32>
    %c1_122 = arith.constant 1 : index
    %c0_123 = arith.constant 0 : index
    %c0_124 = arith.constant 0 : index
    %340 = vector.load %arg9[%c1_122, %c0_123, %c0_124] : memref<2x1x128xf32, #tpu.memory_space<vmem>>, vector<1x1x128xf32>
    %341 = vector.shape_cast %340 : vector<1x1x128xf32> to vector<1x128xf32>
    %c1_125 = arith.constant 1 : index
    %c0_126 = arith.constant 0 : index
    %c0_127 = arith.constant 0 : index
    %342 = vector.load %arg10[%c1_125, %c0_126, %c0_127] : memref<2x1x128xf32, #tpu.memory_space<vmem>>, vector<1x1x128xf32>
    %343 = vector.shape_cast %342 : vector<1x1x128xf32> to vector<1x128xf32>
    %cst_128 = arith.constant dense<0.000000e+00> : vector<16xf32>
    %344 = vector.multi_reduction <add>, %339, %cst_128 [1] : vector<16x128xf32> to vector<16xf32>
    %345 = vector.shape_cast %344 : vector<16xf32> to vector<16x1xf32>
    %cst_129 = arith.constant 1.280000e+02 : f32
    %346 = vector.broadcast %cst_129 : f32 to vector<16x1xf32>
    %347 = arith.divf %345, %346 : vector<16x1xf32>
    %348 = vector.broadcast %347 : vector<16x1xf32> to vector<16x128xf32>
    %349 = arith.subf %339, %348 : vector<16x128xf32>
    %350 = arith.mulf %349, %349 : vector<16x128xf32>
    %cst_130 = arith.constant dense<0.000000e+00> : vector<16xf32>
    %351 = vector.multi_reduction <add>, %350, %cst_130 [1] : vector<16x128xf32> to vector<16xf32>
    %352 = vector.shape_cast %351 : vector<16xf32> to vector<16x1xf32>
    %cst_131 = arith.constant 1.280000e+02 : f32
    %353 = vector.broadcast %cst_131 : f32 to vector<16x1xf32>
    %354 = arith.divf %352, %353 : vector<16x1xf32>
    %355 = vector.broadcast %347 : vector<16x1xf32> to vector<16x128xf32>
    %356 = arith.subf %339, %355 : vector<16x128xf32>
    %cst_132 = arith.constant 9.99999996E-13 : f32
    %357 = vector.broadcast %cst_132 : f32 to vector<16x1xf32>
    %358 = arith.addf %354, %357 : vector<16x1xf32>
    %359 = math.rsqrt %358 : vector<16x1xf32>
    %360 = vector.broadcast %359 : vector<16x1xf32> to vector<16x128xf32>
    %361 = arith.mulf %356, %360 : vector<16x128xf32>
    %362 = vector.broadcast %341 : vector<1x128xf32> to vector<16x128xf32>
    %363 = arith.mulf %361, %362 : vector<16x128xf32>
    %364 = vector.broadcast %343 : vector<1x128xf32> to vector<16x128xf32>
    %365 = arith.addf %363, %364 : vector<16x128xf32>
    %366 = arith.truncf %365 : vector<16x128xf32> to vector<16x128xbf16>
    %c1_133 = arith.constant 1 : index
    %c0_134 = arith.constant 0 : index
    %c0_135 = arith.constant 0 : index
    %367 = vector.load %arg11[%c1_133, %c0_134, %c0_135] : memref<2x128x256xbf16, #tpu.memory_space<vmem>>, vector<1x128x256xbf16>
    %368 = vector.shape_cast %367 : vector<1x128x256xbf16> to vector<128x256xbf16>
    %cst_136 = arith.constant dense<0.000000e+00> : vector<16x256xf32>
    %369 = tpu.matmul %366, %368, %cst_136 {dimension_numbers = #tpu.dot_dimension_numbers<[1], [0], [0], [1], [0, 0, 1, 1], [], []>} : vector<16x128xbf16>, vector<128x256xbf16>, vector<16x256xf32> -> vector<16x256xf32>
    %c1_137 = arith.constant 1 : index
    %c0_138 = arith.constant 0 : index
    %c0_139 = arith.constant 0 : index
    %370 = vector.load %arg12[%c1_137, %c0_138, %c0_139] : memref<2x1x256xf32, #tpu.memory_space<vmem>>, vector<1x1x256xf32>
    %371 = vector.shape_cast %370 : vector<1x1x256xf32> to vector<1x256xf32>
    %372 = vector.broadcast %371 : vector<1x256xf32> to vector<16x256xf32>
    %373 = arith.addf %369, %372 : vector<16x256xf32>
    %374 = arith.mulf %373, %373 : vector<16x256xf32>
    %375 = arith.mulf %373, %374 : vector<16x256xf32>
    %cst_140 = arith.constant 4.471500e-02 : f32
    %376 = vector.broadcast %cst_140 : f32 to vector<16x256xf32>
    %377 = arith.mulf %376, %375 : vector<16x256xf32>
    %378 = arith.addf %373, %377 : vector<16x256xf32>
    %cst_141 = arith.constant 0.797884583 : f32
    %379 = vector.broadcast %cst_141 : f32 to vector<16x256xf32>
    %380 = arith.mulf %379, %378 : vector<16x256xf32>
    %381 = math.tanh %380 : vector<16x256xf32>
    %cst_142 = arith.constant 1.000000e+00 : f32
    %382 = vector.broadcast %cst_142 : f32 to vector<16x256xf32>
    %383 = arith.addf %382, %381 : vector<16x256xf32>
    %cst_143 = arith.constant 5.000000e-01 : f32
    %384 = vector.broadcast %cst_143 : f32 to vector<16x256xf32>
    %385 = arith.mulf %384, %383 : vector<16x256xf32>
    %386 = arith.mulf %373, %385 : vector<16x256xf32>
    %387 = arith.truncf %386 : vector<16x256xf32> to vector<16x256xbf16>
    %c1_144 = arith.constant 1 : index
    %c0_145 = arith.constant 0 : index
    %c0_146 = arith.constant 0 : index
    %388 = vector.load %arg13[%c1_144, %c0_145, %c0_146] : memref<2x256x128xbf16, #tpu.memory_space<vmem>>, vector<1x256x128xbf16>
    %389 = vector.shape_cast %388 : vector<1x256x128xbf16> to vector<256x128xbf16>
    %cst_147 = arith.constant dense<0.000000e+00> : vector<16x128xf32>
    %390 = tpu.matmul %387, %389, %cst_147 {dimension_numbers = #tpu.dot_dimension_numbers<[1], [0], [0], [1], [0, 0, 1, 1], [], []>} : vector<16x256xbf16>, vector<256x128xbf16>, vector<16x128xf32> -> vector<16x128xf32>
    %c1_148 = arith.constant 1 : index
    %c0_149 = arith.constant 0 : index
    %c0_150 = arith.constant 0 : index
    %391 = vector.load %arg14[%c1_148, %c0_149, %c0_150] : memref<2x1x128xf32, #tpu.memory_space<vmem>>, vector<1x1x128xf32>
    %392 = vector.shape_cast %391 : vector<1x1x128xf32> to vector<1x128xf32>
    %393 = vector.broadcast %392 : vector<1x128xf32> to vector<16x128xf32>
    %394 = arith.addf %390, %393 : vector<16x128xf32>
    %395 = arith.addf %365, %394 : vector<16x128xf32>
    %c1_151 = arith.constant 1 : index
    %c0_152 = arith.constant 0 : index
    %c0_153 = arith.constant 0 : index
    %396 = vector.load %arg15[%c1_151, %c0_152, %c0_153] : memref<2x1x128xf32, #tpu.memory_space<vmem>>, vector<1x1x128xf32>
    %397 = vector.shape_cast %396 : vector<1x1x128xf32> to vector<1x128xf32>
    %c1_154 = arith.constant 1 : index
    %c0_155 = arith.constant 0 : index
    %c0_156 = arith.constant 0 : index
    %398 = vector.load %arg16[%c1_154, %c0_155, %c0_156] : memref<2x1x128xf32, #tpu.memory_space<vmem>>, vector<1x1x128xf32>
    %399 = vector.shape_cast %398 : vector<1x1x128xf32> to vector<1x128xf32>
    %cst_157 = arith.constant dense<0.000000e+00> : vector<16xf32>
    %400 = vector.multi_reduction <add>, %395, %cst_157 [1] : vector<16x128xf32> to vector<16xf32>
    %401 = vector.shape_cast %400 : vector<16xf32> to vector<16x1xf32>
    %cst_158 = arith.constant 1.280000e+02 : f32
    %402 = vector.broadcast %cst_158 : f32 to vector<16x1xf32>
    %403 = arith.divf %401, %402 : vector<16x1xf32>
    %404 = vector.broadcast %403 : vector<16x1xf32> to vector<16x128xf32>
    %405 = arith.subf %395, %404 : vector<16x128xf32>
    %406 = arith.mulf %405, %405 : vector<16x128xf32>
    %cst_159 = arith.constant dense<0.000000e+00> : vector<16xf32>
    %407 = vector.multi_reduction <add>, %406, %cst_159 [1] : vector<16x128xf32> to vector<16xf32>
    %408 = vector.shape_cast %407 : vector<16xf32> to vector<16x1xf32>
    %cst_160 = arith.constant 1.280000e+02 : f32
    %409 = vector.broadcast %cst_160 : f32 to vector<16x1xf32>
    %410 = arith.divf %408, %409 : vector<16x1xf32>
    %411 = vector.broadcast %403 : vector<16x1xf32> to vector<16x128xf32>
    %412 = arith.subf %395, %411 : vector<16x128xf32>
    %cst_161 = arith.constant 9.99999996E-13 : f32
    %413 = vector.broadcast %cst_161 : f32 to vector<16x1xf32>
    %414 = arith.addf %410, %413 : vector<16x1xf32>
    %415 = math.rsqrt %414 : vector<16x1xf32>
    %416 = vector.broadcast %415 : vector<16x1xf32> to vector<16x128xf32>
    %417 = arith.mulf %412, %416 : vector<16x128xf32>
    %418 = vector.broadcast %397 : vector<1x128xf32> to vector<16x128xf32>
    %419 = arith.mulf %417, %418 : vector<16x128xf32>
    %420 = vector.broadcast %399 : vector<1x128xf32> to vector<16x128xf32>
    %421 = arith.addf %419, %420 : vector<16x128xf32>
    %c0_162 = arith.constant 0 : index
    %c0_163 = arith.constant 0 : index
    %c0_164 = arith.constant 0 : index
    %422 = vector.load %arg17[%c0_162, %c0_163, %c0_164] : memref<1x16x128xf32, #tpu.memory_space<vmem>>, vector<1x16x128xf32>
    %423 = vector.shape_cast %422 : vector<1x16x128xf32> to vector<16x128xf32>
    %424 = vector.shape_cast %421 : vector<16x128xf32> to vector<1x16x128xf32>
    tpu.vector_store %arg17[%c0_162, %c0_163, %c0_164], %424 {strides = array<i32>} : memref<1x16x128xf32, #tpu.memory_space<vmem>>, vector<1x16x128xf32>,
    return
  }
  func.func @transform_0(%arg0: i32) -> (i32, i32, i32) {
    %c0_i32 = arith.constant 0 : i32
    %c0_i32_0 = arith.constant 0 : i32
    %c0_i32_1 = arith.constant 0 : i32
    return %arg0, %c0_i32, %c0_i32_0 : i32, i32, i32
  }
  func.func @transform_1(%arg0: i32) -> (i32, i32, i32) {
    %c0_i32 = arith.constant 0 : i32
    %c0_i32_0 = arith.constant 0 : i32
    %c0_i32_1 = arith.constant 0 : i32
    return %arg0, %c0_i32, %c0_i32_0 : i32, i32, i32
  }
  func.func @transform_2(%arg0: i32) -> (i32, i32) {
    %c0_i32 = arith.constant 0 : i32
    %c0_i32_0 = arith.constant 0 : i32
    %c0_i32_1 = arith.constant 0 : i32
    return %c0_i32, %c0_i32_0 : i32, i32
  }
  func.func @transform_3(%arg0: i32) -> (i32, i32) {
    %c0_i32 = arith.constant 0 : i32
    %c0_i32_0 = arith.constant 0 : i32
    %c0_i32_1 = arith.constant 0 : i32
    return %c0_i32, %c0_i32_0 : i32, i32
  }
  func.func @transform_4(%arg0: i32) -> (i32, i32, i32) {
    %c0_i32 = arith.constant 0 : i32
    %c0_i32_0 = arith.constant 0 : i32
    %c0_i32_1 = arith.constant 0 : i32
    %c0_i32_2 = arith.constant 0 : i32
    return %c0_i32, %c0_i32_0, %c0_i32_1 : i32, i32, i32
  }
  func.func @transform_5(%arg0: i32) -> (i32, i32, i32) {
    %c0_i32 = arith.constant 0 : i32
    %c0_i32_0 = arith.constant 0 : i32
    %c0_i32_1 = arith.constant 0 : i32
    %c0_i32_2 = arith.constant 0 : i32
    return %c0_i32, %c0_i32_0, %c0_i32_1 : i32, i32, i32
  }
  func.func @transform_6(%arg0: i32) -> (i32, i32, i32) {
    %c0_i32 = arith.constant 0 : i32
    %c0_i32_0 = arith.constant 0 : i32
    %c0_i32_1 = arith.constant 0 : i32
    %c0_i32_2 = arith.constant 0 : i32
    return %c0_i32, %c0_i32_0, %c0_i32_1 : i32, i32, i32
  }
  func.func @transform_7(%arg0: i32) -> (i32, i32, i32) {
    %c0_i32 = arith.constant 0 : i32
    %c0_i32_0 = arith.constant 0 : i32
    %c0_i32_1 = arith.constant 0 : i32
    %c0_i32_2 = arith.constant 0 : i32
    return %c0_i32, %c0_i32_0, %c0_i32_1 : i32, i32, i32
  }
  func.func @transform_8(%arg0: i32) -> (i32, i32, i32) {
    %c0_i32 = arith.constant 0 : i32
    %c0_i32_0 = arith.constant 0 : i32
    %c0_i32_1 = arith.constant 0 : i32
    %c0_i32_2 = arith.constant 0 : i32
    return %c0_i32, %c0_i32_0, %c0_i32_1 : i32, i32, i32
  }
  func.func @transform_9(%arg0: i32) -> (i32, i32, i32) {
    %c0_i32 = arith.constant 0 : i32
    %c0_i32_0 = arith.constant 0 : i32
    %c0_i32_1 = arith.constant 0 : i32
    %c0_i32_2 = arith.constant 0 : i32
    return %c0_i32, %c0_i32_0, %c0_i32_1 : i32, i32, i32
  }
  func.func @transform_10(%arg0: i32) -> (i32, i32, i32) {
    %c0_i32 = arith.constant 0 : i32
    %c0_i32_0 = arith.constant 0 : i32
    %c0_i32_1 = arith.constant 0 : i32
    %c0_i32_2 = arith.constant 0 : i32
    return %c0_i32, %c0_i32_0, %c0_i32_1 : i32, i32, i32
  }
  func.func @transform_11(%arg0: i32) -> (i32, i32, i32) {
    %c0_i32 = arith.constant 0 : i32
    %c0_i32_0 = arith.constant 0 : i32
    %c0_i32_1 = arith.constant 0 : i32
    %c0_i32_2 = arith.constant 0 : i32
    return %c0_i32, %c0_i32_0, %c0_i32_1 : i32, i32, i32
  }
  func.func @transform_12(%arg0: i32) -> (i32, i32, i32) {
    %c0_i32 = arith.constant 0 : i32
    %c0_i32_0 = arith.constant 0 : i32
    %c0_i32_1 = arith.constant 0 : i32
    %c0_i32_2 = arith.constant 0 : i32
    return %c0_i32, %c0_i32_0, %c0_i32_1 : i32, i32, i32
  }
  func.func @transform_13(%arg0: i32) -> (i32, i32, i32) {
    %c0_i32 = arith.constant 0 : i32
    %c0_i32_0 = arith.constant 0 : i32
    %c0_i32_1 = arith.constant 0 : i32
    %c0_i32_2 = arith.constant 0 : i32
    return %c0_i32, %c0_i32_0, %c0_i32_1 : i32, i32, i32
  }
  func.func @transform_14(%arg0: i32) -> (i32, i32, i32) {
    %c0_i32 = arith.constant 0 : i32
    %c0_i32_0 = arith.constant 0 : i32
    %c0_i32_1 = arith.constant 0 : i32
    %c0_i32_2 = arith.constant 0 : i32
    return %c0_i32, %c0_i32_0, %c0_i32_1 : i32, i32, i32
  }
  func.func @transform_15(%arg0: i32) -> (i32, i32, i32) {
    %c0_i32 = arith.constant 0 : i32
    %c0_i32_0 = arith.constant 0 : i32
    %c0_i32_1 = arith.constant 0 : i32
    %c0_i32_2 = arith.constant 0 : i32
    return %c0_i32, %c0_i32_0, %c0_i32_1 : i32, i32, i32
  }
  func.func @transform_16(%arg0: i32) -> (i32, i32, i32) {
    %c0_i32 = arith.constant 0 : i32
    %c0_i32_0 = arith.constant 0 : i32
    %c0_i32_1 = arith.constant 0 : i32
    return %arg0, %c0_i32, %c0_i32_0 : i32, i32, i32
  }
}

</mosaic_0001>

<bundles_post_ra>
// kernel: tpu_custom_call.1
= control target key start
LH: loop header
LB: loop body
LE: loop exit
PB: predicated region body
PF: predicated region fallthrough
CT: control target
= control target key end

     0   :  { %s5059_s0 = inlined_call_operand.hbm [shape: f32[2,16,128], index: 0, kind: input, shape index: {}]   ;;  %s5060_s1 = inlined_call_operand.hbm [shape: f32[2,1,16], index: 1, kind: input, shape index: {}]   ;;  %s5061_s2 = inlined_call_operand.hbm [shape: f32[1,128], index: 2, kind: input, shape index: {}]   ;;  %s5062_s3 = inlined_call_operand.hbm [shape: f32[1,128], index: 3, kind: input, shape index: {}]   ;;  %s5063_s4 = inlined_call_operand.hbm [shape: bf16[2,128,384], index: 4, kind: input, shape index: {}]   ;;  %s5064_s5 = inlined_call_operand.hbm [shape: f32[2,1,384], index: 5, kind: input, shape index: {}]   ;;  %s5065_s6 = inlined_call_operand.hbm [shape: bf16[2,128,128], index: 6, kind: input, shape index: {}]   ;;  %s5066_s7 = inlined_call_operand.vmem [shape: f32[2,1,128], index: 7, kind: input, shape index: {}]   ;;  %s5067_s8 = inlined_call_operand.hbm [shape: f32[2,1,128], index: 8, kind: input, shape index: {}]   ;;  %s5068_s9 = inlined_call_operand.vmem [shape: f32[2,1,128], index: 9, kind: input, shape index: {}]   ;;  %s5069_s10 = inlined_call_operand.hbm [shape: bf16[2,128,256], index: 10, kind: input, shape index: {}]   ;;  %s5070_s11 = inlined_call_operand.vmem [shape: f32[2,1,256], index: 11, kind: input, shape index: {}]   ;;  %s5071_s12 = inlined_call_operand.hbm [shape: bf16[2,256,128], index: 12, kind: input, shape index: {}]   ;;  %s5072_s13 = inlined_call_operand.vmem [shape: f32[2,1,128], index: 13, kind: input, shape index: {}]   ;;  %s5073_s14 = inlined_call_operand.vmem [shape: f32[2,1,128], index: 14, kind: input, shape index: {}]   ;;  %s5074_s15 = inlined_call_operand.vmem [shape: f32[2,1,128], index: 15, kind: input, shape index: {}]   ;;  %s5075_s16 = inlined_call_operand.hbm [shape: f32[2,16,128], index: 16, kind: output, shape index: {}]  }
   0x1   :  { %5085 = sst [smem:[#allocation30_spill]] %s5059_s0 }
   0x2   :  { %5086 = sst [smem:[#allocation31_spill]] %s5061_s2 }
   0x3   :  { %5087 = sst [smem:[#allocation32_spill]] %s5062_s3 }
   0x4   :  { %5088 = sst [smem:[#allocation33_spill]] %s5063_s4 }
   0x5   :  { %5089 = sst [smem:[#allocation34_spill]] %s5064_s5 }
   0x6   :  { %5090 = sst [smem:[#allocation35_spill]] %s5065_s6 }
   0x7   :  { %5091 = sst [smem:[#allocation36_spill]] %s5067_s8 }
   0x8   :  { %5092 = sst [smem:[#allocation37_spill]] %s5069_s10 }
   0x9   :  { %5093 = sst [smem:[#allocation38_spill]] %s5071_s12 }
   0xa   :  { %5094 = sst [smem:[#allocation39_spill]] %s5072_s13 }
   0xb   :  { %5095 = sst [smem:[#allocation40_spill]] %s5073_s14 }
   0xc   :  { %5096 = sst [smem:[#allocation41_spill]] %s5074_s15 }
   0xd   :  { %5097 = sst [smem:[#allocation42_spill]] %s5075_s16 }
   0xe   :  { %21 = vsyncpa [#allocation3], 0 }
   0xf   :  { %23 = vsyncpa [#allocation3 + $0x1], 0 }
  0x10   :  { %24 = vsyncpa [#allocation6], 0 }
  0x11   :  { %26 = vsyncpa [#allocation6 + $0x1], 0 }
  0x12   :  { %27 = vsyncpa [#allocation9], 0 }
  0x13   :  { %28 = vsyncpa [#allocation12], 0 }
  0x14   :  { %29 = vsyncpa [#allocation15], 0 }
  0x15   :  { %30 = vsyncpa [#allocation18], 0 }
  0x16   :  { %31 = vsyncpa [#allocation4], 0 }
  0x17   :  { %33 = vsyncpa [#allocation4 + $0x1], 0  ;;  %s4552_s21 = smov 0   ;;  %s4554_s22 = smov 0  }
  0x18   :  { %s4556_s23 = smov 0   ;;  %s4558_s24 = smov 0  }
  0x19 LB: > { %5098 = sst [smem:[#allocation28_spill]] %s4437_s23  ;;  %s4576_s28 = sadd.s32 4294967295, %s4441_s24   ;;  %s4441_s24 = sphi %s4558_s24, %s5127_s24   ;;  %s4437_s23 = sphi %s4556_s23, %s5124_s23   ;;  %s4433_s22 = sphi %s4554_s22, %s5126_s22   ;;  %s4429_s21 = sphi %s4552_s21, %s5125_s21  }
  0x1a   : > { %s5099_s2 = sld [smem:[#allocation31_spill]]  ;;  %p3064_p0 = scmp.ge.s32.totalorder %s4441_s24, 1 }
  0x1b   : > { %p60_p1 = scmp.eq.s32.totalorder %s4576_s28, 0  ;;  %p416_p2 = scmp.lt.s32.totalorder %s4441_s24, 3 }
  0x1c   : > { %s4443_s30 = smov [#allocation7]   ;;  %s5101_s3 = sld [smem:[#allocation32_spill]] }
  0x1d   : > { %p4581_p3 = pnand %p3064_p0, %p416_p2  ;;  %s430_s0 = sshll.u32 %s4443_s30, 4  ;;  %s431_s0 = int_to_ptr.vmem [resolvable:$true] %s430_s0 }
  0x1e   : > { %s4444_s25 = smov [#allocation8]   ;;  %s5103_s5 = sld [smem:[#allocation34_spill]] }
  0x1f   : > { %p3795_p5 = pneg %p4581_p3  ;;  %s442_s26 = sshll.u32 %s4444_s25, 4  ;;  %s443_s26 = int_to_ptr.vmem [resolvable:$true] %s442_s26 }
  0x20   : > { %s428_s27 = sshll.u32 %s5099_s2, 4  ;;  %s4445_s17 = smov [#allocation11]   ;;  %s429_s27 = int_to_ptr.hbm [resolvable:$true] %s428_s27 }
  0x21   : > { %p4593_p6 = pnand %p3795_p5, %p60_p1  ;;  %s467_s18 = sshll.u32 %s4445_s17, 4  ;;  %s468_s18 = int_to_ptr.vmem [resolvable:$true] %s467_s18 }
  0x22   : > { %s440_s19 = sshll.u32 %s5101_s3, 4  ;;  %s5104_s8 = sld [smem:[#allocation36_spill]]  ;;  %s441_s19 = int_to_ptr.hbm [resolvable:$true] %s440_s19 }
  0x23   : > { %3798 = dma.hbm_to_vmem [thread:$0]  (!%p4593_p6), %s429_s27, 16, %s431_s0, [#allocation6]  }
  0x24   : > { %s465_s16 = sshll.u32 %s5103_s5, 4  ;;  %s4446_s13 = smov 48   ;;  %s466_s16 = int_to_ptr.hbm [resolvable:$true] %s465_s16 }
  0x25   : > { %3801 = dma.hbm_to_vmem [thread:$0]  (!%p4593_p6), %s441_s19, 16, %s443_s26, [#allocation9]  }
  0x26   : > { %s4447_s25 = smov 3   ;;  %s4448_s2 = smov [#allocation14]  }
  0x27   : > { %3807 = dma.hbm_to_vmem [thread:$0]  (!%p4593_p6), %s466_s16, 96, %s468_s18, [#allocation12], %s4446_s13, %s4446_s13, %s4447_s25  }
  0x28   : > { %s496_s14 = sshll.u32 %s5104_s8, 4  ;;  %s498_s30 = sshll.u32 %s4448_s2, 4  ;;  %s497_s14 = int_to_ptr.hbm [resolvable:$true] %s496_s14  ;;  %s499_s30 = int_to_ptr.vmem [resolvable:$true] %s498_s30 }
  0x29   : > { %s4449_s5 = smov 16   ;;  %s4450_s27 = smov 1  }
  0x2a   : > { %3813 = dma.hbm_to_vmem [thread:$0]  (!%p4593_p6), %s497_s14, 32, %s499_s30, [#allocation15], %s4449_s5, %s4449_s5, %s4450_s27  }
  0x2b   : > { %s5105_s4 = sld [smem:[#allocation33_spill]]  ;;  %s4451_s3 = smov [#allocation10]  }
  0x2c   : > { %s453_s15 = sshll.u32 %s4451_s3, 4  ;;  %s5106_s6 = sld [smem:[#allocation35_spill]]  ;;  %s454_s15 = int_to_ptr.vmem [resolvable:$true] %s453_s15 }
  0x2d   : > { %s4452_s18 = smov 192   ;;  %s4453_s25 = smov 12  }
  0x2e   : > { %s4454_s5 = smov [#allocation13]   ;;  %s4455_s2 = smov 64  }
  0x2f   : > { %s481_s14 = sshll.u32 %s4454_s5, 4  ;;  %s4456_s30 = smov 4   ;;  %s482_s14 = int_to_ptr.vmem [resolvable:$true] %s481_s14 }
  0x30   : > { %s5107_s10 = sld [smem:[#allocation37_spill]]  ;;  %s4636_s27 = sadd.s32 1, %s4441_s24  }
  0x31   : > { %s451_s26 = sshll.u32 %s5105_s4, 4  ;;  %s5108_s12 = sld [smem:[#allocation38_spill]]  ;;  %s452_s26 = int_to_ptr.hbm [resolvable:$true] %s451_s26 }
  0x32   : > { %s479_s16 = sshll.u32 %s5106_s6, 4  ;;  %s43_s0 = ssub.s32 %s4441_s24, %s4636_s27  ;;  %s480_s16 = int_to_ptr.hbm [resolvable:$true] %s479_s16 }
  0x33   : > { %3804 = dma.hbm_to_vmem [thread:$0]  (!%p4593_p6), %s452_s26, 6144, %s454_s15, [#allocation9], %s4452_s18, %s4452_s18, %s4453_s25  }
  0x34   : > { %3810 = dma.hbm_to_vmem [thread:$0]  (!%p4593_p6), %s480_s16, 2048, %s482_s14, [#allocation12], %s4455_s2, %s4455_s2, %s4456_s30  }
  0x35   : > { %s4457_s26 = smov [#allocation16]   ;;  %s5081_s16 = smov 128  }
  0x36   : > { %s513_s19 = sshll.u32 %s5107_s10, 4  ;;  %s515_s3 = sshll.u32 %s4457_s26, 4  ;;  %s514_s19 = int_to_ptr.hbm [resolvable:$true] %s513_s19  ;;  %s516_s3 = int_to_ptr.vmem [resolvable:$true] %s515_s3 }
  0x37   : > { %s530_s13 = sshll.u32 %s5108_s12, 4  ;;  %s5082_s18 = smov 8   ;;  %s531_s13 = int_to_ptr.hbm [resolvable:$true] %s530_s13 }
  0x38   : > { %3816 = dma.hbm_to_vmem [thread:$0]  (!%p4593_p6), %s514_s19, 4096, %s516_s3, [#allocation15], %s5081_s16, %s5081_s16, %s5082_s18  }
  0x39   : > { %s4460_s25 = smov [#allocation17]   ;;  %s3063_s14 = sadd.s32 4294967294, %s4441_s24  }
  0x3a   : > { %s532_s5 = sshll.u32 %s4460_s25, 4  ;;  %s46_s26 = sadd.s32 1, %s4437_s23  ;;  %s533_s5 = int_to_ptr.vmem [resolvable:$true] %s532_s5 }
  0x3b   : > { %3819 = dma.hbm_to_vmem [thread:$0]  (!%p4593_p6), %s531_s13, 4096, %s533_s5, [#allocation18], %s4455_s2, %s4455_s2, %s4456_s30  }
  0x3c   : > { %p44_p7 = scmp.eq.s32.totalorder %s43_s0, 0  ;;  %p53_p8 = scmp.ne.s32.totalorder %s4437_s23, %s4433_s22 }
  0x3d   : > { %p54_p9 = scmp.eq.s32.totalorder %s4441_s24, 0  ;;  %p59_p10 = scmp.ne.s32.totalorder %s4433_s22, %s4429_s21 }
  0x3e   : > { %s4647_s19 = scalar_select %p44_p7, %s4437_s23, %s46_s26  }
  0x3f   : > { %p4649_p11 = por %p54_p9, %p53_p8  ;;  %p4655_p12 = por %p60_p1, %p59_p10 }
  0x40   : > { %5109 = sst [smem:[#allocation29_spill]] %s4647_s19  ;;  %p403_p13 = scmp.eq.s32.totalorder %s4576_s28, 1 }
  0x41   : > { %p409_p0 = scmp.eq.s32.totalorder %s3063_s14, 1  ;;  %p3839_p2 = scmp.lt.s32.totalorder %s4441_s24, 2 }
  0x42   : > { %s4662_s2 = sand.u32 1, %s4437_s23   ;;  %p4664_p5 = por %p403_p13, %p53_p8 }
  0x43   : > { %p4668_p6 = por %p409_p0, %p59_p10  ;;  %s3074_s17 = sshll.u32 %s4662_s2, 4 }
  0x44   : > { %s3627_s13 = sshll.u32 %s4441_s24, 4  ;;  %s5114_s0 = sld [smem:[#allocation30_spill]] }
  0x45   : > { %s559_s14 = scalar_lea.vmem [#allocation2], %s3074_s17  ;;  %p4679_p7 = pnand %p3839_p2, %p4649_p11 }
  0x46   : > { %s567_s16 = sshll.u32 %s559_s14, 4  ;;  %s577_s6 = sand.u32 1, %s4441_s24   ;;  %s568_s16 = int_to_ptr.vmem [resolvable:$true] %s567_s16 }
  0x47   : > { %s556_s8 = scalar_lea.sflag [#allocation3], %s4662_s2  ;;  %p4295_p9 = pneg %p4679_p7 }
  0x4a   : > { %s564_s26 = scalar_lea.hbm %s5114_s0, %s3627_s13  ;;  %s4298_s13 = scalar_lea.hbm %s5114_s0, 32 }
  0x4b   : > { %s565_s18 = sshll.u32 %s564_s26, 4  ;;  %s566_s18 = int_to_ptr.hbm [resolvable:$true] %s565_s18 }
  0x4c   : > { %s4291_s10 = sshra.s32 %s566_s18, 4  ;;  %s4292_s10 = int_to_ptr.hbm [resolvable:$true] %s4291_s10 }
  0x4d   : > { %s4293_s12 = scalar_lea.hbm %s4292_s10, 16  ;;  %p4299_p11 = scmp.lt.s32.totalorder %s4292_s10, %s5114_s0 }
  0x4e   : > { %p4294_p8 = scmp.ne.s32.totalorder %s4292_s10, %s4293_s12  ;;  %p4300_p0 = scmp.lt.s32.totalorder %s4298_s13, %s4293_s12 }
  0x50   : > { %p4296_p10 = pnand %p4295_p9, %p4294_p8  ;;  %p4301_p2 = por %p4300_p0, %p4299_p11 }
  0x52   : > { %p4297_p13 = pneg %p4296_p10 }
  0x54   : > { %p4302_p4 = pnand %p4301_p2, %p4297_p13 }
  0x56   : > { %4305 = shalt.err (!%p4302_p4)
}
  0x57   : > { %s5116_s26 = smov 8   ;;  %s5117_s14 = smov 128  }
  0x58   : > { %3823 = dma.hbm_to_vmem [thread:$0]  (!%p4679_p7), %s566_s18, 256, %s568_s16, %s556_s8, %s5117_s14, %s5117_s14, %s5116_s26  }
  0x59   : > { %s583_s3 = scalar_lea.hbm %s5060_s1, %s4441_s24  ;;  %s580_s23 = scalar_lea.vmem [#allocation5], %s4662_s2 }
  0x5a   : > { %s587_s25 = sshll.u32 %s580_s23, 4  ;;  %s585_s10 = sshll.u32 %s583_s3, 4  ;;  %s588_s25 = int_to_ptr.vmem [resolvable:$true] %s587_s25  ;;  %s586_s10 = int_to_ptr.hbm [resolvable:$true] %s585_s10 }
  0x5b   : > { %s578_s12 = scalar_lea.sflag [#allocation6], %s577_s6  ;;  %s4321_s13 = sshra.s32 %s586_s10, 4  ;;  %s4322_s13 = int_to_ptr.hbm [resolvable:$true] %s4321_s13 }
  0x5c   : > { %s4323_s5 = scalar_lea.hbm %s4322_s13, 1  ;;  %s4328_s16 = scalar_lea.hbm %s5060_s1, 2 }
  0x5d   : > { %p4324_p4 = scmp.ne.s32.totalorder %s4322_s13, %s4323_s5  ;;  %p4329_p13 = scmp.lt.s32.totalorder %s4322_s13, %s5060_s1 }
  0x5e   : > { %p4330_p11 = scmp.lt.s32.totalorder %s4328_s16, %s4323_s5 }
  0x5f   : > { %p4326_p8 = pnand %p4324_p4, %p4295_p9 }
  0x60   : > { %p4331_p0 = por %p4330_p11, %p4329_p13 }
  0x61   : > { %p4327_p10 = pneg %p4326_p8 }
  0x63   : > { %p4332_p2 = pnand %p4331_p0, %p4327_p10 }
  0x65   : > { %4335 = shalt.err (!%p4332_p2)
}
  0x66   : > { %3826 = dma.hbm_to_vmem [thread:$0]  (!%p4679_p7), %s586_s10, 16, %s588_s25, %s578_s12  }
  0x67   : > { %596 = sbr.rel (%p4581_p3) target bundleno = 4547 (0x11c3), region = 84  ;;  %s4720_s6 = sand.u32 (!%p4581_p3), 1, %s4433_s22  }
  0x68   : > { %s3078_s23 = sshll.u32 (!%p4581_p3), %s4720_s6, 4  ;;  %s599_s2 = scalar_lea.sflag (!%p4581_p3), [#allocation3], %s4720_s6 }
  0x69   : > { %s602_s0 = scalar_lea.vmem (!%p4581_p3), [#allocation2], %s3078_s23 }
  0x6c   : > { %4396 = dma.done.wait (%p4655_p12), %s599_s2, 256  }
  0x6d   : > { %4398 = vsyncadd (%p4655_p12), %s599_s2, 4294967040  ;;  %s608_s4 = sand.u32 1, %s4576_s28   ;;  %s611_s26 = scalar_lea.vmem [#allocation5], %s4720_s6 }
  0x6e   : > { %s609_s29 = scalar_lea.sflag [#allocation6], %s608_s4 }
  0x6f   : > { %4400 = dma.done.wait (%p4655_p12), %s609_s29, 16  }
  0x70   : > { %4402 = vsyncadd (%p4655_p12), %s609_s29, 4294967280 }
  0x71   : > { %4404 = dma.done.wait (%p60_p1), [#allocation6], 16  }
  0x72   : > { %4406 = vsyncadd (%p60_p1), [#allocation6], 4294967280 }
  0x73   : > { %4408 = dma.done.wait (%p60_p1), [#allocation9], 6160  }
  0x74   : > { %4410 = vsyncadd (%p60_p1), [#allocation9], 4294961136 }
  0x75   : > { %4412 = dma.done.wait (%p60_p1), [#allocation12], 2144  }
  0x76   : > { %4414 = vsyncadd (%p60_p1), [#allocation12], 4294965152 }
  0x77   : > { %4416 = dma.done.wait (%p60_p1), [#allocation15], 4128  }
  0x78   : > { %4418 = vsyncadd (%p60_p1), [#allocation15], 4294963168 }
  0x79   : > { %4420 = dma.done.wait (%p60_p1), [#allocation18], 4096  }
  0x7a   : > { %4422 = vsyncadd (%p60_p1), [#allocation18], 4294963200  ;;  %v706_v0 = vld [vmem:[%s602_s0] sm:$0xff]  ;;  %v707_v1 = vld [vmem:[%s602_s0 + $0x8] sm:$0xff]  ;;  %v4461_v2 = vmov 128.0   ;;  %vm984_vm7 = vcmask 261120  }
  0x7b   : > { %710 = vadd.xlane.f32.xlu0 %v706_v0  ;;  %3949 = vrcp.f32 %v4461_v2  ;;  %v3174_v17 = vld [vmem:[#allocation10 + $0xa8] sm:$0xf]  ;;  %v3650_v18 = vld [vmem:[#allocation10 + $0xb0] sm:$0xf0]  ;;  %v3649_v19 = vld [vmem:[#allocation10 + $0xac] sm:$0xf] }
  0x7c   : > { %v3175_v20 = vor.u32 %v3650_v18, %v3174_v17  ;;  %v3176_v21 = vld [vmem:[#allocation10 + $0xb4] sm:$0xf0]  ;;  %v3182_v22 = vld [vmem:[#allocation10 + $0xb0] sm:$0xf]  ;;  %v3651_v23 = vld [vmem:[#allocation10 + $0xb8] sm:$0xf0] }
  0x7d   : > { %v3179_v24 = vor.u32 %v3649_v19, %v3176_v21  ;;  %v3183_v25 = vor.u32 %v3651_v23, %v3182_v22  ;;  %v3162_v26 = vld [vmem:[#allocation10 + $0x90] sm:$0xf]  ;;  %v3647_v27 = vld [vmem:[#allocation10 + $0x98] sm:$0xf0]  ;;  %v3646_v28 = vld [vmem:[#allocation10 + $0x94] sm:$0xf] }
  0x7e   : > { %939 = vmatpush.bf16.msra.mxu0 %v3175_v20  ;;  %v3163_v29 = vor.u32 %v3647_v27, %v3162_v26  ;;  %v3164_v30 = vld [vmem:[#allocation10 + $0x9c] sm:$0xf0]  ;;  %v3170_v31 = vld [vmem:[#allocation10 + $0x98] sm:$0xf]  ;;  %v3648_v32 = vld [vmem:[#allocation10 + $0xa0] sm:$0xf0] }
  0x7f   : > { %953 = vmatpush.bf16.msra.mxu1 %v3179_v24  ;;  %967 = vmatpush.bf16.msra.mxu2 %v3183_v25  ;;  %v3167_v33 = vor.u32 %v3646_v28, %v3164_v30  ;;  %v3171_v34 = vor.u32 %v3648_v32, %v3170_v31  ;;  %v3150_v35 = vld [vmem:[#allocation10 + $0x78] sm:$0xf]  ;;  %v3644_v36 = vld [vmem:[#allocation10 + $0x80] sm:$0xf0]  ;;  %v3643_v37 = vld [vmem:[#allocation10 + $0x7c] sm:$0xf] }
  0x80   : > { %v3151_v38 = vor.u32 %v3644_v36, %v3150_v35  ;;  %v3152_v39 = vld [vmem:[#allocation10 + $0x84] sm:$0xf0]  ;;  %v3158_v40 = vld [vmem:[#allocation10 + $0x80] sm:$0xf]  ;;  %v3645_v41 = vld [vmem:[#allocation10 + $0x88] sm:$0xf0] }
  0x81   : > { %v3950_v3 = vpop.eup %3949  ;;  %v3155_v42 = vor.u32 %v3643_v37, %v3152_v39  ;;  %v3159_v43 = vor.u32 %v3645_v41, %v3158_v40  ;;  %v3138_v44 = vld [vmem:[#allocation10 + $0x60] sm:$0xf]  ;;  %v3641_v45 = vld [vmem:[#allocation10 + $0x68] sm:$0xf0]  ;;  %v3640_v46 = vld [vmem:[#allocation10 + $0x64] sm:$0xf] }
  0x82   : > { %v715_v4 = vmul.f32 128.0, %v3950_v3  ;;  %vm719_vm0 = vweird.f32 %v3950_v3  ;;  %940 = vmatpush.bf16.msra.mxu0 %v3163_v29  ;;  %v3139_v47 = vor.u32 %v3641_v45, %v3138_v44  ;;  %v3140_v48 = vld [vmem:[#allocation10 + $0x6c] sm:$0xf0]  ;;  %v3146_v49 = vld [vmem:[#allocation10 + $0x68] sm:$0xf]  ;;  %s4462_s20 = smov 96  }
  0x83   : > { %712 = vadd.xlane.f32.xlu0 %v707_v1  ;;  %954 = vmatpush.bf16.msra.mxu1 %v3167_v33  ;;  %v3642_v50 = vld [vmem:[#allocation10 + $0x70] sm:$0xf0]  ;;  %v3143_v51 = vor.u32 %v3640_v46, %v3140_v48  ;;  %v3126_v53 = vld [vmem:[#allocation10 + $0x48] sm:$0xf]  ;;  %v3637_v55 = vld [vmem:[#allocation10 + $0x4c] sm:$0xf] }
  0x84   : > { %v716_v5 = vsub.f32 1.0, %v715_v4  ;;  %968 = vmatpush.bf16.msra.mxu2 %v3171_v34  ;;  %v3147_v52 = vor.u32 %v3642_v50, %v3146_v49  ;;  %v3638_v54 = vld [vmem:[#allocation10 + $0x50] sm:$0xf0]  ;;  %v3128_v57 = vld [vmem:[#allocation10 + $0x54] sm:$0xf0]  ;;  %vm1012_vm8 = vcmask 130048  }
  0x85   : > { %v3127_v56 = vor.u32 %v3638_v54, %v3126_v53  ;;  %v3134_v58 = vld [vmem:[#allocation10 + $0x50] sm:$0xf]  ;;  %v3639_v59 = vld [vmem:[#allocation10 + $0x58] sm:$0xf0]  ;;  %v3131_v60 = vor.u32 %v3637_v55, %v3128_v57  ;;  %v3116_v2 = vld [vmem:[#allocation10 + $0x3c] sm:$0xf0] }
  0x86   : > { %v717_v6 = vmul.f32 %v3950_v3, %v716_v5  ;;  %941 = vmatpush.bf16.msra.mxu0 %v3151_v38  ;;  %v3135_v61 = vor.u32 %v3639_v59, %v3134_v58  ;;  %v3114_v62 = vld [vmem:[#allocation10 + $0x30] sm:$0xf]  ;;  %v3635_v63 = vld [vmem:[#allocation10 + $0x38] sm:$0xf0]  ;;  %v3636_v4 = vld [vmem:[#allocation10 + $0x40] sm:$0xf0] }
  0x87   : > { %955 = vmatpush.bf16.msra.mxu1 %v3155_v42  ;;  %v3090_v19 = vld [vmem:[#allocation10] sm:$0xf]  ;;  %v3629_v20 = vld [vmem:[#allocation10 + $0x8] sm:$0xf0]  ;;  %v3628_v21 = vld [vmem:[#allocation10 + $0x4] sm:$0xf] }
  0x88   : > { %v718_v7 = vadd.f32 %v3950_v3, %v717_v6  ;;  %969 = vmatpush.bf16.msra.mxu2 %v3159_v43  ;;  %v3091_v23 = vor.u32 %v3629_v20, %v3090_v19  ;;  %v3092_v24 = vld [vmem:[#allocation10 + $0xc] sm:$0xf0]  ;;  %v3098_v25 = vld [vmem:[#allocation10 + $0x8] sm:$0xf]  ;;  %v3630_v26 = vld [vmem:[#allocation10 + $0x10] sm:$0xf0] }
  0x89   : > { %v3095_v28 = vor.u32 %v3628_v21, %v3092_v24  ;;  %v3099_v29 = vor.u32 %v3630_v26, %v3098_v25  ;;  %v803_v58 = vld [vmem:[#allocation11] sm:$0x7]  ;;  %s4463_s14 = smov 32   ;;  %s4464_s17 = smov 64   ;;  %vm1295_vm9 = vcmask 523264   ;;  %vm1298_vm10 = vcmask 785408  }
  0x8a   : > { %v4756_v8 = vsel %vm719_vm0, %v3950_v3, %v718_v7  ;;  %942 = vmatpush.bf16.msra.mxu0 %v3139_v47  ;;  %v3122_v3 = vld [vmem:[#allocation10 + $0x38] sm:$0xf]  ;;  %v3935_v47 = vld [vmem:[#allocation7] ss:$0 sm:$0xff]  ;;  %v805_v59 = vperm.slane %v803_v58, 0  ;;  %s5118_s18 = sld [smem:[#allocation39_spill]] }
  0x8b   : > { %956 = vmatpush.bf16.msra.mxu1 %v3143_v51  ;;  %v3123_v6 = vor.u32 %v3636_v4, %v3122_v3  ;;  %v3102_v7 = vld [vmem:[#allocation10 + $0x18] sm:$0xf]  ;;  %s5119_s0 = sld [smem:[#allocation40_spill]]  ;;  %s3756_s2 = sshll.u32 %s4576_s28, 4 }
  0x8c   : > { %970 = vmatpush.bf16.msra.mxu2 %v3147_v52  ;;  %v3936_v52 = vld [vmem:[#allocation8] ss:$0 sm:$0xff]  ;;  %s2880_s28 = scalar_lea.sflag [#allocation4], %s4720_s6 }
  0x8e   : > { %943 = vmatpush.bf16.msra.mxu0 %v3127_v56 }
  0x8f   : > { %957 = vmatpush.bf16.msra.mxu1 %v3131_v60  ;;  %v806_v60 = vperm.slane %v803_v58, 1 }
  0x90   : > { %971 = vmatpush.bf16.msra.mxu2 %v3135_v61 }
  0x94   : > { %972 = vmatpush.bf16.msra.mxu2 %v3123_v6 }
  0xee   : > { %v711_v9 = vpop.xlane.xlu0 %710 }
  0xef   : > { %v721_v10 = vmul.f32 %v4756_v8, %v711_v9  ;;  %v3632_v9 = vld [vmem:[#allocation10 + $0x20] sm:$0xf0] }
  0xf1   : > { %v4759_v11 = vsub.f32 %v706_v0, %v721_v10  ;;  %v3634_v0 = vld [vmem:[#allocation10 + $0x34] sm:$0xf]  ;;  %v3631_v10 = vld [vmem:[#allocation10 + $0x1c] sm:$0xf] }
  0xf2   : > { %v3119_v5 = vor.u32 %v3634_v0, %v3116_v2 }
  0xf3   : > { %v725_v12 = vmul.f32 %v4759_v11, %v4759_v11 }
  0xf4   : > { %958 = vmatpush.bf16.msra.mxu1 %v3119_v5  ;;  %v807_v5 = vperm.slane %v803_v58, 2 }
  0xf5   : > { %727 = vadd.xlane.f32.xlu1 %v725_v12  ;;  %v3103_v12 = vor.u32 %v3632_v9, %v3102_v7 }
  0xf6   : > { %v713_v13 = vpop.xlane.xlu0 %712 }
  0xf7   : > { %v722_v14 = vmul.f32 %v4756_v8, %v713_v13  ;;  %v3104_v13 = vld [vmem:[#allocation10 + $0x24] sm:$0xf0] }
  0xf8   : > { %v3107_v17 = vor.u32 %v3631_v10, %v3104_v13  ;;  %v767_v13 = vld [vmem:[%s611_s26] sm:$0x1]  ;;  %s5120_s26 = sld [smem:[#allocation41_spill]] }
  0xf9   : > { %v4764_v15 = vsub.f32 %v707_v1, %v722_v14  ;;  %v3115_v1 = vor.u32 %v3635_v63, %v3114_v62  ;;  %v3110_v14 = vld [vmem:[#allocation10 + $0x20] sm:$0xf] }
  0xfa   : > { %959 = vmatpush.bf16.msra.mxu1 %v3107_v17 }
  0xfb   : > { %v726_v16 = vmul.f32 %v4764_v15, %v4764_v15  ;;  %944 = vmatpush.bf16.msra.mxu0 %v3115_v1 }
  0xfd   : > { %729 = vadd.xlane.f32.xlu1 %v726_v16  ;;  %v3633_v16 = vld [vmem:[#allocation10 + $0x28] sm:$0xf0] }
  0xfe   : > { %v3111_v18 = vor.u32 %v3633_v16, %v3110_v14  ;;  %960 = vmatpush.bf16.msra.mxu1 %v3095_v28  ;;  %v768_v14 = vsub.f32 1.0, %v767_v13 }
  0xff   : > { %945 = vmatpush.bf16.msra.mxu0 %v3103_v12 }
 0x100   : > { %973 = vmatpush.bf16.msra.mxu2 %v3111_v18  ;;  %v769_v16 = vmul.f32 -1e+09, %v768_v14 }
 0x102   : > { %v4786_v17 = vperm.slane %v769_v16, 0 }
 0x103   : > { %946 = vmatpush.bf16.msra.mxu0 %v3091_v23 }
 0x104   : > { %974 = vmatpush.bf16.msra.mxu2 %v3099_v29 }
 0x168   : > { %v728_v22 = vpop.xlane.xlu1 %727 }
 0x169   : > { %v731_v27 = vmul.f32 %v728_v22, %v4756_v8 }
 0x16b   : > { %v733_v30 = vadd.f32 1e-12, %v731_v27 }
 0x16d   : > { %3951 = vrsqrt.f32 %v733_v30  ;;  %vm741_vm2 = vweird.f32 %v733_v30 }
 0x170   : > { %v730_v31 = vpop.xlane.xlu1 %729 }
 0x171   : > { %v732_v32 = vmul.f32 %v730_v31, %v4756_v8 }
 0x173   : > { %v3952_v33 = vpop.eup %3951  ;;  %v734_v34 = vadd.f32 1e-12, %v732_v32 }
 0x174   : > { %v736_v35 = vmul.f32 %v3952_v33, %v733_v30  ;;  %vm742_vm1 = vweird.f32 %v3952_v33 }
 0x175   : > { %3953 = vrsqrt.f32 %v734_v34  ;;  %vm743_vm3 = vmor %vm741_vm2, %vm742_vm1  ;;  %vm751_vm5 = vweird.f32 %v734_v34 }
 0x176   : > { %v737_v36 = vmul.f32 %v3952_v33, %v736_v35 }
 0x178   : > { %v738_v37 = vmul.f32 0.5, %v737_v36 }
 0x17a   : > { %v739_v38 = vsub.f32 1.5, %v738_v37 }
 0x17b   : > { %v3954_v39 = vpop.eup %3953 }
 0x17c   : > { %v740_v40 = vmul.f32 %v3952_v33, %v739_v38  ;;  %v746_v41 = vmul.f32 %v3954_v39, %v734_v34  ;;  %vm752_vm4 = vweird.f32 %v3954_v39 }
 0x17d   : > { %vm753_vm6 = vmor %vm751_vm5, %vm752_vm4 }
 0x17e   : > { %v747_v42 = vmul.f32 %v3954_v39, %v746_v41  ;;  %v744_v43 = vsel %vm743_vm3, %v3952_v33, %v740_v40 }
 0x17f   : > { %v755_v46 = vmul.f32 %v744_v43, %v4759_v11 }
 0x180   : > { %v748_v44 = vmul.f32 0.5, %v747_v42 }
 0x181   : > { %v760_v51 = vmul.f32 %v3935_v47, %v755_v46 }
 0x182   : > { %v749_v45 = vsub.f32 1.5, %v748_v44 }
 0x183   : > { %v4772_v54 = vadd.f32 %v3936_v52, %v760_v51 }
 0x184   : > { %v750_v48 = vmul.f32 %v3954_v39, %v749_v45 }
 0x186   : > { %v754_v49 = vsel %vm753_vm6, %v3954_v39, %v750_v48 }
 0x187   : > { %v756_v50 = vmul.f32 %v754_v49, %v4764_v15 }
 0x189   : > { %v761_v53 = vmul.f32 %v3935_v47, %v756_v50 }
 0x18b   : > { %v4774_v55 = vadd.f32 %v3936_v52, %v761_v53 }
 0x18d   : > { %v770_v56 = vpack.c.bf16 %v4774_v55, %v4772_v54 }
 0x18f   : > { %947 = vmatmul.bf16.vlgmr.msra.gmra.mxu0 %v770_v56  ;;  %961 = vmatmul.bf16.vlgmr.msra.gmra.mxu1 %v770_v56 }
 0x190   : > { %975 = vmatmul.bf16.vlgmr.msra.gmra.mxu2 %v770_v56 }
 0x20c   : > { %v948_v11 = vpop.f32.mrf.mxu0  ;;  %v962_v57 = vpop.f32.mrf.mxu1 }
 0x20d   : > { %v949_v63 = vadd.f32 %v948_v11, %v805_v59  ;;  %v963_v0 = vadd.f32 %v962_v57, %v806_v60 }
 0x213   : > { %v976_v61 = vpop.f32.mrf.mxu2 }
 0x214   : > { %v950_v15 = vpop.f32.mrf.mxu0  ;;  %v964_v62 = vpop.f32.mrf.mxu1  ;;  %v977_v9 = vadd.f32 %v976_v61, %v807_v5 }
 0x215   : > { %v951_v1 = vadd.f32 %v950_v15, %v805_v59  ;;  %v965_v2 = vadd.f32 %v964_v62, %v806_v60 }
 0x217   : > { %v981_v3 = vpack.c.bf16 %v951_v1, %v949_v63  ;;  %v982_v4 = vpack.c.bf16 %v965_v2, %v963_v0 }
 0x219   : > { %1054 = vrot.lane.b32.xlu0 %v981_v3, %s4462_s20  ;;  %v989_v6 = vsel %vm984_vm7, %v982_v4, 0 }
 0x21a   : > { %998 = vmatpush.bf16.xpose.msra.mxu3 %v989_v6 }
 0x21b   : > { %v978_v7 = vpop.f32.mrf.mxu2 }
 0x21c   : > { %v979_v10 = vadd.f32 %v978_v7, %v807_v5 }
 0x21e   : > { %v4780_v12 = vpack.c.bf16 %v979_v10, %v977_v9 }
 0x221   : > { %3184 = vmatmul.msk.bf16.vlgmr.msra.gmra.mxu3 %vm984_vm7, %v981_v3 }
 0x222   : > { %1046 = vmatpush.bf16.msrb.mxu3 %v4780_v12 }
 0x28b   : > { %v1055_v38 = vpop.permute.xlu0 %1054 }
 0x2a4   : > { %v1000_v18 = vpop.f32.mrf.mxu3 }
 0x2a5   : > { %v1005_v19 = vmul.f32 0.17677669, %v1000_v18 }
 0x2a7   : > { %v1010_v20 = vadd.f32 %v4786_v17, %v1005_v19 }
 0x2a9   : > { %v1013_v21 = vsel %vm1012_vm8, %v1010_v20, -inf }
 0x2aa   : > { %1014 = vmax.xlane.f32.xlu2 %v1013_v21 }
 0x2ac   : > { %v1002_v22 = vpop.f32.mrf.mxu3 }
 0x2ad   : > { %v1006_v23 = vmul.f32 0.17677669, %v1002_v22 }
 0x2af   : > { %v1011_v24 = vadd.f32 %v4786_v17, %v1006_v23 }
 0x2b1   : > { %v1016_v25 = vsel %vm1012_vm8, %v1011_v24, -inf }
 0x2b2   : > { %1017 = vmax.xlane.f32.xlu2 %v1016_v25 }
 0x2ca   : > { %1057 = vrot.lane.b32.xlu2 %v982_v4, %s4462_s20 }
 0x2d2   : > { %1200 = vrot.lane.b32.xlu2 %v982_v4, %s4463_s14 }
 0x2da   : > { %1198 = vrot.lane.b32.xlu2 %v981_v3, %s4463_s14 }
 0x31d   : > { %v1015_v26 = vpop.xlane.xlu2 %1014 }
 0x31e   : > { %v1019_v27 = vsub.f32 %v1010_v20, %v1015_v26 }
 0x320   : > { %v1021_v28 = vmul.f32 1.442695, %v1019_v27 }
 0x322   : > { %3955 = vpow2.f32 %v1021_v28 }
 0x325   : > { %v1018_v29 = vpop.xlane.xlu2 %1017 }
 0x326   : > { %v1020_v30 = vsub.f32 %v1011_v24, %v1018_v29 }
 0x328   : > { %v3956_v31 = vpop.eup %3955  ;;  %v1023_v32 = vmul.f32 1.442695, %v1020_v30 }
 0x329   : > { %v1025_v33 = vsel %vm1012_vm8, %v3956_v31, 0.0 }
 0x32a   : > { %3957 = vpow2.f32 %v1023_v32  ;;  %1026 = vadd.xlane.f32.xlu0 %v1025_v33 }
 0x32d   : > { %v1058_v34 = vpop.permute.xlu2 %1057 }
 0x32e   : > { %v1063_v35 = vsel %vm984_vm7, %v1058_v34, 0 }
 0x32f   : > { %1072 = vmatpush.bf16.xpose.msra.mxu3 %v1063_v35 }
 0x330   : > { %v3958_v36 = vpop.eup %3957 }
 0x331   : > { %v1028_v37 = vsel %vm1012_vm8, %v3958_v36, 0.0 }
 0x332   : > { %1029 = vadd.xlane.f32.xlu1 %v1028_v37 }
 0x335   : > { %v1201_v45 = vpop.permute.xlu2 %1200 }
 0x336   : > { %v1206_v47 = vsel %vm984_vm7, %v1201_v45, 0 }
 0x33d   : > { %v1199_v51 = vpop.permute.xlu2 %1198 }
 0x33e   : > { %1127 = vrot.lane.b32.xlu0 %v981_v3, %s4464_s17 }
 0x34b   : > { %1129 = vrot.lane.b32.xlu1 %v982_v4, %s4464_s17 }
 0x39d   : > { %v1027_v39 = vpop.xlane.xlu0 %1026 }
 0x39e   : > { %3959 = vrcp.f32 %v1027_v39 }
 0x3a4   : > { %v3960_v41 = vpop.eup %3959 }
 0x3a5   : > { %v1030_v40 = vpop.xlane.xlu1 %1029  ;;  %v1033_v43 = vmul.f32 %v3960_v41, %v3956_v31 }
 0x3a6   : > { %3961 = vrcp.f32 %v1030_v40 }
 0x3ac   : > { %v3962_v42 = vpop.eup %3961 }
 0x3ad   : > { %v1034_v44 = vmul.f32 %v3962_v42, %v3958_v36 }
 0x3af   : > { %v1035_v46 = vpack.c.bf16 %v1034_v44, %v1033_v43 }
 0x3b0   : > { %v1128_v50 = vpop.permute.xlu0 %1127 }
 0x3b1   : > { %3185 = vmatmul.msk.bf16.vlgmr.msrb.gmra.mxu3 %vm1012_vm8, %v1035_v46 }
 0x3b2   : > { %1215 = vmatpush.bf16.xpose.msrb.mxu3 %v1206_v47 }
 0x3bd   : > { %v1130_v48 = vpop.permute.xlu1 %1129 }
 0x3be   : > { %v1135_v49 = vsel %vm984_vm7, %v1130_v48, 0 }
 0x3bf   : > { %1144 = vmatpush.bf16.xpose.msrb.mxu2 %v1135_v49 }
 0x3c1   : > { %3186 = vmatmul.msk.bf16.vlgmr.msra.gmra.mxu3 %vm984_vm7, %v1055_v38 }
 0x3c6   : > { %3188 = vmatmul.msk.bf16.vlgmr.msrb.gmra.mxu2 %vm984_vm7, %v1128_v50 }
 0x3d1   : > { %3190 = vmatmul.msk.bf16.vlgmr.msrb.gmra.mxu3 %vm984_vm7, %v1199_v51 }
 0x434   : > { %v4806_v52 = vpop.f32.mrf.mxu3 }
 0x43c   : > { %v4808_v53 = vpop.f32.mrf.mxu3 }
 0x444   : > { %v1074_v56 = vpop.f32.mrf.mxu3 }
 0x445   : > { %v1079_v11 = vmul.f32 0.17677669, %v1074_v56 }
 0x447   : > { %v1081_v57 = vadd.f32 %v1079_v11, %v4786_v17 }
 0x449   : > { %v1146_v58 = vpop.f32.mrf.mxu2  ;;  %v1083_v59 = vsel %vm1012_vm8, %v1081_v57, -inf }
 0x44a   : > { %v1151_v60 = vmul.f32 0.17677669, %v1146_v58  ;;  %1084 = vmax.xlane.f32.xlu1 %v1083_v59 }
 0x44c   : > { %v1076_v61 = vpop.f32.mrf.mxu3  ;;  %v1153_v15 = vadd.f32 %v1151_v60, %v4786_v17 }
 0x44d   : > { %v1080_v62 = vmul.f32 0.17677669, %v1076_v61 }
 0x44e   : > { %v1155_v63 = vsel %vm1012_vm8, %v1153_v15, -inf }
 0x44f   : > { %1156 = vmax.xlane.f32.xlu2 %v1155_v63  ;;  %v1082_v0 = vadd.f32 %v1080_v62, %v4786_v17 }
 0x451   : > { %v1148_v1 = vpop.f32.mrf.mxu2  ;;  %v1086_v2 = vsel %vm1012_vm8, %v1082_v0, -inf }
 0x452   : > { %v1152_v3 = vmul.f32 0.17677669, %v1148_v1  ;;  %1087 = vmax.xlane.f32.xlu0 %v1086_v2 }
 0x454   : > { %v1217_v4 = vpop.f32.mrf.mxu3  ;;  %v1154_v5 = vadd.f32 %v1152_v3, %v4786_v17 }
 0x455   : > { %v1222_v6 = vmul.f32 0.17677669, %v1217_v4 }
 0x456   : > { %v1158_v7 = vsel %vm1012_vm8, %v1154_v5, -inf }
 0x457   : > { %1159 = vmax.xlane.f32.xlu1 %v1158_v7  ;;  %v1224_v9 = vadd.f32 %v1222_v6, %v4786_v17 }
 0x459   : > { %v1226_v10 = vsel %vm1012_vm8, %v1224_v9, -inf }
 0x45a   : > { %1227 = vmax.xlane.f32.xlu0 %v1226_v10 }
 0x45c   : > { %v1219_v13 = vpop.f32.mrf.mxu3 }
 0x45d   : > { %v1223_v14 = vmul.f32 0.17677669, %v1219_v13 }
 0x45f   : > { %v1225_v16 = vadd.f32 %v1223_v14, %v4786_v17  ;;  %v3659_v14 = vld [vmem:[#allocation13 + $0x38] sm:$0xff] }
 0x460   : > { %1370 = vmatpush.bf16.msrb.mxu1 %v3659_v14 }
 0x461   : > { %v1229_v18 = vsel %vm1012_vm8, %v1225_v16, -inf }
 0x462   : > { %1230 = vmax.xlane.f32.xlu2 %v1229_v18 }
 0x47a   : > { %1107 = vrot.lane.b32.xlu2 %v4780_v12, %s4462_s20 }
 0x4bd   : > { %v1085_v19 = vpop.xlane.xlu1 %1084 }
 0x4be   : > { %v1089_v22 = vsub.f32 %v1081_v57, %v1085_v19  ;;  %v3657_v19 = vld [vmem:[#allocation13 + $0x28] sm:$0xff] }
 0x4c0   : > { %v1091_v25 = vmul.f32 1.442695, %v1089_v22 }
 0x4c2   : > { %v1157_v20 = vpop.xlane.xlu2 %1156 }
 0x4c3   : > { %v1161_v21 = vsub.f32 %v1153_v15, %v1157_v20 }
 0x4c5   : > { %v1163_v23 = vmul.f32 1.442695, %v1161_v21  ;;  %v1088_v24 = vpop.xlane.xlu0 %1087 }
 0x4c6   : > { %v1090_v28 = vsub.f32 %v1082_v0, %v1088_v24 }
 0x4c7   : > { %3963 = vpow2.f32 %v1163_v23 }
 0x4c8   : > { %3965 = vpow2.f32 %v1091_v25  ;;  %v1093_v34 = vmul.f32 1.442695, %v1090_v28  ;;  %v3655_v28 = vld [vmem:[#allocation13 + $0x18] sm:$0xff] }
 0x4ca   : > { %v1160_v26 = vpop.xlane.xlu1 %1159 }
 0x4cb   : > { %v1162_v27 = vsub.f32 %v1154_v5, %v1160_v26 }
 0x4cd   : > { %v3964_v29 = vpop.eup %3963  ;;  %v1165_v30 = vmul.f32 1.442695, %v1162_v27  ;;  %v1228_v31 = vpop.xlane.xlu0 %1227  ;;  %v3656_v27 = vld [vmem:[#allocation13 + $0x20] sm:$0xff] }
 0x4ce   : > { %v1232_v32 = vsub.f32 %v1224_v9, %v1228_v31  ;;  %v1167_v33 = vsel %vm1012_vm8, %v3964_v29, 0.0  ;;  %v3966_v36 = vpop.eup %3965  ;;  %v3652_v31 = vld [vmem:[#allocation13] sm:$0xff] }
 0x4cf   : > { %3967 = vpow2.f32 %v1165_v30  ;;  %1168 = vadd.xlane.f32.xlu1 %v1167_v33  ;;  %v1095_v41 = vsel %vm1012_vm8, %v3966_v36, 0.0  ;;  %v3653_v30 = vld [vmem:[#allocation13 + $0x8] sm:$0xff] }
 0x4d0   : > { %v1234_v35 = vmul.f32 1.442695, %v1232_v32  ;;  %3969 = vpow2.f32 %v1093_v34 }
 0x4d2   : > { %3971 = vpow2.f32 %v1234_v35 }
 0x4d5   : > { %v3968_v37 = vpop.eup %3967  ;;  %v1231_v38 = vpop.xlane.xlu2 %1230 }
 0x4d6   : > { %v1233_v39 = vsub.f32 %v1225_v16, %v1231_v38  ;;  %v1170_v40 = vsel %vm1012_vm8, %v3968_v37, 0.0  ;;  %v3970_v43 = vpop.eup %3969  ;;  %v3658_v16 = vld [vmem:[#allocation13 + $0x30] sm:$0xff] }
 0x4d7   : > { %1171 = vadd.xlane.f32.xlu0 %v1170_v40  ;;  %1096 = vadd.xlane.f32.xlu1 %v1095_v41  ;;  %v1098_v46 = vsel %vm1012_vm8, %v3970_v43, 0.0 }
 0x4d8   : > { %v1236_v42 = vmul.f32 1.442695, %v1233_v39  ;;  %v3972_v44 = vpop.eup %3971  ;;  %1371 = vmatpush.bf16.msrb.mxu1 %v3658_v16  ;;  %v3268_v16 = vld [vmem:[#allocation16 + $0x58] sm:$0xf0] }
 0x4d9   : > { %v1238_v47 = vsel %vm1012_vm8, %v3972_v44, 0.0 }
 0x4da   : > { %3973 = vpow2.f32 %v1236_v42 }
 0x4dc   : > { %1372 = vmatpush.bf16.msrb.mxu1 %v3657_v19  ;;  %v3258_v19 = vld [vmem:[#allocation16 + $0x40] sm:$0xf] }
 0x4dd   : > { %v1108_v45 = vpop.permute.xlu2 %1107 }
 0x4de   : > { %1120 = vmatpush.bf16.msrb.mxu0 %v1108_v45 }
 0x4df   : > { %1099 = vadd.xlane.f32.xlu0 %v1098_v46  ;;  %1239 = vadd.xlane.f32.xlu1 %v1238_v47 }
 0x4e0   : > { %v3974_v48 = vpop.eup %3973  ;;  %1373 = vmatpush.bf16.msrb.mxu1 %v3656_v27  ;;  %v3666_v27 = vld [vmem:[#allocation16 + $0x34] sm:$0xf] }
 0x4e1   : > { %v1241_v49 = vsel %vm1012_vm8, %v3974_v48, 0.0 }
 0x4e4   : > { %1374 = vmatpush.bf16.msrb.mxu1 %v3655_v28 }
 0x4e7   : > { %1242 = vadd.xlane.f32.xlu0 %v1241_v49 }
 0x4f8   : > { %1178 = vrot.lane.b32.xlu1 %v4780_v12, %s4464_s17 }
 0x4fb   : > { %1249 = vrot.lane.b32.xlu0 %v4780_v12, %s4463_s14 }
 0x542   : > { %v1169_v50 = vpop.xlane.xlu1 %1168 }
 0x54a   : > { %v1172_v51 = vpop.xlane.xlu0 %1171  ;;  %v1097_v56 = vpop.xlane.xlu1 %1096 }
 0x54b   : > { %3975 = vrcp.f32 %v1097_v56 }
 0x551   : > { %v3976_v57 = vpop.eup %3975 }
 0x552   : > { %v1100_v11 = vpop.xlane.xlu0 %1099  ;;  %v1103_v59 = vmul.f32 %v3976_v57, %v3966_v36  ;;  %v1240_v62 = vpop.xlane.xlu1 %1239 }
 0x553   : > { %3977 = vrcp.f32 %v1100_v11 }
 0x554   : > { %3979 = vrcp.f32 %v1172_v51 }
 0x555   : > { %3981 = vrcp.f32 %v1169_v50 }
 0x559   : > { %v3978_v58 = vpop.eup %3977 }
 0x55a   : > { %v1104_v60 = vmul.f32 %v3978_v58, %v3970_v43  ;;  %v1243_v15 = vpop.xlane.xlu0 %1242  ;;  %v3980_v12 = vpop.eup %3979 }
 0x55b   : > { %3983 = vrcp.f32 %v1243_v15  ;;  %v3982_v63 = vpop.eup %3981  ;;  %v1176_v1 = vmul.f32 %v3980_v12, %v3968_v37  ;;  %v3674_v12 = vld [vmem:[#allocation16 + $0x74] sm:$0xf] }
 0x55c   : > { %v1105_v61 = vpack.c.bf16 %v1104_v60, %v1103_v59  ;;  %3985 = vrcp.f32 %v1240_v62  ;;  %v1175_v3 = vmul.f32 %v3982_v63, %v3964_v29  ;;  %v3654_v29 = vld [vmem:[#allocation13 + $0x10] sm:$0xff]  ;;  %v3675_v62 = vld [vmem:[#allocation16 + $0x74] sm:$0xf0] }
 0x55d   : > { %1375 = vmatpush.bf16.msrb.mxu1 %v3654_v29  ;;  %v3252_v29 = vld [vmem:[#allocation16 + $0x38] sm:$0xf0] }
 0x55e   : > { %3187 = vmatmul.msk.bf16.vlgmr.msrb.gmra.mxu0 %vm1012_vm8, %v1105_v61  ;;  %v1177_v6 = vpack.c.bf16 %v1176_v1, %v1175_v3  ;;  %v3673_v3 = vld [vmem:[#allocation16 + $0x64] sm:$0xf0] }
 0x561   : > { %v3984_v0 = vpop.eup %3983  ;;  %1376 = vmatpush.bf16.msrb.mxu1 %v3653_v30  ;;  %v3255_v30 = vor.u32 %v3666_v27, %v3252_v29  ;;  %v3686_v27 = vld [vmem:[#allocation17 + $0x50] sm:$0xff]  ;;  %v3677_v29 = vld [vmem:[#allocation17 + $0x8] sm:$0xff] }
 0x562   : > { %v3986_v2 = vpop.eup %3985  ;;  %v1247_v5 = vmul.f32 %v3984_v0, %v3974_v48  ;;  %v3284_v0 = vld [vmem:[#allocation16 + $0x78] sm:$0xf0] }
 0x563   : > { %v1246_v7 = vmul.f32 %v3986_v2, %v3972_v44  ;;  %v3287_v1 = vor.u32 %v3674_v12, %v3284_v0  ;;  %v3274_v2 = vld [vmem:[#allocation16 + $0x60] sm:$0xf] }
 0x565   : > { %v1248_v10 = vpack.c.bf16 %v1247_v5, %v1246_v7  ;;  %1377 = vmatpush.bf16.msrb.mxu1 %v3652_v31  ;;  %1555 = vmatpush.bf16.msra.mxu3 %v3287_v1  ;;  %v3275_v5 = vor.u32 %v3673_v3, %v3274_v2  ;;  %v3242_v31 = vld [vmem:[#allocation16 + $0x20] sm:$0xf]  ;;  %v3938_v3 = vld [vmem:[#allocation14] ss:$0 sm:$0xff] }
 0x56a   : > { %v1179_v4 = vpop.permute.xlu1 %1178 }
 0x56b   : > { %1191 = vmatpush.bf16.msra.mxu2 %v1179_v4  ;;  %v3672_v4 = vld [vmem:[#allocation16 + $0x64] sm:$0xf] }
 0x56d   : > { %v1250_v9 = vpop.permute.xlu0 %1249 }
 0x56e   : > { %3189 = vmatmul.msk.bf16.vlgmr.msra.gmra.mxu2 %vm1012_vm8, %v1177_v6  ;;  %1262 = vmatpush.bf16.msra.mxu0 %v1250_v9  ;;  %v3276_v6 = vld [vmem:[#allocation16 + $0x68] sm:$0xf0]  ;;  %v3266_v9 = vld [vmem:[#allocation16 + $0x50] sm:$0xf] }
 0x56f   : > { %v3279_v7 = vor.u32 %v3672_v4, %v3276_v6 }
 0x571   : > { %3191 = vmatmul.msk.bf16.vlgmr.msra.gmra.mxu0 %vm1012_vm8, %v1248_v10  ;;  %1556 = vmatpush.bf16.msra.mxu3 %v3279_v7  ;;  %v3671_v10 = vld [vmem:[#allocation16 + $0x54] sm:$0xf0] }
 0x572   : > { %v3267_v14 = vor.u32 %v3671_v10, %v3266_v9  ;;  %v3939_v9 = vld [vmem:[%s5068_s9] ss:$0 sm:$0xff] }
 0x5db   : > { %v1122_v13 = vpop.f32.mrf.mxu0 }
 0x5e3   : > { %v1124_v20 = vpop.f32.mrf.mxu0 }
 0x5e4   : > { %v3910_v24 = vpack.i.bf16 %v1124_v20, %v1122_v13  ;;  %v3670_v13 = vld [vmem:[#allocation16 + $0x54] sm:$0xf]  ;;  %v3669_v20 = vld [vmem:[#allocation16 + $0x44] sm:$0xf0] }
 0x5ee   : > { %v1264_v23 = vpop.f32.mrf.mxu0 }
 0x5f1   : > { %v1193_v18 = vpop.f32.mrf.mxu2 }
 0x5f6   : > { %v1266_v25 = vpop.f32.mrf.mxu0 }
 0x5f7   : > { %v3915_v26 = vpack.i.bf16 %v1266_v25, %v1264_v23  ;;  %v3260_v23 = vld [vmem:[#allocation16 + $0x48] sm:$0xf0]  ;;  %v3250_v25 = vld [vmem:[#allocation16 + $0x30] sm:$0xf] }
 0x5f9   : > { %v1195_v21 = vpop.f32.mrf.mxu2 }
 0x5fa   : > { %v3905_v22 = vpack.i.bf16 %v1195_v21, %v1193_v18  ;;  %v3271_v18 = vor.u32 %v3670_v13, %v3268_v16  ;;  %v3668_v21 = vld [vmem:[#allocation16 + $0x44] sm:$0xf]  ;;  %v3683_v16 = vld [vmem:[#allocation17 + $0x38] sm:$0xff] }
 0x5fb   : > { %1739 = vmatpush.bf16.msrb.mxu0 %v3683_v16 }
 0x5fc   : > { %3906 = vrot.lane.b32.xlu2 %v3905_v22, %s4464_s17  ;;  %1557 = vmatpush.bf16.msra.mxu3 %v3271_v18  ;;  %v3259_v22 = vor.u32 %v3669_v20, %v3258_v19  ;;  %v3691_v18 = vld [vmem:[#allocation17 + $0x78] sm:$0xff]  ;;  %v3690_v19 = vld [vmem:[#allocation17 + $0x70] sm:$0xff]  ;;  %v3681_v20 = vld [vmem:[#allocation17 + $0x28] sm:$0xff] }
 0x5fd   : > { %1753 = vmatpush.bf16.msra.mxu1 %v3691_v18 }
 0x601   : > { %1754 = vmatpush.bf16.msra.mxu1 %v3690_v19 }
 0x604   : > { %3911 = vrot.lane.b32.xlu2 %v3910_v24, %s4463_s14  ;;  %v3263_v24 = vor.u32 %v3668_v21, %v3260_v23  ;;  %v3689_v21 = vld [vmem:[#allocation17 + $0x68] sm:$0xff]  ;;  %v3688_v23 = vld [vmem:[#allocation17 + $0x60] sm:$0xff] }
 0x605   : > { %1755 = vmatpush.bf16.msra.mxu1 %v3689_v21  ;;  %v3940_v21 = vld [vmem:[%s5118_s18] ss:$0 sm:$0xff] }
 0x606   : > { %1558 = vmatpush.bf16.msra.mxu3 %v3263_v24  ;;  %v3679_v24 = vld [vmem:[#allocation17 + $0x18] sm:$0xff] }
 0x609   : > { %1756 = vmatpush.bf16.msra.mxu1 %v3688_v23 }
 0x60a   : > { %1559 = vmatpush.bf16.msra.mxu3 %v3255_v30  ;;  %v3685_v30 = vld [vmem:[#allocation17 + $0x48] sm:$0xff] }
 0x60c   : > { %3916 = vrot.lane.b32.xlu2 %v3915_v26, %s4462_s20  ;;  %v3667_v26 = vld [vmem:[#allocation16 + $0x34] sm:$0xf0] }
 0x60d   : > { %v3251_v28 = vor.u32 %v3667_v26, %v3250_v25  ;;  %v3687_v25 = vld [vmem:[#allocation17 + $0x58] sm:$0xff]  ;;  %v3678_v26 = vld [vmem:[#allocation17 + $0x10] sm:$0xff] }
 0x60e   : > { %1757 = vmatpush.bf16.msra.mxu1 %v3687_v25 }
 0x612   : > { %1758 = vmatpush.bf16.msra.mxu1 %v3686_v27 }
 0x616   : > { %1759 = vmatpush.bf16.msra.mxu1 %v3685_v30 }
 0x656   : > { %v3907_v32 = vpop.permute.xlu2 %3906 }
 0x657   : > { %v3909_v38 = vunpack.i.h.bf16 %v3907_v32  ;;  %v3908_v39 = vunpack.i.l.bf16 %v3907_v32  ;;  %v3665_v32 = vld [vmem:[#allocation16 + $0x24] sm:$0xf0] }
 0x65e   : > { %v3912_v33 = vpop.permute.xlu2 %3911 }
 0x65f   : > { %v3914_v34 = vunpack.i.h.bf16 %v3912_v33  ;;  %v3913_v35 = vunpack.i.l.bf16 %v3912_v33  ;;  %v3664_v33 = vld [vmem:[#allocation16 + $0x24] sm:$0xf] }
 0x661   : > { %v1294_v36 = vsel %vm984_vm7, %v4808_v53, %v3914_v34  ;;  %v1293_v37 = vsel %vm984_vm7, %v4806_v52, %v3913_v35  ;;  %v3937_v52 = vld [vmem:[%s5066_s7] ss:$0 sm:$0xff]  ;;  %v3243_v34 = vor.u32 %v3665_v32, %v3242_v31  ;;  %v3244_v35 = vld [vmem:[#allocation16 + $0x28] sm:$0xf0] }
 0x662   : > { %v1296_v43 = vsel %vm1295_vm9, %v1293_v37, %v3908_v39  ;;  %v1297_v44 = vsel %vm1295_vm9, %v1294_v36, %v3909_v38  ;;  %v3247_v36 = vor.u32 %v3664_v33, %v3244_v35  ;;  %v3234_v37 = vld [vmem:[#allocation16 + $0x10] sm:$0xf]  ;;  %v3663_v38 = vld [vmem:[#allocation16 + $0x14] sm:$0xf0]  ;;  %v3662_v39 = vld [vmem:[#allocation16 + $0x14] sm:$0xf] }
 0x663   : > { %v3676_v35 = vld [vmem:[#allocation17] sm:$0xff] }
 0x664   : > { %1560 = vmatpush.bf16.msra.mxu3 %v3247_v36  ;;  %v3684_v36 = vld [vmem:[#allocation17 + $0x40] sm:$0xff] }
 0x665   : > { %1760 = vmatpush.bf16.msra.mxu1 %v3684_v36 }
 0x666   : > { %v3917_v40 = vpop.permute.xlu2 %3916 }
 0x667   : > { %v3919_v41 = vunpack.i.h.bf16 %v3917_v40  ;;  %v3918_v42 = vunpack.i.l.bf16 %v3917_v40  ;;  %v3235_v40 = vor.u32 %v3663_v38, %v3234_v37 }
 0x669   : > { %v1299_v45 = vsel %vm1298_vm10, %v1296_v43, %v3918_v42  ;;  %v1300_v46 = vsel %vm1298_vm10, %v1297_v44, %v3919_v41  ;;  %v3236_v41 = vld [vmem:[#allocation16 + $0x18] sm:$0xf0]  ;;  %v3226_v42 = vld [vmem:[#allocation16] sm:$0xf]  ;;  %v3661_v43 = vld [vmem:[#allocation16 + $0x4] sm:$0xf0] }
 0x66a   : > { %v1301_v47 = vpack.c.bf16 %v1300_v46, %v1299_v45  ;;  %v3239_v45 = vor.u32 %v3662_v39, %v3236_v41  ;;  %v3660_v46 = vld [vmem:[#allocation16 + $0x4] sm:$0xf] }
 0x66c   : > { %1378 = vmatmul.bf16.vlgmr.msrb.gmra.mxu1 %v1301_v47  ;;  %v3228_v47 = vld [vmem:[#allocation16 + $0x8] sm:$0xf0]  ;;  %1561 = vmatpush.bf16.msra.mxu3 %v3239_v45 }
 0x6e9   : > { %v1379_v53 = vpop.f32.mrf.mxu1 }
 0x6ea   : > { %v1380_v48 = vadd.f32 %v3937_v52, %v1379_v53  ;;  %v3227_v53 = vor.u32 %v3661_v43, %v3226_v42 }
 0x6ec   : > { %v1384_v49 = vadd.f32 %v1380_v48, %v4772_v54  ;;  %v3231_v48 = vor.u32 %v3660_v46, %v3228_v47 }
 0x6ee   : > { %1388 = vadd.xlane.f32.xlu0 %v1384_v49  ;;  %1562 = vmatpush.bf16.msra.mxu3 %v3231_v48 }
 0x6f1   : > { %v1381_v50 = vpop.f32.mrf.mxu1 }
 0x6f2   : > { %v1382_v51 = vadd.f32 %v3937_v52, %v1381_v50 }
 0x6f4   : > { %v1385_v56 = vadd.f32 %v1382_v51, %v4774_v55  ;;  %v3282_v55 = vld [vmem:[#allocation16 + $0x70] sm:$0xf] }
 0x6f5   : > { %v3283_v63 = vor.u32 %v3675_v62, %v3282_v55 }
 0x6f6   : > { %1390 = vadd.xlane.f32.xlu1 %v1385_v56 }
 0x6f7   : > { %1541 = vmatpush.bf16.msrb.mxu2 %v3283_v63 }
 0x6fb   : > { %1542 = vmatpush.bf16.msrb.mxu2 %v3275_v5 }
 0x6ff   : > { %1543 = vmatpush.bf16.msrb.mxu2 %v3267_v14 }
 0x703   : > { %1544 = vmatpush.bf16.msrb.mxu2 %v3259_v22  ;;  %v3680_v22 = vld [vmem:[#allocation17 + $0x20] sm:$0xff] }
 0x707   : > { %1545 = vmatpush.bf16.msrb.mxu2 %v3251_v28  ;;  %v1455_v28 = vld [vmem:[%s5070_s11] sm:$0x3] }
 0x708   : > { %v1457_v31 = vperm.slane %v1455_v28, 0  ;;  %v1458_v32 = vperm.slane %v1455_v28, 1 }
 0x70b   : > { %1546 = vmatpush.bf16.msrb.mxu2 %v3243_v34 }
 0x70f   : > { %1547 = vmatpush.bf16.msrb.mxu2 %v3235_v40 }
 0x713   : > { %1548 = vmatpush.bf16.msrb.mxu2 %v3227_v53 }
 0x761   : > { %v1389_v11 = vpop.xlane.xlu0 %1388 }
 0x762   : > { %v1392_v57 = vmul.f32 %v1389_v11, %v4756_v8 }
 0x764   : > { %v4854_v58 = vsub.f32 %v1384_v49, %v1392_v57 }
 0x766   : > { %v1396_v59 = vmul.f32 %v4854_v58, %v4854_v58 }
 0x768   : > { %1398 = vadd.xlane.f32.xlu2 %v1396_v59 }
 0x769   : > { %v1391_v60 = vpop.xlane.xlu1 %1390 }
 0x76a   : > { %v1393_v61 = vmul.f32 %v1391_v60, %v4756_v8 }
 0x76c   : > { %v4859_v15 = vsub.f32 %v1385_v56, %v1393_v61 }
 0x76e   : > { %v1397_v54 = vmul.f32 %v4859_v15, %v4859_v15 }
 0x770   : > { %1400 = vadd.xlane.f32.xlu0 %v1397_v54 }
 0x7db   : > { %v1399_v44 = vpop.xlane.xlu2 %1398 }
 0x7dc   : > { %v1402_v52 = vmul.f32 %v1399_v44, %v4756_v8 }
 0x7de   : > { %v1404_v49 = vadd.f32 1e-12, %v1402_v52 }
 0x7e0   : > { %3987 = vrsqrt.f32 %v1404_v49  ;;  %vm1412_vm12 = vweird.f32 %v1404_v49 }
 0x7e3   : > { %v1401_v50 = vpop.xlane.xlu0 %1400 }
 0x7e4   : > { %v1403_v51 = vmul.f32 %v1401_v50, %v4756_v8 }
 0x7e6   : > { %v3988_v56 = vpop.eup %3987  ;;  %v1405_v11 = vadd.f32 1e-12, %v1403_v51 }
 0x7e7   : > { %v1407_v57 = vmul.f32 %v3988_v56, %v1404_v49  ;;  %vm1413_vm11 = vweird.f32 %v3988_v56 }
 0x7e8   : > { %3989 = vrsqrt.f32 %v1405_v11  ;;  %vm1414_vm13 = vmor %vm1412_vm12, %vm1413_vm11  ;;  %vm1422_vm15 = vweird.f32 %v1405_v11 }
 0x7e9   : > { %v1408_v59 = vmul.f32 %v3988_v56, %v1407_v57 }
 0x7eb   : > { %v1409_v60 = vmul.f32 0.5, %v1408_v59 }
 0x7ed   : > { %v1410_v61 = vsub.f32 1.5, %v1409_v60 }
 0x7ee   : > { %v3990_v54 = vpop.eup %3989 }
 0x7ef   : > { %v1411_v55 = vmul.f32 %v3988_v56, %v1410_v61  ;;  %v1417_v62 = vmul.f32 %v3990_v54, %v1405_v11  ;;  %vm1423_vm14 = vweird.f32 %v3990_v54 }
 0x7f0   : > { %vm1424_vm0 = vmor %vm1422_vm15, %vm1423_vm14 }
 0x7f1   : > { %v1418_v12 = vmul.f32 %v3990_v54, %v1417_v62  ;;  %v1415_v63 = vsel %vm1414_vm13, %v3988_v56, %v1411_v55 }
 0x7f2   : > { %v1426_v2 = vmul.f32 %v1415_v63, %v4854_v58 }
 0x7f3   : > { %v1419_v0 = vmul.f32 0.5, %v1418_v12 }
 0x7f4   : > { %v1431_v7 = vmul.f32 %v3938_v3, %v1426_v2 }
 0x7f5   : > { %v1420_v1 = vsub.f32 1.5, %v1419_v0 }
 0x7f6   : > { %v4870_v13 = vadd.f32 %v3939_v9, %v1431_v7 }
 0x7f7   : > { %v1421_v4 = vmul.f32 %v3990_v54, %v1420_v1 }
 0x7f9   : > { %v1425_v5 = vsel %vm1424_vm0, %v3990_v54, %v1421_v4 }
 0x7fa   : > { %v1427_v6 = vmul.f32 %v1425_v5, %v4859_v15  ;;  %v3682_v15 = vld [vmem:[#allocation17 + $0x30] sm:$0xff] }
 0x7fb   : > { %1740 = vmatpush.bf16.msrb.mxu0 %v3682_v15 }
 0x7fc   : > { %v1432_v10 = vmul.f32 %v3938_v3, %v1427_v6 }
 0x7fe   : > { %v4872_v14 = vadd.f32 %v3939_v9, %v1432_v10 }
 0x7ff   : > { %1741 = vmatpush.bf16.msrb.mxu0 %v3681_v20 }
 0x800   : > { %v1438_v58 = vpack.c.bf16 %v4872_v14, %v4870_v13 }
 0x802   : > { %1549 = vmatmul.bf16.vlgmr.msrb.gmra.mxu2 %v1438_v58  ;;  %1563 = vmatmul.bf16.vlgmr.msra.gmra.mxu3 %v1438_v58 }
 0x803   : > { %1742 = vmatpush.bf16.msrb.mxu0 %v3680_v22 }
 0x807   : > { %1743 = vmatpush.bf16.msrb.mxu0 %v3679_v24 }
 0x80b   : > { %1744 = vmatpush.bf16.msrb.mxu0 %v3678_v26 }
 0x80f   : > { %1745 = vmatpush.bf16.msrb.mxu0 %v3677_v29 }
 0x813   : > { %1746 = vmatpush.bf16.msrb.mxu0 %v3676_v35 }
 0x885   : > { %v1550_v33 = vpop.f32.mrf.mxu2  ;;  %v1564_v34 = vpop.f32.mrf.mxu3 }
 0x886   : > { %v1551_v37 = vadd.f32 %v1550_v33, %v1457_v31  ;;  %v1565_v38 = vadd.f32 %v1564_v34, %v1458_v32 }
 0x888   : > { %v1569_v39 = vmul.f32 %v1551_v37, %v1551_v37  ;;  %v1570_v40 = vmul.f32 %v1565_v38, %v1565_v38 }
 0x88a   : > { %v1573_v41 = vmul.f32 %v1569_v39, %v1551_v37  ;;  %v1574_v42 = vmul.f32 %v1570_v40, %v1565_v38  ;;  %v3714_v39 = vld [vmem:[#allocation10 + $0x170] sm:$0xf0]  ;;  %v3713_v40 = vld [vmem:[#allocation10 + $0x16c] sm:$0xf] }
 0x88c   : > { %v1577_v43 = vmul.f32 0.044715, %v1573_v41  ;;  %v1578_v44 = vmul.f32 0.044715, %v1574_v42  ;;  %v3440_v42 = vld [vmem:[#allocation10 + $0x174] sm:$0xf0] }
 0x88d   : > { %v1552_v45 = vpop.f32.mrf.mxu2  ;;  %v1566_v46 = vpop.f32.mrf.mxu3 }
 0x88e   : > { %v1581_v47 = vadd.f32 %v1577_v43, %v1551_v37  ;;  %v1582_v52 = vadd.f32 %v1578_v44, %v1565_v38  ;;  %v1553_v53 = vadd.f32 %v1552_v45, %v1457_v31  ;;  %v1567_v48 = vadd.f32 %v1566_v46, %v1458_v32  ;;  %v3446_v43 = vld [vmem:[#allocation10 + $0x170] sm:$0xf]  ;;  %v3715_v44 = vld [vmem:[#allocation10 + $0x178] sm:$0xf0] }
 0x88f   : > { %v3443_v45 = vor.u32 %v3713_v40, %v3440_v42  ;;  %v3447_v46 = vor.u32 %v3715_v44, %v3446_v43  ;;  %v3354_v42 = vld [vmem:[#allocation10 + $0xc0] sm:$0xf]  ;;  %v3693_v43 = vld [vmem:[#allocation10 + $0xc8] sm:$0xf0]  ;;  %v3692_v44 = vld [vmem:[#allocation10 + $0xc4] sm:$0xf] }
 0x890   : > { %v1585_v49 = vmul.f32 0.7978846, %v1581_v47  ;;  %v1571_v50 = vmul.f32 %v1553_v53, %v1553_v53  ;;  %v1572_v51 = vmul.f32 %v1567_v48, %v1567_v48  ;;  %v1586_v56 = vmul.f32 0.7978846, %v1582_v52  ;;  %v3426_v47 = vld [vmem:[#allocation10 + $0x150] sm:$0xf] }
 0x891   : > { %2006 = vmatpush.bf16.msrb.mxu3 %v3443_v45  ;;  %2020 = vmatpush.bf16.msra.mxu0 %v3447_v46  ;;  %v3711_v52 = vld [vmem:[#allocation10 + $0x158] sm:$0xf0]  ;;  %v3355_v46 = vor.u32 %v3693_v43, %v3354_v42 }
 0x892   : > { %v1575_v11 = vmul.f32 %v1571_v50, %v1553_v53  ;;  %v1576_v57 = vmul.f32 %v1572_v51, %v1567_v48  ;;  %3991 = vtanh.f32 %v1585_v49  ;;  %v3428_v49 = vld [vmem:[#allocation10 + $0x15c] sm:$0xf0]  ;;  %v3434_v50 = vld [vmem:[#allocation10 + $0x158] sm:$0xf]  ;;  %v3712_v51 = vld [vmem:[#allocation10 + $0x160] sm:$0xf0] }
 0x893   : > { %3993 = vtanh.f32 %v1586_v56 }
 0x894   : > { %v1579_v59 = vmul.f32 0.044715, %v1575_v11  ;;  %v1580_v60 = vmul.f32 0.044715, %v1576_v57  ;;  %v3435_v11 = vor.u32 %v3712_v51, %v3434_v50  ;;  %v3414_v57 = vld [vmem:[#allocation10 + $0x138] sm:$0xf] }
 0x896   : > { %v1583_v61 = vadd.f32 %v1579_v59, %v1553_v53  ;;  %v1584_v54 = vadd.f32 %v1580_v60, %v1567_v48  ;;  %2021 = vmatpush.bf16.msra.mxu0 %v3435_v11  ;;  %v3708_v59 = vld [vmem:[#allocation10 + $0x140] sm:$0xf0]  ;;  %v3707_v60 = vld [vmem:[#allocation10 + $0x13c] sm:$0xf] }
 0x898   : > { %v1587_v55 = vmul.f32 0.7978846, %v1583_v61  ;;  %v1588_v62 = vmul.f32 0.7978846, %v1584_v54  ;;  %v3992_v12 = vpop.eup %3991  ;;  %v3415_v61 = vor.u32 %v3708_v59, %v3414_v57  ;;  %v3416_v54 = vld [vmem:[#allocation10 + $0x144] sm:$0xf0] }
 0x899   : > { %v3994_v63 = vpop.eup %3993  ;;  %v1593_v0 = vadd.f32 1.0, %v3992_v12  ;;  %v3419_v12 = vor.u32 %v3707_v60, %v3416_v54 }
 0x89a   : > { %3995 = vtanh.f32 %v1587_v55  ;;  %v1594_v1 = vadd.f32 1.0, %v3994_v63  ;;  %v3422_v55 = vld [vmem:[#allocation10 + $0x140] sm:$0xf] }
 0x89b   : > { %3997 = vtanh.f32 %v1588_v62  ;;  %v1597_v4 = vmul.f32 0.5, %v1593_v0  ;;  %v3709_v62 = vld [vmem:[#allocation10 + $0x148] sm:$0xf0]  ;;  %v3402_v0 = vld [vmem:[#allocation10 + $0x120] sm:$0xf] }
 0x89c   : > { %v1598_v6 = vmul.f32 0.5, %v1594_v1  ;;  %v3423_v63 = vor.u32 %v3709_v62, %v3422_v55  ;;  %v3705_v1 = vld [vmem:[#allocation10 + $0x128] sm:$0xf0] }
 0x89d   : > { %v1601_v58 = vmul.f32 %v1597_v4, %v1551_v37  ;;  %v3404_v4 = vld [vmem:[#allocation10 + $0x12c] sm:$0xf0] }
 0x89e   : > { %v1602_v18 = vmul.f32 %v1598_v6, %v1565_v38  ;;  %2022 = vmatpush.bf16.msra.mxu0 %v3423_v63  ;;  %v3706_v6 = vld [vmem:[#allocation10 + $0x130] sm:$0xf0] }
 0x8a0   : > { %v3996_v2 = vpop.eup %3995 }
 0x8a1   : > { %v3998_v3 = vpop.eup %3997  ;;  %v1595_v5 = vadd.f32 1.0, %v3996_v2  ;;  %v3704_v2 = vld [vmem:[#allocation10 + $0x124] sm:$0xf] }
 0x8a2   : > { %v1596_v7 = vadd.f32 1.0, %v3998_v3  ;;  %v3403_v3 = vor.u32 %v3705_v1, %v3402_v0 }
 0x8a3   : > { %v1599_v9 = vmul.f32 0.5, %v1595_v5  ;;  %v3410_v5 = vld [vmem:[#allocation10 + $0x128] sm:$0xf] }
 0x8a4   : > { %v1600_v10 = vmul.f32 0.5, %v1596_v7  ;;  %v3407_v7 = vor.u32 %v3704_v2, %v3404_v4  ;;  %v3941_v4 = vld [vmem:[%s5119_s0] ss:$0 sm:$0xff] }
 0x8a5   : > { %v1603_v16 = vmul.f32 %v1599_v9, %v1553_v53  ;;  %v3710_v53 = vld [vmem:[#allocation10 + $0x154] sm:$0xf]  ;;  %v3411_v9 = vor.u32 %v3706_v6, %v3410_v5 }
 0x8a6   : > { %v1604_v15 = vmul.f32 %v1600_v10, %v1567_v48  ;;  %v3427_v48 = vor.u32 %v3711_v52, %v3426_v47  ;;  %v3431_v56 = vor.u32 %v3710_v53, %v3428_v49  ;;  %v3390_v10 = vld [vmem:[#allocation10 + $0x108] sm:$0xf]  ;;  %v3356_v47 = vld [vmem:[#allocation10 + $0xcc] sm:$0xf0]  ;;  %v3694_v53 = vld [vmem:[#allocation10 + $0xd0] sm:$0xf0] }
 0x8a7   : > { %v1605_v19 = vpack.c.bf16 %v1603_v16, %v1601_v58  ;;  %2023 = vmatpush.bf16.msra.mxu0 %v3411_v9  ;;  %v3702_v58 = vld [vmem:[#allocation10 + $0x110] sm:$0xf0]  ;;  %v3701_v16 = vld [vmem:[#allocation10 + $0x10c] sm:$0xf]  ;;  %v3362_v52 = vld [vmem:[#allocation10 + $0xc8] sm:$0xf] }
 0x8a8   : > { %v1606_v20 = vpack.c.bf16 %v1604_v15, %v1602_v18  ;;  %2007 = vmatpush.bf16.msrb.mxu3 %v3431_v56  ;;  %v3391_v18 = vor.u32 %v3702_v58, %v3390_v10  ;;  %v3392_v15 = vld [vmem:[#allocation10 + $0x114] sm:$0xf0]  ;;  %v3363_v49 = vor.u32 %v3694_v53, %v3362_v52 }
 0x8a9   : > { %1747 = vmatmul.bf16.vlgmr.msrb.gmra.mxu0 %v1605_v19  ;;  %v3398_v19 = vld [vmem:[#allocation10 + $0x110] sm:$0xf]  ;;  %v3942_v10 = vld [vmem:[%s5120_s26] ss:$0 sm:$0xff] }
 0x8aa   : > { %1761 = vmatmul.bf16.vlgmr.msra.gmra.mxu1 %v1606_v20  ;;  %v3703_v20 = vld [vmem:[#allocation10 + $0x118] sm:$0xf0] }
 0x8ac   : > { %2008 = vmatpush.bf16.msrb.mxu3 %v3419_v12 }
 0x8b0   : > { %2009 = vmatpush.bf16.msrb.mxu3 %v3407_v7 }
 0x926   : > { %v1748_v22 = vpop.f32.mrf.mxu0 }
 0x927   : > { %v1749_v23 = vadd.f32 %v3940_v21, %v1748_v22  ;;  %v1762_v24 = vpop.f32.mrf.mxu1  ;;  %v3399_v22 = vor.u32 %v3703_v20, %v3398_v19  ;;  %v1856_v19 = vld [vmem:[#allocation11 + $0x3] sm:$0x7] }
 0x928   : > { %v1860_v20 = vperm.slane %v1856_v19, 2 }
 0x929   : > { %v1763_v25 = vadd.f32 %v1762_v24, %v1749_v23  ;;  %2024 = vmatpush.bf16.msra.mxu0 %v3399_v22  ;;  %v3378_v23 = vld [vmem:[#allocation10 + $0xf0] sm:$0xf]  ;;  %v3699_v24 = vld [vmem:[#allocation10 + $0xf8] sm:$0xf0] }
 0x92b   : > { %v1767_v26 = vadd.f32 %v1763_v25, %v4870_v13  ;;  %v3698_v25 = vld [vmem:[#allocation10 + $0xf4] sm:$0xf] }
 0x92d   : > { %1771 = vadd.xlane.f32.xlu1 %v1767_v26 }
 0x92e   : > { %v1750_v27 = vpop.f32.mrf.mxu0 }
 0x92f   : > { %v1751_v28 = vadd.f32 %v3940_v21, %v1750_v27  ;;  %v1764_v29 = vpop.f32.mrf.mxu1  ;;  %v3395_v21 = vor.u32 %v3701_v16, %v3392_v15  ;;  %v3380_v27 = vld [vmem:[#allocation10 + $0xfc] sm:$0xf0] }
 0x931   : > { %v1765_v30 = vadd.f32 %v1764_v29, %v1751_v28  ;;  %2010 = vmatpush.bf16.msrb.mxu3 %v3395_v21  ;;  %v3386_v28 = vld [vmem:[#allocation10 + $0xf8] sm:$0xf]  ;;  %v3700_v29 = vld [vmem:[#allocation10 + $0x100] sm:$0xf0] }
 0x933   : > { %v1768_v31 = vadd.f32 %v1765_v30, %v4872_v14  ;;  %v3438_v14 = vld [vmem:[#allocation10 + $0x168] sm:$0xf]  ;;  %v3383_v30 = vor.u32 %v3698_v25, %v3380_v27  ;;  %v1858_v25 = vperm.slane %v1856_v19, 0 }
 0x934   : > { %v3439_v41 = vor.u32 %v3714_v39, %v3438_v14  ;;  %v3697_v14 = vld [vmem:[#allocation10 + $0xe8] sm:$0xf0] }
 0x935   : > { %1773 = vadd.xlane.f32.xlu2 %v1768_v31  ;;  %2011 = vmatpush.bf16.msrb.mxu3 %v3383_v30 }
 0x936   : > { %1992 = vmatpush.bf16.msra.mxu2 %v3439_v41 }
 0x93a   : > { %1993 = vmatpush.bf16.msra.mxu2 %v3427_v48  ;;  %v3359_v48 = vor.u32 %v3692_v44, %v3356_v47 }
 0x93e   : > { %1994 = vmatpush.bf16.msra.mxu2 %v3415_v61 }
 0x942   : > { %1995 = vmatpush.bf16.msra.mxu2 %v3403_v3 }
 0x946   : > { %1996 = vmatpush.bf16.msra.mxu2 %v3391_v18 }
 0x9a0   : > { %v1772_v32 = vpop.xlane.xlu1 %1771 }
 0x9a1   : > { %v1775_v33 = vmul.f32 %v1772_v32, %v4756_v8  ;;  %v3366_v32 = vld [vmem:[#allocation10 + $0xd8] sm:$0xf] }
 0x9a3   : > { %v4885_v34 = vsub.f32 %v1767_v26, %v1775_v33  ;;  %v3379_v26 = vor.u32 %v3699_v24, %v3378_v23  ;;  %v3696_v33 = vld [vmem:[#allocation10 + $0xe0] sm:$0xf0] }
 0x9a5   : > { %v1779_v35 = vmul.f32 %v4885_v34, %v4885_v34  ;;  %1997 = vmatpush.bf16.msra.mxu2 %v3379_v26  ;;  %v1859_v26 = vperm.slane %v1856_v19, 1 }
 0x9a7   : > { %1781 = vadd.xlane.f32.xlu0 %v1779_v35  ;;  %v3695_v35 = vld [vmem:[#allocation10 + $0xdc] sm:$0xf] }
 0x9a8   : > { %v1774_v36 = vpop.xlane.xlu2 %1773 }
 0x9a9   : > { %v1776_v13 = vmul.f32 %v1774_v36, %v4756_v8  ;;  %v3367_v36 = vor.u32 %v3696_v33, %v3366_v32 }
 0x9ab   : > { %v4890_v37 = vsub.f32 %v1768_v31, %v1776_v13  ;;  %v3387_v31 = vor.u32 %v3700_v29, %v3386_v28  ;;  %v3368_v13 = vld [vmem:[#allocation10 + $0xe4] sm:$0xf0]  ;;  %1998 = vmatpush.bf16.msra.mxu2 %v3367_v36 }
 0x9ac   : > { %v3371_v40 = vor.u32 %v3695_v35, %v3368_v13 }
 0x9ad   : > { %v1780_v38 = vmul.f32 %v4890_v37, %v4890_v37  ;;  %2025 = vmatpush.bf16.msra.mxu0 %v3387_v31 }
 0x9ae   : > { %2012 = vmatpush.bf16.msrb.mxu3 %v3371_v40 }
 0x9af   : > { %1783 = vadd.xlane.f32.xlu1 %v1780_v38  ;;  %v3374_v38 = vld [vmem:[#allocation10 + $0xe0] sm:$0xf]  ;;  %1999 = vmatpush.bf16.msra.mxu2 %v3355_v46 }
 0x9b0   : > { %v3375_v41 = vor.u32 %v3697_v14, %v3374_v38 }
 0x9b2   : > { %2026 = vmatpush.bf16.msra.mxu0 %v3375_v41  ;;  %2013 = vmatpush.bf16.msrb.mxu3 %v3359_v48 }
 0x9b6   : > { %2027 = vmatpush.bf16.msra.mxu0 %v3363_v49 }
 0xa1a   : > { %v1782_v39 = vpop.xlane.xlu0 %1781 }
 0xa1b   : > { %v1785_v45 = vmul.f32 %v1782_v39, %v4756_v8 }
 0xa1d   : > { %v1787_v50 = vadd.f32 1e-12, %v1785_v45 }
 0xa1f   : > { %3999 = vrsqrt.f32 %v1787_v50  ;;  %vm1795_vm2 = vweird.f32 %v1787_v50 }
 0xa22   : > { %v1784_v51 = vpop.xlane.xlu1 %1783 }
 0xa23   : > { %v1786_v56 = vmul.f32 %v1784_v51, %v4756_v8 }
 0xa25   : > { %v4000_v11 = vpop.eup %3999  ;;  %v1788_v57 = vadd.f32 1e-12, %v1786_v56 }
 0xa26   : > { %v1790_v59 = vmul.f32 %v4000_v11, %v1787_v50  ;;  %vm1796_vm1 = vweird.f32 %v4000_v11 }
 0xa27   : > { %4001 = vrsqrt.f32 %v1788_v57  ;;  %vm1797_vm3 = vmor %vm1795_vm2, %vm1796_vm1  ;;  %vm1805_vm5 = vweird.f32 %v1788_v57 }
 0xa28   : > { %v1791_v60 = vmul.f32 %v4000_v11, %v1790_v59 }
 0xa2a   : > { %v1792_v61 = vmul.f32 0.5, %v1791_v60 }
 0xa2c   : > { %v1793_v54 = vsub.f32 1.5, %v1792_v61 }
 0xa2d   : > { %v4002_v55 = vpop.eup %4001 }
 0xa2e   : > { %v1794_v62 = vmul.f32 %v4000_v11, %v1793_v54  ;;  %v1800_v12 = vmul.f32 %v4002_v55, %v1788_v57  ;;  %vm1806_vm4 = vweird.f32 %v4002_v55 }
 0xa2f   : > { %vm1807_vm6 = vmor %vm1805_vm5, %vm1806_vm4 }
 0xa30   : > { %v1801_v63 = vmul.f32 %v4002_v55, %v1800_v12  ;;  %v1798_v0 = vsel %vm1797_vm3, %v4000_v11, %v1794_v62 }
 0xa31   : > { %v1809_v3 = vmul.f32 %v1798_v0, %v4885_v34 }
 0xa32   : > { %v1802_v1 = vmul.f32 0.5, %v1801_v63 }
 0xa33   : > { %v1814_v9 = vmul.f32 %v3941_v4, %v1809_v3 }
 0xa34   : > { %v1803_v2 = vsub.f32 1.5, %v1802_v1 }
 0xa35   : > { %v4904_v16 = vadd.f32 %v3942_v10, %v1814_v9 }
 0xa36   : > { %v1804_v5 = vmul.f32 %v4002_v55, %v1803_v2 }
 0xa38   : > { %v1808_v6 = vsel %vm1807_vm6, %v4002_v55, %v1804_v5 }
 0xa39   : > { %v1810_v7 = vmul.f32 %v1808_v6, %v4890_v37 }
 0xa3b   : > { %v1815_v58 = vmul.f32 %v3941_v4, %v1810_v7 }
 0xa3d   : > { %v4906_v18 = vadd.f32 %v3942_v10, %v1815_v58 }
 0xa3f   : > { %v1821_v34 = vpack.c.bf16 %v4906_v18, %v4904_v16 }
 0xa41   : > { %2000 = vmatmul.bf16.vlgmr.msra.gmra.mxu2 %v1821_v34  ;;  %2014 = vmatmul.bf16.vlgmr.msrb.gmra.mxu3 %v1821_v34 }
 0xa42   : > { %2028 = vmatmul.bf16.vlgmr.msra.gmra.mxu0 %v1821_v34 }
 0xabf   : > { %v2029_v15 = vpop.f32.mrf.mxu0 }
 0xac0   : > { %v2030_v23 = vadd.f32 %v2029_v15, %v1860_v20 }
 0xac4   : > { %v2001_v37 = vpop.f32.mrf.mxu2  ;;  %v2015_v21 = vpop.f32.mrf.mxu3 }
 0xac5   : > { %v2002_v30 = vadd.f32 %v2001_v37, %v1858_v25  ;;  %v2016_v31 = vadd.f32 %v2015_v21, %v1859_v26 }
 0xac7   : > { %v2031_v22 = vpop.f32.mrf.mxu0 }
 0xac8   : > { %v2032_v24 = vadd.f32 %v2031_v22, %v1860_v20 }
 0xaca   : > { %v4910_v27 = vpack.c.bf16 %v2032_v24, %v2030_v23 }
 0xacc   : > { %2094 = vmatpush.bf16.msrb.mxu2 %v4910_v27  ;;  %v2003_v28 = vpop.f32.mrf.mxu2  ;;  %v2017_v29 = vpop.f32.mrf.mxu3 }
 0xacd   : > { %v2004_v32 = vadd.f32 %v2003_v28, %v1858_v25  ;;  %v2018_v33 = vadd.f32 %v2017_v29, %v1859_v26 }
 0xacf   : > { %v2034_v35 = vpack.c.bf16 %v2004_v32, %v2002_v30  ;;  %v2035_v36 = vpack.c.bf16 %v2018_v33, %v2016_v31 }
 0xad1   : > { %2177 = vrot.lane.b32.xlu1 %v2035_v36, %s4464_s17  ;;  %2105 = vrot.lane.b32.xlu2 %v2035_v36, %s4462_s20  ;;  %v2041_v13 = vsel %vm984_vm7, %v2035_v36, 0 }
 0xad2   : > { %2102 = vrot.lane.b32.xlu0 %v2034_v35, %s4462_s20  ;;  %2050 = vmatpush.bf16.xpose.msrb.mxu1 %v2041_v13 }
 0xad9   : > { %2246 = vrot.lane.b32.xlu1 %v2034_v35, %s4463_s14  ;;  %2175 = vrot.lane.b32.xlu2 %v2034_v35, %s4464_s17 }
 0xada   : > { %2248 = vrot.lane.b32.xlu0 %v2035_v36, %s4463_s14  ;;  %3448 = vmatmul.msk.bf16.vlgmr.msrb.gmra.mxu1 %vm984_vm7, %v2034_v35 }
 0xb2b   : > { %v2106_v38 = vpop.permute.xlu2 %2105 }
 0xb2c   : > { %v2111_v14 = vsel %vm984_vm7, %v2106_v38, 0 }
 0xb2d   : > { %2120 = vmatpush.bf16.xpose.msra.mxu3 %v2111_v14 }
 0xb33   : > { %v2176_v42 = vpop.permute.xlu2 %2175 }
 0xb43   : > { %v2178_v39 = vpop.permute.xlu1 %2177 }
 0xb44   : > { %v2183_v40 = vsel %vm984_vm7, %v2178_v39, 0  ;;  %v2103_v41 = vpop.permute.xlu0 %2102 }
 0xb45   : > { %3450 = vmatmul.msk.bf16.vlgmr.msra.gmra.mxu3 %vm984_vm7, %v2103_v41  ;;  %2192 = vmatpush.bf16.xpose.msra.mxu1 %v2183_v40 }
 0xb4b   : > { %v2247_v45 = vpop.permute.xlu1 %2246 }
 0xb4c   : > { %v2249_v43 = vpop.permute.xlu0 %2248  ;;  %3452 = vmatmul.msk.bf16.vlgmr.msra.gmra.mxu1 %vm984_vm7, %v2176_v42 }
 0xb4d   : > { %v2254_v44 = vsel %vm984_vm7, %v2249_v43, 0 }
 0xb4e   : > { %2263 = vmatpush.bf16.xpose.msrb.mxu3 %v2254_v44 }
 0xb55   : > { %3454 = vmatmul.msk.bf16.vlgmr.msrb.gmra.mxu3 %vm984_vm7, %v2247_v45 }
 0xb57   : > { %v2052_v46 = vpop.f32.mrf.mxu1 }
 0xb58   : > { %v2057_v47 = vmul.f32 0.17677669, %v2052_v46 }
 0xb5a   : > { %v2059_v52 = vadd.f32 %v2057_v47, %v4786_v17 }
 0xb5c   : > { %v2061_v53 = vsel %vm1012_vm8, %v2059_v52, -inf }
 0xb5d   : > { %2062 = vmax.xlane.f32.xlu0 %v2061_v53 }
 0xb5f   : > { %v2054_v48 = vpop.f32.mrf.mxu1 }
 0xb60   : > { %v2058_v49 = vmul.f32 0.17677669, %v2054_v48 }
 0xb62   : > { %v2060_v50 = vadd.f32 %v2058_v49, %v4786_v17 }
 0xb64   : > { %v2064_v51 = vsel %vm1012_vm8, %v2060_v50, -inf }
 0xb65   : > { %2065 = vmax.xlane.f32.xlu2 %v2064_v51 }
 0xbc8   : > { %v2122_v56 = vpop.f32.mrf.mxu3 }
 0xbc9   : > { %v2127_v11 = vmul.f32 0.17677669, %v2122_v56  ;;  %v2194_v57 = vpop.f32.mrf.mxu1 }
 0xbca   : > { %v2199_v59 = vmul.f32 0.17677669, %v2194_v57 }
 0xbcb   : > { %v2129_v60 = vadd.f32 %v2127_v11, %v4786_v17 }
 0xbcc   : > { %v2201_v61 = vadd.f32 %v2199_v59, %v4786_v17 }
 0xbcd   : > { %v2131_v54 = vsel %vm1012_vm8, %v2129_v60, -inf }
 0xbce   : > { %2132 = vmax.xlane.f32.xlu1 %v2131_v54  ;;  %v2203_v55 = vsel %vm1012_vm8, %v2201_v61, -inf }
 0xbcf   : > { %2204 = vmax.xlane.f32.xlu2 %v2203_v55 }
 0xbd0   : > { %v2124_v62 = vpop.f32.mrf.mxu3  ;;  %v2063_v12 = vpop.xlane.xlu0 %2062 }
 0xbd1   : > { %v2128_v63 = vmul.f32 0.17677669, %v2124_v62  ;;  %v2067_v0 = vsub.f32 %v2059_v52, %v2063_v12  ;;  %v2196_v1 = vpop.f32.mrf.mxu1 }
 0xbd2   : > { %v2200_v2 = vmul.f32 0.17677669, %v2196_v1 }
 0xbd3   : > { %v2069_v3 = vmul.f32 1.442695, %v2067_v0  ;;  %v2130_v4 = vadd.f32 %v2128_v63, %v4786_v17 }
 0xbd4   : > { %v2202_v5 = vadd.f32 %v2200_v2, %v4786_v17 }
 0xbd5   : > { %4003 = vpow2.f32 %v2069_v3  ;;  %v2134_v6 = vsel %vm1012_vm8, %v2130_v4, -inf }
 0xbd6   : > { %2135 = vmax.xlane.f32.xlu0 %v2134_v6  ;;  %v2206_v7 = vsel %vm1012_vm8, %v2202_v5, -inf }
 0xbd7   : > { %2207 = vmax.xlane.f32.xlu1 %v2206_v7 }
 0xbd8   : > { %v2265_v9 = vpop.f32.mrf.mxu3  ;;  %v2066_v10 = vpop.xlane.xlu2 %2065 }
 0xbd9   : > { %v2270_v58 = vmul.f32 0.17677669, %v2265_v9  ;;  %v2068_v34 = vsub.f32 %v2060_v50, %v2066_v10 }
 0xbdb   : > { %v4939_v15 = vpop.eup %4003  ;;  %v2071_v19 = vmul.f32 1.442695, %v2068_v34  ;;  %v2272_v20 = vadd.f32 %v2270_v58, %v4786_v17 }
 0xbdc   : > { %v2073_v21 = vsel %vm1012_vm8, %v4939_v15, 0.0 }
 0xbdd   : > { %4005 = vpow2.f32 %v2071_v19  ;;  %v2274_v37 = vsel %vm1012_vm8, %v2272_v20, -inf }
 0xbde   : > { %2275 = vmax.xlane.f32.xlu0 %v2274_v37 }
 0xbdf   : > { %2074 = vadd.xlane.f32.xlu1 %v2073_v21 }
 0xbe0   : > { %v2267_v22 = vpop.f32.mrf.mxu3 }
 0xbe1   : > { %v2271_v23 = vmul.f32 0.17677669, %v2267_v22 }
 0xbe3   : > { %v4006_v24 = vpop.eup %4005  ;;  %v2273_v25 = vadd.f32 %v2271_v23, %v4786_v17 }
 0xbe4   : > { %v2076_v26 = vsel %vm1012_vm8, %v4006_v24, 0.0 }
 0xbe5   : > { %v2277_v28 = vsel %vm1012_vm8, %v2273_v25, -inf }
 0xbe6   : > { %2278 = vmax.xlane.f32.xlu2 %v2277_v28  ;;  %2077 = vadd.xlane.f32.xlu0 %v2076_v26 }
 0xbfa   : > { %2155 = vrot.lane.b32.xlu0 %v4910_v27, %s4462_s20 }
 0xc02   : > { %2297 = vrot.lane.b32.xlu0 %v4910_v27, %s4463_s14 }
 0xc41   : > { %v2133_v29 = vpop.xlane.xlu1 %2132 }
 0xc42   : > { %v2205_v30 = vpop.xlane.xlu2 %2204  ;;  %v2137_v32 = vsub.f32 %v2129_v60, %v2133_v29 }
 0xc43   : > { %v2209_v31 = vsub.f32 %v2201_v61, %v2205_v30 }
 0xc44   : > { %v2139_v35 = vmul.f32 1.442695, %v2137_v32 }
 0xc45   : > { %v2211_v33 = vmul.f32 1.442695, %v2209_v31  ;;  %v3723_v31 = vld [vmem:[#allocation13 + $0x78] sm:$0xff] }
 0xc46   : > { %2418 = vmatpush.bf16.msrb.mxu1 %v3723_v31 }
 0xc47   : > { %4007 = vpow2.f32 %v2211_v33 }
 0xc48   : > { %4009 = vpow2.f32 %v2139_v35 }
 0xc49   : > { %v2136_v17 = vpop.xlane.xlu0 %2135 }
 0xc4a   : > { %v2138_v36 = vsub.f32 %v2130_v4, %v2136_v17  ;;  %v2208_v13 = vpop.xlane.xlu1 %2207 }
 0xc4b   : > { %v2210_v14 = vsub.f32 %v2202_v5, %v2208_v13 }
 0xc4c   : > { %v2141_v38 = vmul.f32 1.442695, %v2138_v36 }
 0xc4d   : > { %v4952_v39 = vpop.eup %4007  ;;  %v2213_v41 = vmul.f32 1.442695, %v2210_v14 }
 0xc4e   : > { %4011 = vpow2.f32 %v2141_v38  ;;  %v2215_v40 = vsel %vm1012_vm8, %v4952_v39, 0.0  ;;  %v4010_v44 = vpop.eup %4009 }
 0xc4f   : > { %2216 = vadd.xlane.f32.xlu2 %v2215_v40  ;;  %4013 = vpow2.f32 %v2213_v41  ;;  %v2143_v53 = vsel %vm1012_vm8, %v4010_v44, 0.0  ;;  %v3722_v40 = vld [vmem:[#allocation13 + $0x70] sm:$0xff]  ;;  %v3721_v41 = vld [vmem:[#allocation13 + $0x68] sm:$0xff] }
 0xc50   : > { %2419 = vmatpush.bf16.msrb.mxu1 %v3722_v40  ;;  %v3731_v40 = vld [vmem:[#allocation16 + $0xb4] sm:$0xf0] }
 0xc51   : > { %v2276_v42 = vpop.xlane.xlu0 %2275 }
 0xc52   : > { %v2280_v43 = vsub.f32 %v2272_v20, %v2276_v42  ;;  %v2075_v47 = vpop.xlane.xlu1 %2074  ;;  %v3720_v42 = vld [vmem:[#allocation13 + $0x60] sm:$0xff] }
 0xc54   : > { %v4012_v45 = vpop.eup %4011  ;;  %v2282_v46 = vmul.f32 1.442695, %v2280_v43  ;;  %2420 = vmatpush.bf16.msrb.mxu1 %v3721_v41  ;;  %v3719_v43 = vld [vmem:[#allocation13 + $0x58] sm:$0xff] }
 0xc55   : > { %v2146_v52 = vsel %vm1012_vm8, %v4012_v45, 0.0  ;;  %v4014_v50 = vpop.eup %4013  ;;  %v3730_v41 = vld [vmem:[#allocation16 + $0xb4] sm:$0xf] }
 0xc56   : > { %4015 = vpow2.f32 %v2282_v46  ;;  %2147 = vadd.xlane.f32.xlu1 %v2146_v52  ;;  %v2218_v57 = vsel %vm1012_vm8, %v4014_v50, 0.0  ;;  %v3716_v46 = vld [vmem:[#allocation13 + $0x40] sm:$0xff] }
 0xc57   : > { %2144 = vadd.xlane.f32.xlu2 %v2143_v53  ;;  %4017 = vrcp.f32 %v2075_v47 }
 0xc58   : > { %2421 = vmatpush.bf16.msrb.mxu1 %v3720_v42 }
 0xc59   : > { %v2078_v48 = vpop.xlane.xlu0 %2077  ;;  %v2279_v49 = vpop.xlane.xlu2 %2278 }
 0xc5a   : > { %4019 = vrcp.f32 %v2078_v48  ;;  %v2281_v51 = vsub.f32 %v2273_v25, %v2279_v49 }
 0xc5c   : > { %v4016_v56 = vpop.eup %4015  ;;  %v2284_v11 = vmul.f32 1.442695, %v2281_v51  ;;  %2422 = vmatpush.bf16.msrb.mxu1 %v3719_v43  ;;  %v3519_v43 = vld [vmem:[#allocation16 + $0xb8] sm:$0xf0] }
 0xc5d   : > { %v4018_v59 = vpop.eup %4017  ;;  %v2286_v60 = vsel %vm1012_vm8, %v4016_v56, 0.0 }
 0xc5e   : > { %4021 = vpow2.f32 %v2284_v11  ;;  %2219 = vadd.xlane.f32.xlu1 %v2218_v57  ;;  %v2081_v54 = vmul.f32 %v4018_v59, %v4939_v15 }
 0xc5f   : > { %2287 = vadd.xlane.f32.xlu2 %v2286_v60 }
 0xc60   : > { %v4020_v61 = vpop.eup %4019 }
 0xc61   : > { %v2082_v55 = vmul.f32 %v4020_v61, %v4006_v24 }
 0xc63   : > { %v2083_v62 = vpack.c.bf16 %v2082_v55, %v2081_v54 }
 0xc64   : > { %v4022_v12 = vpop.eup %4021 }
 0xc65   : > { %3449 = vmatmul.msk.bf16.vlgmr.msrb.gmra.mxu2 %vm1012_vm8, %v2083_v62  ;;  %v2289_v63 = vsel %vm1012_vm8, %v4022_v12, 0.0 }
 0xc66   : > { %2290 = vadd.xlane.f32.xlu1 %v2289_v63 }
 0xc6c   : > { %v2156_v0 = vpop.permute.xlu0 %2155 }
 0xc6d   : > { %2168 = vmatpush.bf16.msrb.mxu0 %v2156_v0 }
 0xc74   : > { %v2298_v1 = vpop.permute.xlu0 %2297 }
 0xc75   : > { %2310 = vmatpush.bf16.msra.mxu0 %v2298_v1 }
 0xc77   : > { %2226 = vrot.lane.b32.xlu2 %v4910_v27, %s4464_s17 }
 0xcc2   : > { %v2217_v2 = vpop.xlane.xlu2 %2216 }
 0xcc9   : > { %v2148_v3 = vpop.xlane.xlu1 %2147 }
 0xcca   : > { %4023 = vrcp.f32 %v2148_v3  ;;  %v2145_v4 = vpop.xlane.xlu2 %2144 }
 0xccb   : > { %4025 = vrcp.f32 %v2145_v4 }
 0xccc   : > { %4027 = vrcp.f32 %v2217_v2 }
 0xcd0   : > { %v4024_v5 = vpop.eup %4023 }
 0xcd1   : > { %v4026_v6 = vpop.eup %4025  ;;  %v2220_v7 = vpop.xlane.xlu1 %2219  ;;  %v2152_v9 = vmul.f32 %v4024_v5, %v4012_v45  ;;  %v3717_v45 = vld [vmem:[#allocation13 + $0x48] sm:$0xff] }
 0xcd2   : > { %v2151_v10 = vmul.f32 %v4026_v6, %v4010_v44  ;;  %4029 = vrcp.f32 %v2220_v7  ;;  %v2288_v58 = vpop.xlane.xlu2 %2287  ;;  %v4028_v15 = vpop.eup %4027  ;;  %v3718_v44 = vld [vmem:[#allocation13 + $0x50] sm:$0xff] }
 0xcd3   : > { %4031 = vrcp.f32 %v2288_v58  ;;  %v2223_v37 = vmul.f32 %v4028_v15, %v4952_v39  ;;  %2423 = vmatpush.bf16.msrb.mxu1 %v3718_v44  ;;  %v3739_v15 = vld [vmem:[#allocation16 + $0xf4] sm:$0xf0]  ;;  %v3522_v44 = vor.u32 %v3730_v41, %v3519_v43  ;;  %v3490_v41 = vld [vmem:[%s5070_s11 + $0x2] sm:$0x3]  ;;  %v3749_v43 = vld [vmem:[#allocation17 + $0xc8] sm:$0xff] }
 0xcd4   : > { %v2153_v34 = vpack.c.bf16 %v2152_v9, %v2151_v10 }
 0xcd6   : > { %3451 = vmatmul.msk.bf16.vlgmr.msrb.gmra.mxu0 %vm1012_vm8, %v2153_v34 }
 0xcd7   : > { %2424 = vmatpush.bf16.msrb.mxu1 %v3717_v45  ;;  %v3509_v45 = vld [vmem:[#allocation16 + $0xa0] sm:$0xf] }
 0xcd8   : > { %v4030_v19 = vpop.eup %4029 }
 0xcd9   : > { %v2224_v20 = vmul.f32 %v4030_v19, %v4014_v50  ;;  %v2291_v27 = vpop.xlane.xlu1 %2290  ;;  %v4032_v23 = vpop.eup %4031  ;;  %v3738_v19 = vld [vmem:[#allocation16 + $0xf4] sm:$0xf] }
 0xcda   : > { %4033 = vrcp.f32 %v2291_v27  ;;  %v2227_v21 = vpop.permute.xlu2 %2226  ;;  %v2294_v26 = vmul.f32 %v4032_v23, %v4016_v56  ;;  %v3551_v27 = vld [vmem:[#allocation16 + $0xf8] sm:$0xf0]  ;;  %v3736_v23 = vld [vmem:[#allocation16 + $0xe4] sm:$0xf] }
 0xcdb   : > { %2239 = vmatpush.bf16.msra.mxu2 %v2227_v21  ;;  %v2225_v22 = vpack.c.bf16 %v2224_v20, %v2223_v37  ;;  %2425 = vmatpush.bf16.msrb.mxu1 %v3716_v46  ;;  %v3554_v37 = vor.u32 %v3738_v19, %v3551_v27  ;;  %v3541_v21 = vld [vmem:[#allocation16 + $0xe0] sm:$0xf]  ;;  %v3729_v46 = vld [vmem:[#allocation16 + $0xa4] sm:$0xf0] }
 0xcdd   : > { %2607 = vmatpush.bf16.msra.mxu3 %v3554_v37 }
 0xcde   : > { %3453 = vmatmul.msk.bf16.vlgmr.msra.gmra.mxu2 %vm1012_vm8, %v2225_v22  ;;  %v3737_v22 = vld [vmem:[#allocation16 + $0xe4] sm:$0xf0] }
 0xce0   : > { %v4034_v24 = vpop.eup %4033 }
 0xce1   : > { %v2295_v25 = vmul.f32 %v4034_v24, %v4022_v12  ;;  %v3943_v12 = vld [vmem:[%s5066_s7 + $0x1] ss:$0 sm:$0xff]  ;;  %v3542_v24 = vor.u32 %v3737_v22, %v3541_v21  ;;  %v3944_v21 = vld [vmem:[#allocation14 + $0x1] ss:$0 sm:$0xff] }
 0xce3   : > { %v2296_v28 = vpack.c.bf16 %v2295_v25, %v2294_v26  ;;  %v3543_v25 = vld [vmem:[#allocation16 + $0xe8] sm:$0xf0] }
 0xce4   : > { %v3546_v26 = vor.u32 %v3736_v23, %v3543_v25 }
 0xce6   : > { %3455 = vmatmul.msk.bf16.vlgmr.msra.gmra.mxu0 %vm1012_vm8, %v2296_v28  ;;  %2608 = vmatpush.bf16.msra.mxu3 %v3546_v26  ;;  %v3533_v28 = vld [vmem:[#allocation16 + $0xd0] sm:$0xf] }
 0xce7   : > { %v3945_v26 = vld [vmem:[%s5068_s9 + $0x1] ss:$0 sm:$0xff] }
 0xce8   : > { %v2096_v29 = vpop.f32.mrf.mxu2 }
 0xcf0   : > { %v2098_v32 = vpop.f32.mrf.mxu2 }
 0xd53   : > { %v2170_v30 = vpop.f32.mrf.mxu0 }
 0xd5b   : > { %v2172_v33 = vpop.f32.mrf.mxu0 }
 0xd5c   : > { %v3920_v35 = vpack.i.bf16 %v2172_v33, %v2170_v30  ;;  %v3734_v30 = vld [vmem:[#allocation16 + $0xd4] sm:$0xf] }
 0xd5e   : > { %3921 = vrot.lane.b32.xlu1 %v3920_v35, %s4463_s14  ;;  %v3525_v35 = vld [vmem:[#allocation16 + $0xc0] sm:$0xf] }
 0xd61   : > { %v2241_v17 = vpop.f32.mrf.mxu2 }
 0xd63   : > { %v2312_v36 = vpop.f32.mrf.mxu0 }
 0xd69   : > { %v2243_v13 = vpop.f32.mrf.mxu2 }
 0xd6a   : > { %v3925_v38 = vpack.i.bf16 %v2243_v13, %v2241_v17  ;;  %v3733_v17 = vld [vmem:[#allocation16 + $0xc4] sm:$0xf0] }
 0xd6b   : > { %v2314_v14 = vpop.f32.mrf.mxu0  ;;  %v3526_v13 = vor.u32 %v3733_v17, %v3525_v35  ;;  %v3745_v35 = vld [vmem:[#allocation17 + $0xa8] sm:$0xff] }
 0xd6c   : > { %3926 = vrot.lane.b32.xlu0 %v3925_v38, %s4464_s17  ;;  %v3930_v39 = vpack.i.bf16 %v2314_v14, %v2312_v36  ;;  %v3732_v36 = vld [vmem:[#allocation16 + $0xc4] sm:$0xf]  ;;  %v3527_v38 = vld [vmem:[#allocation16 + $0xc8] sm:$0xf0]  ;;  %s704_s17 = scalar_lea.vmem [#allocation19], %s3078_s23 }
 0xd6d   : > { %v3530_v14 = vor.u32 %v3732_v36, %v3527_v38  ;;  %v3753_v17 = vld [vmem:[#allocation17 + $0xe8] sm:$0xff]  ;;  %v3744_v36 = vld [vmem:[#allocation17 + $0xa0] sm:$0xff]  ;;  %v3743_v38 = vld [vmem:[#allocation17 + $0x98] sm:$0xff]  ;;  %s2892_s3 = sshll.u32 %s704_s17, 4  ;;  %s2893_s3 = int_to_ptr.vmem [resolvable:$true] %s2892_s3 }
 0xd74   : > { %3931 = vrot.lane.b32.xlu0 %v3930_v39, %s4462_s20  ;;  %v3517_v39 = vld [vmem:[#allocation16 + $0xb0] sm:$0xf]  ;;  %s5121_s20 = sld [smem:[#allocation42_spill]] }
 0xd75   : > { %v3518_v42 = vor.u32 %v3731_v40, %v3517_v39  ;;  %v3742_v39 = vld [vmem:[#allocation17 + $0x90] sm:$0xff] }
 0xd76   : > { %v3750_v40 = vld [vmem:[#allocation17 + $0xd0] sm:$0xff] }
 0xd7a   : > { %s2891_s14 = scalar_lea.hbm %s5121_s20, %s3756_s2  ;;  %s4371_s5 = scalar_lea.hbm %s5121_s20, 32 }
 0xd7b   : > { %s2894_s25 = sshll.u32 %s2891_s14, 4  ;;  %s2895_s25 = int_to_ptr.hbm [resolvable:$true] %s2894_s25 }
 0xd7c   : > { %s4365_s10 = sshra.s32 %s2895_s25, 4  ;;  %s4366_s10 = int_to_ptr.hbm [resolvable:$true] %s4365_s10 }
 0xd7d   : > { %s4367_s12 = scalar_lea.hbm %s4366_s10, 16  ;;  %p4372_p7 = scmp.lt.s32.totalorder %s4366_s10, %s5121_s20 }
 0xd7e   : > { %p4368_p1 = scmp.ne.s32.totalorder %s4366_s10, %s4367_s12  ;;  %p4373_p9 = scmp.lt.s32.totalorder %s4371_s5, %s4367_s12 }
 0xd80   : > { %p4369_p3 = pnand %p4368_p1, %p4664_p5  ;;  %p4374_p4 = por %p4373_p9, %p4372_p7 }
 0xd82   : > { %p4370_p12 = pneg %p4369_p3 }
 0xd84   : > { %p4375_p8 = pnand %p4374_p4, %p4370_p12 }
 0xdd0   : > { %v3922_v52 = vpop.permute.xlu1 %3921 }
 0xdd1   : > { %v3924_v53 = vunpack.i.h.bf16 %v3922_v52  ;;  %v3923_v48 = vunpack.i.l.bf16 %v3922_v52  ;;  %v3510_v52 = vor.u32 %v3729_v46, %v3509_v45  ;;  %v2510_v45 = vperm.slane %v3490_v41, 1 }
 0xdd3   : > { %v2342_v56 = vsel %vm984_vm7, %v2098_v32, %v3924_v53  ;;  %v2341_v11 = vsel %vm984_vm7, %v2096_v29, %v3923_v48  ;;  %v3735_v29 = vld [vmem:[#allocation16 + $0xd4] sm:$0xf0]  ;;  %v3535_v32 = vld [vmem:[#allocation16 + $0xd8] sm:$0xf0]  ;;  %v3511_v53 = vld [vmem:[#allocation16 + $0xa8] sm:$0xf0] }
 0xdd4   : > { %v3534_v31 = vor.u32 %v3735_v29, %v3533_v28  ;;  %v3538_v33 = vor.u32 %v3734_v30, %v3535_v32  ;;  %v3755_v32 = vld [vmem:[#allocation17 + $0xf8] sm:$0xff] }
 0xdd5   : > { %2807 = vmatpush.bf16.msra.mxu1 %v3755_v32 }
 0xdd6   : > { %2609 = vmatpush.bf16.msra.mxu3 %v3538_v33  ;;  %v3754_v33 = vld [vmem:[#allocation17 + $0xf0] sm:$0xff] }
 0xdd9   : > { %2808 = vmatpush.bf16.msra.mxu1 %v3754_v33 }
 0xdda   : > { %2610 = vmatpush.bf16.msra.mxu3 %v3530_v14  ;;  %v3751_v14 = vld [vmem:[#allocation17 + $0xd8] sm:$0xff] }
 0xddd   : > { %2809 = vmatpush.bf16.msra.mxu1 %v3753_v17 }
 0xdde   : > { %v3927_v47 = vpop.permute.xlu0 %3926  ;;  %2611 = vmatpush.bf16.msra.mxu3 %v3522_v44  ;;  %v2509_v44 = vperm.slane %v3490_v41, 0 }
 0xddf   : > { %v3929_v49 = vunpack.i.h.bf16 %v3927_v47  ;;  %v3928_v50 = vunpack.i.l.bf16 %v3927_v47  ;;  %v3728_v47 = vld [vmem:[#allocation16 + $0xa4] sm:$0xf] }
 0xde0   : > { %v3514_v48 = vor.u32 %v3728_v47, %v3511_v53  ;;  %v3748_v53 = vld [vmem:[#allocation17 + $0xc0] sm:$0xff] }
 0xde1   : > { %v2344_v60 = vsel %vm1295_vm9, %v2342_v56, %v3929_v49  ;;  %v2343_v61 = vsel %vm1295_vm9, %v2341_v11, %v3928_v50  ;;  %v3501_v49 = vld [vmem:[#allocation16 + $0x90] sm:$0xf]  ;;  %v3727_v50 = vld [vmem:[#allocation16 + $0x94] sm:$0xf0]  ;;  %v3503_v11 = vld [vmem:[#allocation16 + $0x98] sm:$0xf0] }
 0xde2   : > { %2612 = vmatpush.bf16.msra.mxu3 %v3514_v48  ;;  %v3502_v56 = vor.u32 %v3727_v50, %v3501_v49 }
 0xde6   : > { %v3932_v51 = vpop.permute.xlu0 %3931 }
 0xde7   : > { %v3934_v57 = vunpack.i.h.bf16 %v3932_v51  ;;  %v3933_v59 = vunpack.i.l.bf16 %v3932_v51  ;;  %v3726_v51 = vld [vmem:[#allocation16 + $0x94] sm:$0xf] }
 0xde9   : > { %v2345_v54 = vsel %vm1298_vm10, %v2343_v61, %v3933_v59  ;;  %v2346_v55 = vsel %vm1298_vm10, %v2344_v60, %v3934_v57  ;;  %v3493_v57 = vld [vmem:[#allocation16 + $0x80] sm:$0xf]  ;;  %v3725_v59 = vld [vmem:[#allocation16 + $0x84] sm:$0xf0]  ;;  %v3506_v61 = vor.u32 %v3726_v51, %v3503_v11 }
 0xdea   : > { %v2347_v62 = vpack.c.bf16 %v2346_v55, %v2345_v54  ;;  %v3724_v54 = vld [vmem:[#allocation16 + $0x84] sm:$0xf]  ;;  %v3495_v55 = vld [vmem:[#allocation16 + $0x88] sm:$0xf0] }
 0xdeb   : > { %2613 = vmatpush.bf16.msra.mxu3 %v3506_v61 }
 0xdec   : > { %2426 = vmatmul.bf16.vlgmr.msrb.gmra.mxu1 %v2347_v62 }
 0xe69   : > { %v2427_v63 = vpop.f32.mrf.mxu1 }
 0xe6a   : > { %v2428_v0 = vadd.f32 %v3943_v12, %v2427_v63  ;;  %v3498_v63 = vor.u32 %v3724_v54, %v3495_v55 }
 0xe6c   : > { %v2432_v1 = vadd.f32 %v2428_v0, %v4904_v16  ;;  %2614 = vmatpush.bf16.msra.mxu3 %v3498_v63 }
 0xe6e   : > { %2438 = vadd.xlane.f32.xlu2 %v2432_v1 }
 0xe71   : > { %v2429_v2 = vpop.f32.mrf.mxu1 }
 0xe72   : > { %v2430_v3 = vadd.f32 %v3943_v12, %v2429_v2  ;;  %v3494_v12 = vor.u32 %v3725_v59, %v3493_v57 }
 0xe74   : > { %v2433_v4 = vadd.f32 %v2430_v3, %v4906_v18  ;;  %v3549_v18 = vld [vmem:[#allocation16 + $0xf0] sm:$0xf] }
 0xe75   : > { %v3550_v20 = vor.u32 %v3739_v15, %v3549_v18 }
 0xe76   : > { %2440 = vadd.xlane.f32.xlu0 %v2433_v4 }
 0xe77   : > { %2593 = vmatpush.bf16.msrb.mxu2 %v3550_v20 }
 0xe7b   : > { %2594 = vmatpush.bf16.msrb.mxu2 %v3542_v24 }
 0xe7f   : > { %2595 = vmatpush.bf16.msrb.mxu2 %v3534_v31  ;;  %v3747_v31 = vld [vmem:[#allocation17 + $0xb8] sm:$0xff] }
 0xe80   : > { %2793 = vmatpush.bf16.msrb.mxu0 %v3747_v31 }
 0xe83   : > { %2596 = vmatpush.bf16.msrb.mxu2 %v3526_v13  ;;  %v3752_v13 = vld [vmem:[#allocation17 + $0xe0] sm:$0xff] }
 0xe84   : > { %2810 = vmatpush.bf16.msra.mxu1 %v3752_v13 }
 0xe87   : > { %2597 = vmatpush.bf16.msrb.mxu2 %v3518_v42  ;;  %v3741_v42 = vld [vmem:[#allocation17 + $0x88] sm:$0xff] }
 0xe88   : > { %2811 = vmatpush.bf16.msra.mxu1 %v3751_v14 }
 0xe8b   : > { %2598 = vmatpush.bf16.msrb.mxu2 %v3510_v52  ;;  %v3740_v52 = vld [vmem:[#allocation17 + $0x80] sm:$0xff] }
 0xe8c   : > { %2812 = vmatpush.bf16.msra.mxu1 %v3750_v40 }
 0xe8f   : > { %2599 = vmatpush.bf16.msrb.mxu2 %v3502_v56 }
 0xe90   : > { %2813 = vmatpush.bf16.msra.mxu1 %v3749_v43 }
 0xe93   : > { %2600 = vmatpush.bf16.msrb.mxu2 %v3494_v12 }
 0xe94   : > { %2814 = vmatpush.bf16.msra.mxu1 %v3748_v53 }
 0xee1   : > { %v2439_v5 = vpop.xlane.xlu2 %2438 }
 0xee2   : > { %v2442_v6 = vmul.f32 %v2439_v5, %v4756_v8 }
 0xee4   : > { %v4984_v7 = vsub.f32 %v2432_v1, %v2442_v6 }
 0xee6   : > { %v2446_v9 = vmul.f32 %v4984_v7, %v4984_v7 }
 0xee8   : > { %2448 = vadd.xlane.f32.xlu1 %v2446_v9 }
 0xee9   : > { %v2441_v10 = vpop.xlane.xlu0 %2440 }
 0xeea   : > { %v2443_v58 = vmul.f32 %v2441_v10, %v4756_v8 }
 0xeec   : > { %v4989_v34 = vsub.f32 %v2433_v4, %v2443_v58 }
 0xeee   : > { %v2447_v16 = vmul.f32 %v4989_v34, %v4989_v34 }
 0xef0   : > { %2450 = vadd.xlane.f32.xlu2 %v2447_v16 }
 0xf5b   : > { %v2449_v60 = vpop.xlane.xlu1 %2448 }
 0xf5c   : > { %v2452_v62 = vmul.f32 %v2449_v60, %v4756_v8 }
 0xf5e   : > { %v2454_v0 = vadd.f32 1e-12, %v2452_v62 }
 0xf60   : > { %4035 = vrsqrt.f32 %v2454_v0  ;;  %vm2462_vm8 = vweird.f32 %v2454_v0 }
 0xf63   : > { %v2451_v1 = vpop.xlane.xlu2 %2450 }
 0xf64   : > { %v2453_v2 = vmul.f32 %v2451_v1, %v4756_v8 }
 0xf66   : > { %v4036_v3 = vpop.eup %4035  ;;  %v2455_v4 = vadd.f32 1e-12, %v2453_v2 }
 0xf67   : > { %v2457_v5 = vmul.f32 %v4036_v3, %v2454_v0  ;;  %vm2463_vm7 = vweird.f32 %v4036_v3 }
 0xf68   : > { %4037 = vrsqrt.f32 %v2455_v4  ;;  %vm2464_vm9 = vmor %vm2462_vm8, %vm2463_vm7  ;;  %vm2472_vm11 = vweird.f32 %v2455_v4 }
 0xf69   : > { %v2458_v6 = vmul.f32 %v4036_v3, %v2457_v5 }
 0xf6b   : > { %v2459_v9 = vmul.f32 0.5, %v2458_v6 }
 0xf6d   : > { %v2460_v10 = vsub.f32 1.5, %v2459_v9 }
 0xf6e   : > { %v4038_v58 = vpop.eup %4037 }
 0xf6f   : > { %v2461_v16 = vmul.f32 %v4036_v3, %v2460_v10  ;;  %v2467_v18 = vmul.f32 %v4038_v58, %v2455_v4  ;;  %vm2473_vm10 = vweird.f32 %v4038_v58 }
 0xf70   : > { %vm2474_vm12 = vmor %vm2472_vm11, %vm2473_vm10 }
 0xf71   : > { %v2468_v15 = vmul.f32 %v4038_v58, %v2467_v18  ;;  %v2465_v19 = vsel %vm2464_vm9, %v4036_v3, %v2461_v16 }
 0xf72   : > { %v2476_v37 = vmul.f32 %v2465_v19, %v4984_v7 }
 0xf73   : > { %v2469_v20 = vmul.f32 0.5, %v2468_v15 }
 0xf74   : > { %v2481_v25 = vmul.f32 %v3944_v21, %v2476_v37 }
 0xf75   : > { %v2470_v27 = vsub.f32 1.5, %v2469_v20 }
 0xf76   : > { %v5000_v29 = vadd.f32 %v3945_v26, %v2481_v25 }
 0xf77   : > { %v2471_v22 = vmul.f32 %v4038_v58, %v2470_v27 }
 0xf79   : > { %v2475_v23 = vsel %vm2474_vm12, %v4038_v58, %v2471_v22 }
 0xf7a   : > { %v2477_v24 = vmul.f32 %v2475_v23, %v4989_v34  ;;  %v3746_v34 = vld [vmem:[#allocation17 + $0xb0] sm:$0xff] }
 0xf7b   : > { %2794 = vmatpush.bf16.msrb.mxu0 %v3746_v34 }
 0xf7c   : > { %v2482_v28 = vmul.f32 %v3944_v21, %v2477_v24 }
 0xf7e   : > { %v5002_v30 = vadd.f32 %v3945_v26, %v2482_v28 }
 0xf7f   : > { %2795 = vmatpush.bf16.msrb.mxu0 %v3745_v35  ;;  %v3946_v35 = vld [vmem:[%s5118_s18 + $0x1] ss:$0 sm:$0xff] }
 0xf80   : > { %v2488_v7 = vpack.c.bf16 %v5002_v30, %v5000_v29 }
 0xf82   : > { %2601 = vmatmul.bf16.vlgmr.msrb.gmra.mxu2 %v2488_v7  ;;  %2615 = vmatmul.bf16.vlgmr.msra.gmra.mxu3 %v2488_v7 }
 0xf83   : > { %2796 = vmatpush.bf16.msrb.mxu0 %v3744_v36 }
 0xf87   : > { %2797 = vmatpush.bf16.msrb.mxu0 %v3743_v38 }
 0xf8b   : > { %2798 = vmatpush.bf16.msrb.mxu0 %v3742_v39 }
 0xf8f   : > { %2799 = vmatpush.bf16.msrb.mxu0 %v3741_v42 }
 0xf93   : > { %2800 = vmatpush.bf16.msrb.mxu0 %v3740_v52 }
0x1005   : > { %v2602_v46 = vpop.f32.mrf.mxu2  ;;  %v2616_v47 = vpop.f32.mrf.mxu3 }
0x1006   : > { %v2603_v48 = vadd.f32 %v2602_v46, %v2509_v44  ;;  %v2617_v49 = vadd.f32 %v2616_v47, %v2510_v45 }
0x1008   : > { %v2621_v50 = vmul.f32 %v2603_v48, %v2603_v48  ;;  %v2622_v51 = vmul.f32 %v2617_v49, %v2617_v49 }
0x100a   : > { %v2625_v56 = vmul.f32 %v2621_v50, %v2603_v48  ;;  %v2626_v11 = vmul.f32 %v2622_v51, %v2617_v49 }
0x100c   : > { %v2629_v57 = vmul.f32 0.044715, %v2625_v56  ;;  %v2630_v59 = vmul.f32 0.044715, %v2626_v11 }
0x100d   : > { %v2604_v60 = vpop.f32.mrf.mxu2  ;;  %v2618_v61 = vpop.f32.mrf.mxu3 }
0x100e   : > { %v2633_v54 = vadd.f32 %v2629_v57, %v2603_v48  ;;  %v2634_v55 = vadd.f32 %v2630_v59, %v2617_v49  ;;  %v2605_v62 = vadd.f32 %v2604_v60, %v2509_v44  ;;  %v2619_v12 = vadd.f32 %v2618_v61, %v2510_v45 }
0x1010   : > { %v2637_v63 = vmul.f32 0.7978846, %v2633_v54  ;;  %v2623_v0 = vmul.f32 %v2605_v62, %v2605_v62  ;;  %v2624_v1 = vmul.f32 %v2619_v12, %v2619_v12  ;;  %v2638_v2 = vmul.f32 0.7978846, %v2634_v55 }
0x1012   : > { %v2627_v3 = vmul.f32 %v2623_v0, %v2605_v62  ;;  %v2628_v4 = vmul.f32 %v2624_v1, %v2619_v12  ;;  %4039 = vtanh.f32 %v2637_v63  ;;  %v3947_v63 = vld [vmem:[%s5119_s0 + $0x1] ss:$0 sm:$0xff] }
0x1013   : > { %4041 = vtanh.f32 %v2638_v2  ;;  %v3948_v1 = vld [vmem:[%s5120_s26 + $0x1] ss:$0 sm:$0xff] }
0x1014   : > { %v2631_v5 = vmul.f32 0.044715, %v2627_v3  ;;  %v2632_v6 = vmul.f32 0.044715, %v2628_v4 }
0x1016   : > { %v2635_v9 = vadd.f32 %v2631_v5, %v2605_v62  ;;  %v2636_v10 = vadd.f32 %v2632_v6, %v2619_v12 }
0x1018   : > { %v2639_v58 = vmul.f32 0.7978846, %v2635_v9  ;;  %v2640_v16 = vmul.f32 0.7978846, %v2636_v10  ;;  %v4040_v18 = vpop.eup %4039 }
0x1019   : > { %v4042_v15 = vpop.eup %4041  ;;  %v2645_v19 = vadd.f32 1.0, %v4040_v18 }
0x101a   : > { %4043 = vtanh.f32 %v2639_v58  ;;  %v2646_v20 = vadd.f32 1.0, %v4042_v15 }
0x101b   : > { %4045 = vtanh.f32 %v2640_v16  ;;  %v2649_v21 = vmul.f32 0.5, %v2645_v19 }
0x101c   : > { %v2650_v23 = vmul.f32 0.5, %v2646_v20 }
0x101d   : > { %v2653_v28 = vmul.f32 %v2649_v21, %v2603_v48 }
0x101e   : > { %v2654_v31 = vmul.f32 %v2650_v23, %v2617_v49 }
0x1020   : > { %v4044_v27 = vpop.eup %4043 }
0x1021   : > { %v4046_v37 = vpop.eup %4045  ;;  %v2647_v22 = vadd.f32 1.0, %v4044_v27 }
0x1022   : > { %v2648_v24 = vadd.f32 1.0, %v4046_v37 }
0x1023   : > { %v2651_v25 = vmul.f32 0.5, %v2647_v22 }
0x1024   : > { %v2652_v26 = vmul.f32 0.5, %v2648_v24 }
0x1025   : > { %v2655_v7 = vmul.f32 %v2651_v25, %v2605_v62 }
0x1026   : > { %v2656_v32 = vmul.f32 %v2652_v26, %v2619_v12 }
0x1027   : > { %v2657_v34 = vpack.c.bf16 %v2655_v7, %v2653_v28 }
0x1028   : > { %v2658_v33 = vpack.c.bf16 %v2656_v32, %v2654_v31 }
0x1029   : > { %2801 = vmatmul.bf16.vlgmr.msrb.gmra.mxu0 %v2657_v34 }
0x102a   : > { %2815 = vmatmul.bf16.vlgmr.msra.gmra.mxu1 %v2658_v33 }
0x10a6   : > { %v2802_v17 = vpop.f32.mrf.mxu0 }
0x10a7   : > { %v2803_v36 = vadd.f32 %v3946_v35, %v2802_v17  ;;  %v2816_v13 = vpop.f32.mrf.mxu1 }
0x10a9   : > { %v2817_v38 = vadd.f32 %v2816_v13, %v2803_v36 }
0x10ab   : > { %v2821_v14 = vadd.f32 %v2817_v38, %v5000_v29 }
0x10ad   : > { %2827 = vadd.xlane.f32.xlu0 %v2821_v14 }
0x10ae   : > { %v2804_v39 = vpop.f32.mrf.mxu0 }
0x10af   : > { %v2805_v40 = vadd.f32 %v3946_v35, %v2804_v39  ;;  %v2818_v41 = vpop.f32.mrf.mxu1 }
0x10b1   : > { %v2819_v42 = vadd.f32 %v2818_v41, %v2805_v40 }
0x10b3   : > { %v2822_v43 = vadd.f32 %v2819_v42, %v5002_v30 }
0x10b5   : > { %2829 = vadd.xlane.f32.xlu1 %v2822_v43 }
0x1120   : > { %v2828_v44 = vpop.xlane.xlu0 %2827 }
0x1121   : > { %v2831_v45 = vmul.f32 %v2828_v44, %v4756_v8 }
0x1123   : > { %v2833_v46 = vsub.f32 %v2821_v14, %v2831_v45 }
0x1125   : > { %v2835_v47 = vmul.f32 %v2833_v46, %v2833_v46 }
0x1127   : > { %2837 = vadd.xlane.f32.xlu2 %v2835_v47 }
0x1128   : > { %v2830_v52 = vpop.xlane.xlu1 %2829 }
0x1129   : > { %v2832_v53 = vmul.f32 %v2830_v52, %v4756_v8 }
0x112b   : > { %v2834_v48 = vsub.f32 %v2822_v43, %v2832_v53 }
0x112d   : > { %v2836_v49 = vmul.f32 %v2834_v48, %v2834_v48 }
0x112f   : > { %2839 = vadd.xlane.f32.xlu0 %v2836_v49 }
0x119a   : > { %v2838_v29 = vpop.xlane.xlu2 %2837 }
0x119b   : > { %v2841_v50 = vmul.f32 %v2838_v29, %v4756_v8 }
0x119d   : > { %v2843_v51 = vadd.f32 1e-12, %v2841_v50 }
0x119f   : > { %4047 = vrsqrt.f32 %v2843_v51  ;;  %vm2851_vm14 = vweird.f32 %v2843_v51 }
0x11a2   : > { %v2840_v56 = vpop.xlane.xlu0 %2839 }
0x11a3   : > { %v2842_v30 = vmul.f32 %v2840_v56, %v4756_v8 }
0x11a5   : > { %v4048_v11 = vpop.eup %4047  ;;  %v2844_v57 = vadd.f32 1e-12, %v2842_v30 }
0x11a6   : > { %v2846_v59 = vmul.f32 %v4048_v11, %v2843_v51  ;;  %vm2852_vm13 = vweird.f32 %v4048_v11 }
0x11a7   : > { %4049 = vrsqrt.f32 %v2844_v57  ;;  %vm2853_vm15 = vmor %vm2851_vm14, %vm2852_vm13  ;;  %vm2861_vm1 = vweird.f32 %v2844_v57 }
0x11a8   : > { %v2847_v60 = vmul.f32 %v4048_v11, %v2846_v59 }
0x11aa   : > { %v2848_v61 = vmul.f32 0.5, %v2847_v60 }
0x11ac   : > { %v2849_v54 = vsub.f32 1.5, %v2848_v61 }
0x11ad   : > { %v4050_v55 = vpop.eup %4049 }
0x11ae   : > { %v2850_v62 = vmul.f32 %v4048_v11, %v2849_v54  ;;  %v2856_v12 = vmul.f32 %v4050_v55, %v2844_v57  ;;  %vm2862_vm0 = vweird.f32 %v4050_v55 }
0x11af   : > { %vm2863_vm2 = vmor %vm2861_vm1, %vm2862_vm0 }
0x11b0   : > { %v2854_v8 = vsel %vm2853_vm15, %v4048_v11, %v2850_v62  ;;  %v2857_v0 = vmul.f32 %v4050_v55, %v2856_v12 }
0x11b1   : > { %v2865_v2 = vmul.f32 %v2854_v8, %v2833_v46 }
0x11b2   : > { %v2858_v3 = vmul.f32 0.5, %v2857_v0 }
0x11b3   : > { %v2870_v4 = vmul.f32 %v3947_v63, %v2865_v2 }
0x11b4   : > { %v2859_v5 = vsub.f32 1.5, %v2858_v3 }
0x11b5   : > { %v2875_v6 = vadd.f32 %v3948_v1, %v2870_v4 }
0x11b6   : > { %v2860_v9 = vmul.f32 %v4050_v55, %v2859_v5 }
0x11b7   : > { %2877 = vst [vmem:[%s704_s17] sm:$0xff] %v2875_v6 }
0x11b8   : > { %v2864_v10 = vsel %vm2863_vm2, %v4050_v55, %v2860_v9 }
0x11b9   : > { %v2866_v58 = vmul.f32 %v2864_v10, %v2834_v48 }
0x11bb   : > { %v2871_v16 = vmul.f32 %v3947_v63, %v2866_v58 }
0x11bd   : > { %v2876_v18 = vadd.f32 %v3948_v1, %v2871_v16 }
0x11bf   : > { %2878 = vst [vmem:[%s704_s17 + $0x8] sm:$0xff] %v2876_v18 }
0x11c0   : > { %4378 = shalt.err (!%p4375_p8)
}
0x11c1   : > { %s4465_s6 = smov 128   ;;  %s4466_s19 = smov 8  }
0x11c2   : > { %3793 = dma.vmem_to_hbm [thread:$0]  (%p4664_p5), %s2893_s3, 256, %s2895_s25, %s2880_s28, %s4465_s6, %s4465_s6, %s4466_s19  }
0x11c3 PF: > { %s2909_s2 = sand.u32 1, %s4429_s21   ;;  %p5122_p10 = scmp.ge.s32.totalorder %s4441_s24, 2 }
0x11c4   : > { %s2910_s4 = scalar_lea.sflag [#allocation4], %s2909_s2 }
0x11c5   : > { %p3828_p13 = pnand %p5122_p10, %p4668_p6 }
0x11c7   : > { %p3829_p11 = pneg %p3828_p13 }
0x11c9   : > { %4424 = dma.done.wait (%p3829_p11), %s2910_s4, 256  }
0x11ca   : > { %4426 = vsyncadd (%p3829_p11), %s2910_s4, 4294967040  ;;  %s5123_s29 = sld [smem:[#allocation28_spill]]  ;;  %p36_p0 = scmp.ge.s32.totalorder %s4636_s27, 4  }
0x11cb   : > { %s5124_s23 = sld [smem:[#allocation29_spill]]  ;;  %s5125_s21 = smov %s4433_s22 }
0x11cc   : > { %s5127_s24 = smov %s4636_s27  ;;  %38 = sbr.rel (!%p36_p0) target bundleno = 25 (0x19), region = 186 }
0x11d0   : > { %s5126_s22 = smov %s5123_s29 }
0x11d1   :  { %2916 = vsyncpa [#allocation3], 1 }
0x11d2   :  { %2918 = vsyncpa [#allocation3 + $0x1], 1 }
0x11d3   :  { %2919 = vsyncpa [#allocation6], 1 }
0x11d4   :  { %2921 = vsyncpa [#allocation6 + $0x1], 1 }
0x11d5   :  { %2922 = vsyncpa [#allocation9], 1 }
0x11d6   :  { %2923 = vsyncpa [#allocation12], 1 }
0x11d7   :  { %2924 = vsyncpa [#allocation15], 1 }
0x11d8   :  { %2925 = vsyncpa [#allocation18], 1 }
0x11d9   :  { %2926 = vsyncpa [#allocation4], 1 }
0x11da   :  { %2928 = vsyncpa [#allocation4 + $0x1], 1 }

</bundles_post_ra>
